<compile_context>
chip_gen: v6e
topology: v6e:2x2x1
jax: 0.10.0
libtpu: 0.0.40
codegen_flags: <defaults>
</compile_context>

<pallas_src>
import functools

import jax
import jax.numpy as jnp
from jax.experimental import pallas as pl
from jax.experimental.pallas import tpu as pltpu

LANE = 128      # TPU vreg lane width
SUBLANE = 8     # TPU vreg sublane count


def _round_up(x, m):
    return ((x + m - 1) // m) * m


def ic3net_kernel(comm_passes, nact, n_pad,
                  x_ref, a_ref, asc_ref,
                  wenc_ref, benc_ref, wf_ref, wc_ref, bfc_ref,
                  wheads_ref, bheads_ref,
                  hid_ref, head_ref):
    rows = x_ref.shape[0]                 # tile rows = (steps per tile) * n_pad
    hid_p = wenc_ref.shape[1]
    head_w = wheads_ref.shape[1]
    ts = rows // n_pad                    # steps per tile (static)

    # ---- state encoder (stand-in BasePolicy): Linear + leaky_relu, f32 epilogue ----
    h0 = jnp.dot(x_ref[...], wenc_ref[...],
                 preferred_element_type=jnp.float32) + benc_ref[...]
    x_enc = jnp.where(h0 > 0, h0, 0.01 * h0)                  # (rows, hid_p) f32

    a = a_ref[...]                                            # alive gate         (rows, 1)
    asc = asc_ref[...]                                        # alive * avg-scale  (rows, 1)

    hidden = x_enc
    for i in range(comm_passes):
        # comm_sum[s,k] = alive[k]*scale_s * (sum_{j in step s} alive[j]*h[j] - alive[k]*h[k])
        # -> per-step sublane reduction + VPU ops; no (N,N) mask matmul, no concat.
        masked = a * hidden                                   # dead / padded rows -> 0
        m3 = masked.reshape(ts, n_pad, hid_p)
        colsum = jnp.sum(m3, axis=1, keepdims=True)           # (ts, 1, hid_p)
        comm = asc * (colsum - m3).reshape(rows, hid_p)        # (rows, hid_p)
        z = (jnp.dot(hidden.astype(jnp.bfloat16), wf_ref[i],
                     preferred_element_type=jnp.float32)
             + jnp.dot(comm.astype(jnp.bfloat16), wc_ref[i],
                       preferred_element_type=jnp.float32))
        hidden = jnp.tanh(x_enc + z + bfc_ref[i])

    hid_ref[...] = hidden

    # ---- fused heads: [value | head0 logits | head1 logits | 0] in one dense slab ----
    heads = jnp.dot(hidden.astype(jnp.bfloat16), wheads_ref[...],
                    preferred_element_type=jnp.float32) + bheads_ref[...]
    col = jax.lax.broadcasted_iota(jnp.int32, (rows, head_w), 1)
    m0 = (col >= 1) & (col < 1 + nact)                         # head0 (env action) lanes
    m1 = (col >= 1 + nact) & (col < 3 + nact)                  # head1 (comm gate) lanes
    neg = jnp.float32(-1e30)
    mx0 = jnp.max(jnp.where(m0, heads, neg), axis=-1, keepdims=True)
    mx1 = jnp.max(jnp.where(m1, heads, neg), axis=-1, keepdims=True)
    smax = jnp.where(m0, mx0, mx1)                             # per-lane segment max
    e = jnp.where(m0 | m1, jnp.exp(heads - smax), 0.0)         # single exp pass
    s0 = jnp.sum(jnp.where(m0, e, 0.0), axis=-1, keepdims=True)
    s1 = jnp.sum(e, axis=-1, keepdims=True) - s0               # e == 0 outside m0|m1
    lse = jnp.where(m0, mx0 + jnp.log(s0), mx1 + jnp.log(s1))
    head_ref[...] = jnp.where(m0 | m1, heads - lse,
                              jnp.where(col == 0, heads, 0.0))


def prepare_params(params, *, comm_passes):
    """Build padded / fused / bf16 weight slabs ONCE (hoisted off the per-step path)."""
    feat, hid = params["w_enc"].shape
    nact = params["w_h0"].shape[1]
    P = comm_passes
    hid_p = _round_up(max(hid, LANE), LANE)
    head_w = _round_up(max(1 + nact + 2, LANE), LANE)

    def pad2(w, r, c):
        w = w.astype(jnp.float32)
        return jnp.pad(w, ((0, r - w.shape[0]), (0, c - w.shape[1])))

    w_enc = pad2(params["w_enc"], feat, hid_p).astype(jnp.bfloat16)
    b_enc = pad2(params["b_enc"], 1, hid_p)                                   # f32

    wf = jnp.zeros((P, hid_p, hid_p), jnp.float32)
    wf = wf.at[:, :hid, :hid].set(params["w_f"].astype(jnp.float32)).astype(jnp.bfloat16)
    wc = jnp.zeros((P, hid_p, hid_p), jnp.float32)
    wc = wc.at[:, :hid, :hid].set(params["w_c"].astype(jnp.float32)).astype(jnp.bfloat16)
    bfc = jnp.zeros((P, 1, hid_p), jnp.float32)
    bfc = bfc.at[:, :, :hid].set((params["b_f"] + params["b_c"]).astype(jnp.float32))

    wheads = jnp.zeros((hid_p, head_w), jnp.float32)
    wheads = wheads.at[:hid, 0:1].set(params["w_v"].astype(jnp.float32))
    wheads = wheads.at[:hid, 1:1 + nact].set(params["w_h0"].astype(jnp.float32))
    wheads = wheads.at[:hid, 1 + nact:3 + nact].set(params["w_h1"].astype(jnp.float32))
    wheads = wheads.astype(jnp.bfloat16)
    bheads = jnp.zeros((1, head_w), jnp.float32)
    bheads = bheads.at[:, 0:1].set(params["b_v"].astype(jnp.float32))
    bheads = bheads.at[:, 1:1 + nact].set(params["b_h0"].astype(jnp.float32))
    bheads = bheads.at[:, 1 + nact:3 + nact].set(params["b_h1"].astype(jnp.float32))

    return dict(w_enc=w_enc, b_enc=b_enc, wf=wf, wc=wc, bfc=bfc,
                wheads=wheads, bheads=bheads,
                hid=hid, nact=nact, hid_p=hid_p, head_w=head_w, feat=feat)


def ic3net_forward(obs, prepped, *, comm_passes, comm_mode_avg=True,
                   alive_mask=None, target_tile_rows=256):
    """obs: (S, N, C, H, W) -- S independent env steps, each the module's batch=1
    forward over N agents. Returns (hidden (S,N,hid), value (S,N,1),
    log_prob_head0 (S,N,nact), log_prob_head1 (S,N,2))."""
    S, N, C, H, W = obs.shape
    feat = C * H * W
    assert feat == prepped["feat"]
    hid, nact = prepped["hid"], prepped["nact"]
    hid_p, head_w = prepped["hid_p"], prepped["head_w"]

    n_pad = _round_up(N, SUBLANE)
    tile_steps = max(1, min(S, target_tile_rows // n_pad))
    S_pad = _round_up(S, tile_steps)
    rows = S_pad * n_pad
    tile_rows = tile_steps * n_pad
    grid = (S_pad // tile_steps,)

    # observations -> lane/sublane-dense (rows, feat) bf16 slab; padded rows are zero
    x = obs.reshape(S, N, feat).astype(jnp.bfloat16)
    x = jnp.pad(x, ((0, S_pad - S), (0, n_pad - N), (0, 0))).reshape(rows, feat)

    # per-row alive gate and alive*avg-scale gate (replaces the (N,N) comm-mask matmul;
    # get_agent_mask + comm_mask + 'avg' normalization folded in, padded rows gate to 0)
    if alive_mask is None:
        alive = jnp.ones((S, N), jnp.float32)
    else:
        alive = jnp.broadcast_to(alive_mask.astype(jnp.float32), (S, N))
    num_alive = jnp.sum(alive, axis=1, keepdims=True)                        # (S, 1)
    if comm_mode_avg:
        scale = 1.0 / jnp.maximum(num_alive - 1.0, 1.0)
    else:
        scale = jnp.ones_like(num_alive)
    a = jnp.pad(alive, ((0, S_pad - S), (0, n_pad - N))).reshape(rows, 1)
    asc = jnp.pad(alive * scale, ((0, S_pad - S), (0, n_pad - N))).reshape(rows, 1)

    kernel = functools.partial(ic3net_kernel, comm_passes, nact, n_pad)

    def row_spec(c):
        return pl.BlockSpec((tile_rows, c), lambda s: (s, 0))

    def const_spec(shape):
        if len(shape) == 2:
            return pl.BlockSpec(shape, lambda s: (0, 0))
        return pl.BlockSpec(shape, lambda s: (0, 0, 0))

    hid_out, head_out = pl.pallas_call(
        kernel,
        out_shape=(jax.ShapeDtypeStruct((rows, hid_p), jnp.float32),
                   jax.ShapeDtypeStruct((rows, head_w), jnp.float32)),
        grid=grid,
        in_specs=[row_spec(feat), row_spec(1), row_spec(1),
                  const_spec(prepped["w_enc"].shape), const_spec(prepped["b_enc"].shape),
                  const_spec(prepped["wf"].shape), const_spec(prepped["wc"].shape),
                  const_spec(prepped["bfc"].shape),
                  const_spec(prepped["wheads"].shape), const_spec(prepped["bheads"].shape)],
        out_specs=(row_spec(hid_p), row_spec(head_w)),
        compiler_params=pltpu.CompilerParams(
            dimension_semantics=("parallel",)),   # shards chunks across v7x's 2 cores
    )(x, a, asc,
      prepped["w_enc"], prepped["b_enc"], prepped["wf"], prepped["wc"],
      prepped["bfc"], prepped["wheads"], prepped["bheads"])

    hid3 = hid_out.reshape(S_pad, n_pad, hid_p)[:S, :N, :hid]
    head3 = head_out.reshape(S_pad, n_pad, head_w)[:S, :N, :]
    value = head3[..., 0:1]
    lp0 = head3[..., 1:1 + nact]
    lp1 = head3[..., 1 + nact:3 + nact]
    return hid3, value, lp0, lp1


def ic3net_reference(obs, params, *, comm_passes, comm_mode_avg=True):
    """Pure-JAX f32 reference of the same forward (all agents alive)."""
    S, N, C, H, W = obs.shape
    x = obs.reshape(S, N, C * H * W).astype(jnp.float32)
    h = x @ params["w_enc"] + params["b_enc"]
    x_enc = jnp.where(h > 0, h, 0.01 * h)
    hidden = x_enc
    scale = 1.0 / max(N - 1, 1) if (comm_mode_avg and N > 1) else 1.0
    for i in range(comm_passes):
        comm = scale * (jnp.sum(hidden, axis=1, keepdims=True) - hidden)
        hidden = jnp.tanh(x_enc + hidden @ params["w_f"][i] + comm @ params["w_c"][i]
                          + params["b_f"][i] + params["b_c"][i])
    value = hidden @ params["w_v"] + params["b_v"]
    lp0 = jax.nn.log_softmax(hidden @ params["w_h0"] + params["b_h0"], axis=-1)
    lp1 = jax.nn.log_softmax(hidden @ params["w_h1"] + params["b_h1"], axis=-1)
    return hidden, value, lp0, lp1


def init_params(key, *, obs_feat, hid, comm_passes, n_actions):
    """Deterministic PyTorch-nn.Linear-style init (uniform +/- 1/sqrt(fan_in))."""
    def lin(k, fin, fout):
        s = 1.0 / float(fin) ** 0.5
        kw, kb = jax.random.split(k)
        w = jax.random.uniform(kw, (fin, fout), jnp.float32, -s, s)
        b = jax.random.uniform(kb, (1, fout), jnp.float32, -s, s)
        return w, b

    keys = jax.random.split(key, 3 + 2 * comm_passes + 3)
    it = iter(keys)
    w_enc, b_enc = lin(next(it), obs_feat, hid)
    wf, bf, wc, bc = [], [], [], []
    for _ in range(comm_passes):
        w, b = lin(next(it), hid, hid); wf.append(w); bf.append(b)
        w, b = lin(next(it), hid, hid); wc.append(w); bc.append(b)
    w_v, b_v = lin(next(it), hid, 1)
    w_h0, b_h0 = lin(next(it), hid, n_actions)
    w_h1, b_h1 = lin(next(it), hid, 2)
    return dict(
        w_enc=w_enc, b_enc=b_enc,
        w_f=jnp.stack(wf), b_f=jnp.stack(bf),     # (P, hid, hid), (P, 1, hid)
        w_c=jnp.stack(wc), b_c=jnp.stack(bc),
        w_v=w_v, b_v=b_v,
        w_h0=w_h0, b_h0=b_h0, w_h1=w_h1, b_h1=b_h1,
    )


if __name__ == "__main__":
    # 64 env steps of 4 agents, per-agent obs (4, 8, 8), hid=32.  Steps are batched
    # into the matmul M dimension (rows = 64*8 = 512, two 256-row grid chunks).
    S, N, C, H, W = 64, 4, 4, 8, 8
    HID = 32
    COMM_PASSES = 2
    N_ACTIONS = 5

    key = jax.random.PRNGKey(0)
    k_obs, k_par = jax.random.split(key)
    obs = jax.random.normal(k_obs, (S, N, C, H, W), jnp.float32)
    params = init_params(k_par, obs_feat=C * H * W, hid=HID,
                         comm_passes=COMM_PASSES, n_actions=N_ACTIONS)

    prepped = prepare_params(params, comm_passes=COMM_PASSES)    # built once, reused
    fwd = jax.jit(functools.partial(ic3net_forward, prepped=prepped,
                                    comm_passes=COMM_PASSES))

    hidden, value, lp0, lp1 = fwd(obs)
    # greedy action selection (argmax over log-probs), done outside the kernel
    act0 = jnp.argmax(lp0, axis=-1)
    act1 = jnp.argmax(lp1, axis=-1)
    jax.block_until_ready((hidden, value, lp0, lp1, act0, act1))

    # structural checks (exact regardless of bf16 weights)
    assert hidden.shape == (S, N, HID) and value.shape == (S, N, 1)
    assert lp0.shape == (S, N, N_ACTIONS) and lp1.shape == (S, N, 2)
    for t in (hidden, value, lp0, lp1):
        assert bool(jnp.all(jnp.isfinite(t)))
    assert bool(jnp.all(jnp.abs(jnp.sum(jnp.exp(lp0), axis=-1) - 1.0) < 1e-3))
    assert bool(jnp.all(jnp.abs(jnp.sum(jnp.exp(lp1), axis=-1) - 1.0) < 1e-3))
    assert bool(jnp.all(jnp.abs(hidden) <= 1.0 + 1e-6))

    # numeric check vs pure-JAX f32 reference (loose tolerance: kernel weights are bf16)
    r_hidden, r_value, r_lp0, r_lp1 = ic3net_reference(obs, params,
                                                       comm_passes=COMM_PASSES)
    for got, ref in ((hidden, r_hidden), (value, r_value), (lp0, r_lp0), (lp1, r_lp1)):
        assert bool(jnp.max(jnp.abs(got - ref)) < 0.1)

    print("KERNEL_OK")
</pallas_src>

<mosaic_0001>
module attributes {stable_mosaic.version = 11 : i64} {
  func.func @ic3net_kernel(%arg0: i32, %arg1: memref<256x256xbf16, #tpu.memory_space<vmem>>, %arg2: memref<256x1xf32, #tpu.memory_space<vmem>>, %arg3: memref<256x1xf32, #tpu.memory_space<vmem>>, %arg4: memref<256x128xbf16, #tpu.memory_space<vmem>>, %arg5: memref<1x128xf32, #tpu.memory_space<vmem>>, %arg6: memref<2x128x128xbf16, #tpu.memory_space<vmem>>, %arg7: memref<2x128x128xbf16, #tpu.memory_space<vmem>>, %arg8: memref<2x1x128xf32, #tpu.memory_space<vmem>>, %arg9: memref<128x128xbf16, #tpu.memory_space<vmem>>, %arg10: memref<1x128xf32, #tpu.memory_space<vmem>>, %arg11: memref<256x128xf32, #tpu.memory_space<vmem>>, %arg12: memref<256x128xf32, #tpu.memory_space<vmem>>) attributes {dimension_semantics = [#tpu.dimension_semantics<parallel>], iteration_bounds = array<i64: 2>, scalar_prefetch = 0 : i64, scratch_operands = 0 : i64, tpu.core_type = #tpu.core_type<tc>, window_params = [{transform_indices = @transform_0, window_bounds = array<i64: 256, 256>}, {transform_indices = @transform_1, window_bounds = array<i64: 256, 1>}, {transform_indices = @transform_2, window_bounds = array<i64: 256, 1>}, {pipeline_mode = #tpu.pipeline_mode<synchronous>, transform_indices = @transform_3, window_bounds = array<i64: 256, 128>}, {pipeline_mode = #tpu.pipeline_mode<synchronous>, transform_indices = @transform_4, window_bounds = array<i64: 1, 128>}, {pipeline_mode = #tpu.pipeline_mode<synchronous>, transform_indices = @transform_5, window_bounds = array<i64: 2, 128, 128>}, {pipeline_mode = #tpu.pipeline_mode<synchronous>, transform_indices = @transform_6, window_bounds = array<i64: 2, 128, 128>}, {pipeline_mode = #tpu.pipeline_mode<synchronous>, transform_indices = @transform_7, window_bounds = array<i64: 2, 1, 128>}, {pipeline_mode = #tpu.pipeline_mode<synchronous>, transform_indices = @transform_8, window_bounds = array<i64: 128, 128>}, {pipeline_mode = #tpu.pipeline_mode<synchronous>, transform_indices = @transform_9, window_bounds = array<i64: 1, 128>}, {transform_indices = @transform_10, window_bounds = array<i64: 256, 128>}, {transform_indices = @transform_11, window_bounds = array<i64: 256, 128>}]} {
    %c0 = arith.constant 0 : index
    %c0_0 = arith.constant 0 : index
    %0 = vector.load %arg1[%c0, %c0_0] : memref<256x256xbf16, #tpu.memory_space<vmem>>, vector<256x256xbf16>
    %c0_1 = arith.constant 0 : index
    %c0_2 = arith.constant 0 : index
    %1 = vector.load %arg4[%c0_1, %c0_2] : memref<256x128xbf16, #tpu.memory_space<vmem>>, vector<256x128xbf16>
    %cst = arith.constant dense<0.000000e+00> : vector<256x128xf32>
    %2 = tpu.matmul %0, %1, %cst {dimension_numbers = #tpu.dot_dimension_numbers<[1], [0], [0], [1], [0, 0, 1, 1], [], []>} : vector<256x256xbf16>, vector<256x128xbf16>, vector<256x128xf32> -> vector<256x128xf32>
    %c0_3 = arith.constant 0 : index
    %c0_4 = arith.constant 0 : index
    %3 = vector.load %arg5[%c0_3, %c0_4] : memref<1x128xf32, #tpu.memory_space<vmem>>, vector<1x128xf32>
    %4 = vector.broadcast %3 : vector<1x128xf32> to vector<256x128xf32>
    %5 = arith.addf %2, %4 : vector<256x128xf32>
    %cst_5 = arith.constant 0.000000e+00 : f32
    %6 = vector.broadcast %cst_5 : f32 to vector<256x128xf32>
    %7 = arith.cmpf ogt, %5, %6 : vector<256x128xf32>
    %cst_6 = arith.constant 0.00999999977 : f32
    %8 = vector.broadcast %cst_6 : f32 to vector<256x128xf32>
    %9 = arith.mulf %8, %5 : vector<256x128xf32>
    %10 = arith.select %7, %5, %9 : vector<256x128xi1>, vector<256x128xf32>
    %c0_7 = arith.constant 0 : index
    %c0_8 = arith.constant 0 : index
    %11 = vector.load %arg2[%c0_7, %c0_8] : memref<256x1xf32, #tpu.memory_space<vmem>>, vector<256x1xf32>
    %c0_9 = arith.constant 0 : index
    %c0_10 = arith.constant 0 : index
    %12 = vector.load %arg3[%c0_9, %c0_10] : memref<256x1xf32, #tpu.memory_space<vmem>>, vector<256x1xf32>
    %13 = vector.broadcast %11 : vector<256x1xf32> to vector<256x128xf32>
    %14 = arith.mulf %13, %10 : vector<256x128xf32>
    %15 = vector.shape_cast %14 : vector<256x128xf32> to vector<32x8x128xf32>
    %cst_11 = arith.constant dense<0.000000e+00> : vector<32x128xf32>
    %16 = vector.multi_reduction <add>, %15, %cst_11 [1] : vector<32x8x128xf32> to vector<32x128xf32>
    %17 = vector.shape_cast %16 : vector<32x128xf32> to vector<32x1x128xf32>
    %18 = vector.broadcast %17 : vector<32x1x128xf32> to vector<32x8x128xf32>
    %19 = arith.subf %18, %15 : vector<32x8x128xf32>
    %20 = vector.shape_cast %19 : vector<32x8x128xf32> to vector<256x128xf32>
    %21 = vector.broadcast %12 : vector<256x1xf32> to vector<256x128xf32>
    %22 = arith.mulf %21, %20 : vector<256x128xf32>
    %23 = arith.truncf %10 : vector<256x128xf32> to vector<256x128xbf16>
    %c0_12 = arith.constant 0 : index
    %c0_13 = arith.constant 0 : index
    %c0_14 = arith.constant 0 : index
    %24 = vector.load %arg6[%c0_12, %c0_13, %c0_14] : memref<2x128x128xbf16, #tpu.memory_space<vmem>>, vector<1x128x128xbf16>
    %25 = vector.shape_cast %24 : vector<1x128x128xbf16> to vector<128x128xbf16>
    %cst_15 = arith.constant dense<0.000000e+00> : vector<256x128xf32>
    %26 = tpu.matmul %23, %25, %cst_15 {dimension_numbers = #tpu.dot_dimension_numbers<[1], [0], [0], [1], [0, 0, 1, 1], [], []>} : vector<256x128xbf16>, vector<128x128xbf16>, vector<256x128xf32> -> vector<256x128xf32>
    %27 = arith.truncf %22 : vector<256x128xf32> to vector<256x128xbf16>
    %c0_16 = arith.constant 0 : index
    %c0_17 = arith.constant 0 : index
    %c0_18 = arith.constant 0 : index
    %28 = vector.load %arg7[%c0_16, %c0_17, %c0_18] : memref<2x128x128xbf16, #tpu.memory_space<vmem>>, vector<1x128x128xbf16>
    %29 = vector.shape_cast %28 : vector<1x128x128xbf16> to vector<128x128xbf16>
    %cst_19 = arith.constant dense<0.000000e+00> : vector<256x128xf32>
    %30 = tpu.matmul %27, %29, %cst_19 {dimension_numbers = #tpu.dot_dimension_numbers<[1], [0], [0], [1], [0, 0, 1, 1], [], []>} : vector<256x128xbf16>, vector<128x128xbf16>, vector<256x128xf32> -> vector<256x128xf32>
    %31 = arith.addf %26, %30 : vector<256x128xf32>
    %32 = arith.addf %10, %31 : vector<256x128xf32>
    %c0_20 = arith.constant 0 : index
    %c0_21 = arith.constant 0 : index
    %c0_22 = arith.constant 0 : index
    %33 = vector.load %arg8[%c0_20, %c0_21, %c0_22] : memref<2x1x128xf32, #tpu.memory_space<vmem>>, vector<1x1x128xf32>
    %34 = vector.shape_cast %33 : vector<1x1x128xf32> to vector<1x128xf32>
    %35 = vector.broadcast %34 : vector<1x128xf32> to vector<256x128xf32>
    %36 = arith.addf %32, %35 : vector<256x128xf32>
    %37 = math.tanh %36 : vector<256x128xf32>
    %38 = vector.broadcast %11 : vector<256x1xf32> to vector<256x128xf32>
    %39 = arith.mulf %38, %37 : vector<256x128xf32>
    %40 = vector.shape_cast %39 : vector<256x128xf32> to vector<32x8x128xf32>
    %cst_23 = arith.constant dense<0.000000e+00> : vector<32x128xf32>
    %41 = vector.multi_reduction <add>, %40, %cst_23 [1] : vector<32x8x128xf32> to vector<32x128xf32>
    %42 = vector.shape_cast %41 : vector<32x128xf32> to vector<32x1x128xf32>
    %43 = vector.broadcast %42 : vector<32x1x128xf32> to vector<32x8x128xf32>
    %44 = arith.subf %43, %40 : vector<32x8x128xf32>
    %45 = vector.shape_cast %44 : vector<32x8x128xf32> to vector<256x128xf32>
    %46 = vector.broadcast %12 : vector<256x1xf32> to vector<256x128xf32>
    %47 = arith.mulf %46, %45 : vector<256x128xf32>
    %48 = arith.truncf %37 : vector<256x128xf32> to vector<256x128xbf16>
    %c1 = arith.constant 1 : index
    %c0_24 = arith.constant 0 : index
    %c0_25 = arith.constant 0 : index
    %49 = vector.load %arg6[%c1, %c0_24, %c0_25] : memref<2x128x128xbf16, #tpu.memory_space<vmem>>, vector<1x128x128xbf16>
    %50 = vector.shape_cast %49 : vector<1x128x128xbf16> to vector<128x128xbf16>
    %cst_26 = arith.constant dense<0.000000e+00> : vector<256x128xf32>
    %51 = tpu.matmul %48, %50, %cst_26 {dimension_numbers = #tpu.dot_dimension_numbers<[1], [0], [0], [1], [0, 0, 1, 1], [], []>} : vector<256x128xbf16>, vector<128x128xbf16>, vector<256x128xf32> -> vector<256x128xf32>
    %52 = arith.truncf %47 : vector<256x128xf32> to vector<256x128xbf16>
    %c1_27 = arith.constant 1 : index
    %c0_28 = arith.constant 0 : index
    %c0_29 = arith.constant 0 : index
    %53 = vector.load %arg7[%c1_27, %c0_28, %c0_29] : memref<2x128x128xbf16, #tpu.memory_space<vmem>>, vector<1x128x128xbf16>
    %54 = vector.shape_cast %53 : vector<1x128x128xbf16> to vector<128x128xbf16>
    %cst_30 = arith.constant dense<0.000000e+00> : vector<256x128xf32>
    %55 = tpu.matmul %52, %54, %cst_30 {dimension_numbers = #tpu.dot_dimension_numbers<[1], [0], [0], [1], [0, 0, 1, 1], [], []>} : vector<256x128xbf16>, vector<128x128xbf16>, vector<256x128xf32> -> vector<256x128xf32>
    %56 = arith.addf %51, %55 : vector<256x128xf32>
    %57 = arith.addf %10, %56 : vector<256x128xf32>
    %c1_31 = arith.constant 1 : index
    %c0_32 = arith.constant 0 : index
    %c0_33 = arith.constant 0 : index
    %58 = vector.load %arg8[%c1_31, %c0_32, %c0_33] : memref<2x1x128xf32, #tpu.memory_space<vmem>>, vector<1x1x128xf32>
    %59 = vector.shape_cast %58 : vector<1x1x128xf32> to vector<1x128xf32>
    %60 = vector.broadcast %59 : vector<1x128xf32> to vector<256x128xf32>
    %61 = arith.addf %57, %60 : vector<256x128xf32>
    %62 = math.tanh %61 : vector<256x128xf32>
    %c0_34 = arith.constant 0 : index
    %c0_35 = arith.constant 0 : index
    %63 = vector.load %arg11[%c0_34, %c0_35] : memref<256x128xf32, #tpu.memory_space<vmem>>, vector<256x128xf32>
    tpu.vector_store %arg11[%c0_34, %c0_35], %62 {strides = array<i32>} : memref<256x128xf32, #tpu.memory_space<vmem>>, vector<256x128xf32>,
    %64 = arith.truncf %62 : vector<256x128xf32> to vector<256x128xbf16>
    %c0_36 = arith.constant 0 : index
    %c0_37 = arith.constant 0 : index
    %65 = vector.load %arg9[%c0_36, %c0_37] : memref<128x128xbf16, #tpu.memory_space<vmem>>, vector<128x128xbf16>
    %cst_38 = arith.constant dense<0.000000e+00> : vector<256x128xf32>
    %66 = tpu.matmul %64, %65, %cst_38 {dimension_numbers = #tpu.dot_dimension_numbers<[1], [0], [0], [1], [0, 0, 1, 1], [], []>} : vector<256x128xbf16>, vector<128x128xbf16>, vector<256x128xf32> -> vector<256x128xf32>
    %c0_39 = arith.constant 0 : index
    %c0_40 = arith.constant 0 : index
    %67 = vector.load %arg10[%c0_39, %c0_40] : memref<1x128xf32, #tpu.memory_space<vmem>>, vector<1x128xf32>
    %68 = vector.broadcast %67 : vector<1x128xf32> to vector<256x128xf32>
    %69 = arith.addf %66, %68 : vector<256x128xf32>
    %70 = tpu.iota {dimensions = array<i32: 1>} : vector<256x128xi32>
    %c1_i32 = arith.constant 1 : i32
    %71 = vector.broadcast %c1_i32 : i32 to vector<256x128xi32>
    %72 = arith.cmpi sge, %70, %71 : vector<256x128xi32>
    %c6_i32 = arith.constant 6 : i32
    %73 = vector.broadcast %c6_i32 : i32 to vector<256x128xi32>
    %74 = arith.cmpi slt, %70, %73 : vector<256x128xi32>
    %75 = arith.andi %72, %74 : vector<256x128xi1>
    %c6_i32_41 = arith.constant 6 : i32
    %76 = vector.broadcast %c6_i32_41 : i32 to vector<256x128xi32>
    %77 = arith.cmpi sge, %70, %76 : vector<256x128xi32>
    %c8_i32 = arith.constant 8 : i32
    %78 = vector.broadcast %c8_i32 : i32 to vector<256x128xi32>
    %79 = arith.cmpi slt, %70, %78 : vector<256x128xi32>
    %80 = arith.andi %77, %79 : vector<256x128xi1>
    %cst_42 = arith.constant -1.000000e+30 : f32
    %81 = vector.broadcast %cst_42 : f32 to vector<256x128xf32>
    %82 = arith.select %75, %69, %81 : vector<256x128xi1>, vector<256x128xf32>
    %cst_43 = arith.constant dense<0xFF800000> : vector<256xf32>
    %83 = vector.multi_reduction <maximumf>, %82, %cst_43 [1] : vector<256x128xf32> to vector<256xf32>
    %84 = vector.shape_cast %83 : vector<256xf32> to vector<256x1xf32>
    %cst_44 = arith.constant -1.000000e+30 : f32
    %85 = vector.broadcast %cst_44 : f32 to vector<256x128xf32>
    %86 = arith.select %80, %69, %85 : vector<256x128xi1>, vector<256x128xf32>
    %cst_45 = arith.constant dense<0xFF800000> : vector<256xf32>
    %87 = vector.multi_reduction <maximumf>, %86, %cst_45 [1] : vector<256x128xf32> to vector<256xf32>
    %88 = vector.shape_cast %87 : vector<256xf32> to vector<256x1xf32>
    %89 = vector.shape_cast %84 : vector<256x1xf32> to vector<256x1xf32>
    %90 = vector.broadcast %89 : vector<256x1xf32> to vector<256x128xf32>
    %91 = vector.shape_cast %88 : vector<256x1xf32> to vector<256x1xf32>
    %92 = vector.broadcast %91 : vector<256x1xf32> to vector<256x128xf32>
    %93 = arith.select %75, %90, %92 : vector<256x128xi1>, vector<256x128xf32>
    %94 = arith.ori %75, %80 : vector<256x128xi1>
    %95 = arith.subf %69, %93 : vector<256x128xf32>
    %96 = math.exp %95 : vector<256x128xf32>
    %cst_46 = arith.constant 0.000000e+00 : f32
    %97 = vector.broadcast %cst_46 : f32 to vector<256x128xf32>
    %98 = arith.select %94, %96, %97 : vector<256x128xi1>, vector<256x128xf32>
    %cst_47 = arith.constant 0.000000e+00 : f32
    %99 = vector.broadcast %cst_47 : f32 to vector<256x128xf32>
    %100 = arith.select %75, %98, %99 : vector<256x128xi1>, vector<256x128xf32>
    %cst_48 = arith.constant dense<0.000000e+00> : vector<256xf32>
    %101 = vector.multi_reduction <add>, %100, %cst_48 [1] : vector<256x128xf32> to vector<256xf32>
    %102 = vector.shape_cast %101 : vector<256xf32> to vector<256x1xf32>
    %cst_49 = arith.constant dense<0.000000e+00> : vector<256xf32>
    %103 = vector.multi_reduction <add>, %98, %cst_49 [1] : vector<256x128xf32> to vector<256xf32>
    %104 = vector.shape_cast %103 : vector<256xf32> to vector<256x1xf32>
    %105 = arith.subf %104, %102 : vector<256x1xf32>
    %106 = math.log %102 : vector<256x1xf32>
    %107 = arith.addf %84, %106 : vector<256x1xf32>
    %108 = math.log %105 : vector<256x1xf32>
    %109 = arith.addf %88, %108 : vector<256x1xf32>
    %110 = vector.shape_cast %107 : vector<256x1xf32> to vector<256x1xf32>
    %111 = vector.broadcast %110 : vector<256x1xf32> to vector<256x128xf32>
    %112 = vector.shape_cast %109 : vector<256x1xf32> to vector<256x1xf32>
    %113 = vector.broadcast %112 : vector<256x1xf32> to vector<256x128xf32>
    %114 = arith.select %75, %111, %113 : vector<256x128xi1>, vector<256x128xf32>
    %115 = arith.ori %75, %80 : vector<256x128xi1>
    %116 = arith.subf %69, %114 : vector<256x128xf32>
    %c0_i32 = arith.constant 0 : i32
    %117 = vector.broadcast %c0_i32 : i32 to vector<256x128xi32>
    %118 = arith.cmpi eq, %70, %117 : vector<256x128xi32>
    %cst_50 = arith.constant 0.000000e+00 : f32
    %119 = vector.broadcast %cst_50 : f32 to vector<256x128xf32>
    %120 = arith.select %118, %69, %119 : vector<256x128xi1>, vector<256x128xf32>
    %121 = arith.select %115, %116, %120 : vector<256x128xi1>, vector<256x128xf32>
    %c0_51 = arith.constant 0 : index
    %c0_52 = arith.constant 0 : index
    %122 = vector.load %arg12[%c0_51, %c0_52] : memref<256x128xf32, #tpu.memory_space<vmem>>, vector<256x128xf32>
    tpu.vector_store %arg12[%c0_51, %c0_52], %121 {strides = array<i32>} : memref<256x128xf32, #tpu.memory_space<vmem>>, vector<256x128xf32>,
    return
  }
  func.func @transform_0(%arg0: i32) -> (i32, i32) {
    %c0_i32 = arith.constant 0 : i32
    %c0_i32_0 = arith.constant 0 : i32
    return %arg0, %c0_i32 : i32, i32
  }
  func.func @transform_1(%arg0: i32) -> (i32, i32) {
    %c0_i32 = arith.constant 0 : i32
    %c0_i32_0 = arith.constant 0 : i32
    return %arg0, %c0_i32 : i32, i32
  }
  func.func @transform_2(%arg0: i32) -> (i32, i32) {
    %c0_i32 = arith.constant 0 : i32
    %c0_i32_0 = arith.constant 0 : i32
    return %arg0, %c0_i32 : i32, i32
  }
  func.func @transform_3(%arg0: i32) -> (i32, i32) {
    %c0_i32 = arith.constant 0 : i32
    %c0_i32_0 = arith.constant 0 : i32
    %c0_i32_1 = arith.constant 0 : i32
    return %c0_i32, %c0_i32_0 : i32, i32
  }
  func.func @transform_4(%arg0: i32) -> (i32, i32) {
    %c0_i32 = arith.constant 0 : i32
    %c0_i32_0 = arith.constant 0 : i32
    %c0_i32_1 = arith.constant 0 : i32
    return %c0_i32, %c0_i32_0 : i32, i32
  }
  func.func @transform_5(%arg0: i32) -> (i32, i32, i32) {
    %c0_i32 = arith.constant 0 : i32
    %c0_i32_0 = arith.constant 0 : i32
    %c0_i32_1 = arith.constant 0 : i32
    %c0_i32_2 = arith.constant 0 : i32
    return %c0_i32, %c0_i32_0, %c0_i32_1 : i32, i32, i32
  }
  func.func @transform_6(%arg0: i32) -> (i32, i32, i32) {
    %c0_i32 = arith.constant 0 : i32
    %c0_i32_0 = arith.constant 0 : i32
    %c0_i32_1 = arith.constant 0 : i32
    %c0_i32_2 = arith.constant 0 : i32
    return %c0_i32, %c0_i32_0, %c0_i32_1 : i32, i32, i32
  }
  func.func @transform_7(%arg0: i32) -> (i32, i32, i32) {
    %c0_i32 = arith.constant 0 : i32
    %c0_i32_0 = arith.constant 0 : i32
    %c0_i32_1 = arith.constant 0 : i32
    %c0_i32_2 = arith.constant 0 : i32
    return %c0_i32, %c0_i32_0, %c0_i32_1 : i32, i32, i32
  }
  func.func @transform_8(%arg0: i32) -> (i32, i32) {
    %c0_i32 = arith.constant 0 : i32
    %c0_i32_0 = arith.constant 0 : i32
    %c0_i32_1 = arith.constant 0 : i32
    return %c0_i32, %c0_i32_0 : i32, i32
  }
  func.func @transform_9(%arg0: i32) -> (i32, i32) {
    %c0_i32 = arith.constant 0 : i32
    %c0_i32_0 = arith.constant 0 : i32
    %c0_i32_1 = arith.constant 0 : i32
    return %c0_i32, %c0_i32_0 : i32, i32
  }
  func.func @transform_10(%arg0: i32) -> (i32, i32) {
    %c0_i32 = arith.constant 0 : i32
    %c0_i32_0 = arith.constant 0 : i32
    return %arg0, %c0_i32 : i32, i32
  }
  func.func @transform_11(%arg0: i32) -> (i32, i32) {
    %c0_i32 = arith.constant 0 : i32
    %c0_i32_0 = arith.constant 0 : i32
    return %arg0, %c0_i32 : i32, i32
  }
}

</mosaic_0001>

<bundles_post_ra>
// kernel: ic3net_forward.1
= control target key start
LH: loop header
LB: loop body
LE: loop exit
PB: predicated region body
PF: predicated region fallthrough
CT: control target
= control target key end

     0   :  { %s5605_s17 = smov 0   ;;  %s8175_s0 = inlined_call_operand.vmem [shape: bf16[512,256], index: 0, kind: input, shape index: {}]   ;;  %s8176_s1 = inlined_call_operand.vmem [shape: f32[512,1], index: 1, kind: input, shape index: {}]   ;;  %s8177_s2 = inlined_call_operand.vmem [shape: f32[512,1], index: 2, kind: input, shape index: {}]   ;;  %s8178_s3 = inlined_call_operand.vmem [shape: bf16[256,128], index: 3, kind: input, shape index: {}]   ;;  %s8179_s4 = inlined_call_operand.vmem [shape: f32[1,128], index: 4, kind: input, shape index: {}]   ;;  %s8180_s5 = inlined_call_operand.vmem [shape: bf16[2,128,128], index: 5, kind: input, shape index: {}]   ;;  %s8181_s6 = inlined_call_operand.vmem [shape: bf16[2,128,128], index: 6, kind: input, shape index: {}]   ;;  %s8182_s7 = inlined_call_operand.vmem [shape: f32[2,1,128], index: 7, kind: input, shape index: {}]   ;;  %s8183_s8 = inlined_call_operand.vmem [shape: bf16[128,128], index: 8, kind: input, shape index: {}]   ;;  %s8184_s9 = inlined_call_operand.vmem [shape: f32[1,128], index: 9, kind: input, shape index: {}]   ;;  %s8185_s10 = inlined_call_operand.vmem [shape: f32[512,128], index: 10, kind: output, shape index: {0}]   ;;  %s8186_s11 = inlined_call_operand.vmem [shape: f32[512,128], index: 11, kind: output, shape index: {1}]  }
   0x1 LB: > { %s4469_s18 = sadd.s32 4294967295, %s5542_s17   ;;  %p4473_p0 = scmp.ge.s32.totalorder %s5542_s17, 1  ;;  %s5542_s17 = sphi %s5605_s17, %s22_s17  }
   0x2   : > { %p364_p1 = scmp.lt.s32.totalorder %s5542_s17, 3 }
   0x4   : > { %p365_p2 = pnand %p4473_p0, %p364_p1 }
   0x6   : > { %368 = sbr.rel (%p365_p2) target bundleno = 1513 (0x5e9), region = 60 }
   0xb   : > { %v5112_v0 = vld [vmem:[%s8178_s3 + $0x78] sm:$0xff]   ;;  %v5544_v2 = vmov 0   ;;  %s4474_s23 = sshll.u32 %s4469_s18, 5  ;;  %v5114_v3 = vld [vmem:[%s8178_s3 + $0x70] sm:$0xff]   ;;  %v5116_v5 = vld [vmem:[%s8178_s3 + $0x68] sm:$0xff]  }
   0xc   : > { %v5113_v1 = vld [vmem:[%s8178_s3 + $0x38] sm:$0xff]   ;;  %5111 = vset.pattern.permute.xlu1 %v5544_v2  ;;  %5110 = vset.pattern.permute.xlu0 %v5544_v2  ;;  %p421_p3 = scmp.lt.s32.totalorder %s4474_s23, 63  ;;  %v5115_v4 = vld [vmem:[%s8178_s3 + $0x30] sm:$0xff]   ;;  %v5117_v6 = vld [vmem:[%s8178_s3 + $0x28] sm:$0xff]  }
   0xd   : > { %4613 = vmatprep.subr.bf16.mxu0 %v5112_v0  ;;  %5085 = vmatprep.subr.bf16.mxu1 %v5112_v0  ;;  %v5118_v9 = vld [vmem:[%s8178_s3 + $0x60] sm:$0xff]   ;;  %v5120_v13 = vld [vmem:[%s8178_s3 + $0x58] sm:$0xff]   ;;  %v5122_v17 = vld [vmem:[%s8178_s3 + $0x50] sm:$0xff]  }
   0xe   : > { %4614 = vmatpush3.bf16.msra.mxu0 %v5113_v1  ;;  %5093 = vmatpush3.bf16.msra.mxu1 %v5113_v1  ;;  %s8738_s23 = smov (!%p421_p3, %s4474_s23), 63  ;;  %v5119_v12 = vld [vmem:[%s8178_s3 + $0x20] sm:$0xff]   ;;  %v5121_v16 = vld [vmem:[%s8178_s3 + $0x18] sm:$0xff]   ;;  %v5123_v20 = vld [vmem:[%s8178_s3 + $0x10] sm:$0xff]  }
   0xf   : > { %4615 = vmatprep.subr.bf16.mxu0 %v5114_v3  ;;  %5086 = vmatprep.subr.bf16.mxu1 %v5114_v3  ;;  %s5628_s30 = sshll.u32 %s8738_s23, 3  ;;  %v5124_v21 = vld [vmem:[%s8178_s3 + $0x48] sm:$0xff]   ;;  %v5126_v27 = vld [vmem:[%s8178_s3 + $0x40] sm:$0xff]  }
  0x10   : > { %s5634_s14 = scalar_lea.vmem %s8176_s1, %s5628_s30  ;;  %s5669_s15 = scalar_lea.vmem %s8175_s0, %s5628_s30  ;;  %v5125_v25 = vld [vmem:[%s8178_s3 + $0x8] sm:$0xff]   ;;  %v5127_v30 = vld [vmem:[%s8178_s3] sm:$0xff]  }
  0x11   : > { %v1038_v7 = vld [vmem:[%s5634_s14 + $0x10] sm:$0xff]  ;;  %v1036_v8 = vld [vmem:[%s5634_s14] sm:$0xff]  ;;  %v1039_v10 = vld [vmem:[%s5634_s14 + $0x18] sm:$0xff]  ;;  %s5684_s23 = scalar_lea.vmem %s8177_s2, %s5628_s30  ;;  %s6969_s13 = scalar_lea.vmem %s8185_s10, %s5628_s30 }
  0x12   : > { %4616 = vmatpush3.bf16.msra.mxu0 %v5115_v4  ;;  %5094 = vmatpush3.bf16.msra.mxu1 %v5115_v4  ;;  %v1037_v11 = vld [vmem:[%s5634_s14 + $0x8] sm:$0xff]  ;;  %v1040_v15 = vld [vmem:[%s5634_s14 + $0x20] sm:$0xff]  ;;  %v1043_v18 = vld [vmem:[%s5634_s14 + $0x38] sm:$0xff]  ;;  %s7822_s19 = scalar_lea.vmem %s8186_s11, %s5628_s30 }
  0x13   : > { %4617 = vmatprep.subr.bf16.mxu0 %v5116_v5  ;;  %5087 = vmatprep.subr.bf16.mxu1 %v5116_v5  ;;  %v1041_v14 = vld [vmem:[%s5634_s14 + $0x28] sm:$0xff]  ;;  %v1042_v19 = vld [vmem:[%s5634_s14 + $0x30] sm:$0xff]  ;;  %v1044_v23 = vld [vmem:[%s5634_s14 + $0x40] sm:$0xff] }
  0x14   : > { %1112 = vperm.xlu1 %5111, %v1038_v7   ;;  %1102 = vperm.xlu0 %5110, %v1036_v8   ;;  %v1045_v22 = vld [vmem:[%s5634_s14 + $0x48] sm:$0xff]  ;;  %v1068_v29 = vld [vmem:[%s5684_s23] sm:$0xff]  ;;  %v1047_v31 = vld [vmem:[%s5634_s14 + $0x58] sm:$0xff] }
  0x15   : > { %v5130_v24 = vld [vmem:[%s5669_s15 + $0x4] ss:$8 sps:$4 sm:$0xff]   ;;  %v1046_v32 = vld [vmem:[%s5634_s14 + $0x50] sm:$0xff]  ;;  %v5128_v33 = vld [vmem:[%s5669_s15] ss:$8 sps:$4 sm:$0xff]  }
  0x16   : > { %4618 = vmatpush3.bf16.msra.mxu0 %v5117_v6  ;;  %5095 = vmatpush3.bf16.msra.mxu1 %v5117_v6  ;;  %v5133_v26 = vld [vmem:[%s5669_s15 + $0xc4] ss:$8 sps:$4 sm:$0xff]   ;;  %v5131_v34 = vld [vmem:[%s5669_s15 + $0xc0] ss:$8 sps:$4 sm:$0xff]   ;;  %v5134_v35 = vld [vmem:[%s5669_s15 + $0x14] ss:$8 sps:$4 sm:$0xff]  }
  0x17   : > { %4619 = vmatprep.subr.bf16.mxu0 %v5118_v9  ;;  %5088 = vmatprep.subr.bf16.mxu1 %v5118_v9  ;;  %v1069_v28 = vld [vmem:[%s5684_s23 + $0x8] sm:$0xff]  ;;  %v5136_v36 = vld [vmem:[%s5669_s15 + $0xd4] ss:$8 sps:$4 sm:$0xff]   ;;  %v1048_v40 = vld [vmem:[%s5634_s14 + $0x60] sm:$0xff] }
  0x18   : > { %1117 = vperm.xlu1 %5111, %v1039_v10   ;;  %1107 = vperm.xlu0 %5110, %v1037_v11   ;;  %v1071_v37 = vld [vmem:[%s5684_s23 + $0x18] sm:$0xff]  ;;  %v1070_v38 = vld [vmem:[%s5684_s23 + $0x10] sm:$0xff]  ;;  %v1049_v39 = vld [vmem:[%s5634_s14 + $0x68] sm:$0xff] }
  0x19   : > { %811 = vmatprep.mubr.bf16.mxu0 %v5130_v24  ;;  %907 = vmatprep.mubr.bf16.mxu1 %v5133_v26  ;;  %v5138_v41 = vld [vmem:[%s5669_s15 + $0x10] ss:$8 sps:$4 sm:$0xff]   ;;  %v5140_v43 = vld [vmem:[%s5669_s15 + $0x24] ss:$8 sps:$4 sm:$0xff]   ;;  %v5144_v49 = vld [vmem:[%s5669_s15 + $0x20] ss:$8 sps:$4 sm:$0xff]  }
  0x1a   : > { %4620 = vmatpush3.bf16.msra.mxu0 %v5119_v12  ;;  %5096 = vmatpush3.bf16.msra.mxu1 %v5119_v12  ;;  %v5139_v42 = vld [vmem:[%s5669_s15 + $0xd0] ss:$8 sps:$4 sm:$0xff]   ;;  %v5142_v44 = vld [vmem:[%s5669_s15 + $0xe4] ss:$8 sps:$4 sm:$0xff]   ;;  %v5145_v50 = vld [vmem:[%s5669_s15 + $0xe0] ss:$8 sps:$4 sm:$0xff]  }
  0x1b   : > { %4621 = vmatprep.subr.bf16.mxu0 %v5120_v13  ;;  %5089 = vmatprep.subr.bf16.mxu1 %v5120_v13  ;;  %v1073_v45 = vld [vmem:[%s5684_s23 + $0x28] sm:$0xff]  ;;  %v1072_v46 = vld [vmem:[%s5684_s23 + $0x20] sm:$0xff]  ;;  %v1051_v47 = vld [vmem:[%s5634_s14 + $0x78] sm:$0xff] }
  0x1c   : > { %1127 = vperm.xlu1 %5111, %v1041_v14   ;;  %1122 = vperm.xlu0 %5110, %v1040_v15   ;;  %v1050_v48 = vld [vmem:[%s5634_s14 + $0x70] sm:$0xff]  ;;  %v1075_v53 = vld [vmem:[%s5684_s23 + $0x38] sm:$0xff]  ;;  %v1053_v55 = vld [vmem:[%s5634_s14 + $0x88] sm:$0xff] }
  0x1d   : > { %v5146_v51 = vld [vmem:[%s5669_s15 + $0x34] ss:$8 sps:$4 sm:$0xff]   ;;  %v1052_v56 = vld [vmem:[%s5634_s14 + $0x80] sm:$0xff]  ;;  %v5150_v57 = vld [vmem:[%s5669_s15 + $0x30] ss:$8 sps:$4 sm:$0xff]  }
  0x1e   : > { %4622 = vmatpush3.bf16.msra.mxu0 %v5121_v16  ;;  %5097 = vmatpush3.bf16.msra.mxu1 %v5121_v16  ;;  %v5148_v52 = vld [vmem:[%s5669_s15 + $0xf4] ss:$8 sps:$4 sm:$0xff]   ;;  %v5151_v58 = vld [vmem:[%s5669_s15 + $0xf0] ss:$8 sps:$4 sm:$0xff]   ;;  %v5152_v59 = vld [vmem:[%s5669_s15 + $0x44] ss:$8 sps:$4 sm:$0xff]  }
  0x1f   : > { %4623 = vmatprep.subr.bf16.mxu0 %v5122_v17  ;;  %5090 = vmatprep.subr.bf16.mxu1 %v5122_v17  ;;  %v1074_v54 = vld [vmem:[%s5684_s23 + $0x30] sm:$0xff]  ;;  %v1077_v60 = vld [vmem:[%s5684_s23 + $0x48] sm:$0xff]  ;;  %v1076_v61 = vld [vmem:[%s5684_s23 + $0x40] sm:$0xff] }
  0x20   : > { %1137 = vperm.xlu1 %5111, %v1043_v18   ;;  %1132 = vperm.xlu0 %5110, %v1042_v19   ;;  %v1055_v62 = vld [vmem:[%s5634_s14 + $0x98] sm:$0xff]  ;;  %v1054_v63 = vld [vmem:[%s5634_s14 + $0x90] sm:$0xff]  ;;  %v5154_v0 = vld [vmem:[%s5669_s15 + $0x40] ss:$8 sps:$4 sm:$0xff]  }
  0x21   : > { %v5155_v1 = vld [vmem:[%s5669_s15 + $0x54] ss:$8 sps:$4 sm:$0xff]   ;;  %v1057_v4 = vld [vmem:[%s5634_s14 + $0xa8] sm:$0xff]  ;;  %v1056_v5 = vld [vmem:[%s5634_s14 + $0xa0] sm:$0xff] }
  0x22   : > { %4624 = vmatpush3.bf16.msra.mxu0 %v5123_v20  ;;  %5098 = vmatpush3.bf16.msra.mxu1 %v5123_v20  ;;  %v1079_v2 = vld [vmem:[%s5684_s23 + $0x58] sm:$0xff]  ;;  %v1078_v3 = vld [vmem:[%s5684_s23 + $0x50] sm:$0xff]  ;;  %v5158_v7 = vld [vmem:[%s5669_s15 + $0x64] ss:$8 sps:$4 sm:$0xff]  }
  0x23   : > { %4625 = vmatprep.subr.bf16.mxu0 %v5124_v21  ;;  %5091 = vmatprep.subr.bf16.mxu1 %v5124_v21  ;;  %v5157_v6 = vld [vmem:[%s5669_s15 + $0x50] ss:$8 sps:$4 sm:$0xff]   ;;  %v1081_v8 = vld [vmem:[%s5684_s23 + $0x68] sm:$0xff]  ;;  %v1080_v9 = vld [vmem:[%s5684_s23 + $0x60] sm:$0xff] }
  0x24   : > { %1147 = vperm.xlu1 %5111, %v1045_v22   ;;  %1142 = vperm.xlu0 %5110, %v1044_v23   ;;  %v1059_v10 = vld [vmem:[%s5634_s14 + $0xb8] sm:$0xff]  ;;  %v1058_v11 = vld [vmem:[%s5634_s14 + $0xb0] sm:$0xff]  ;;  %v5160_v12 = vld [vmem:[%s5669_s15 + $0x60] ss:$8 sps:$4 sm:$0xff]  }
  0x25   : > { %v5161_v13 = vld [vmem:[%s5669_s15 + $0x74] ss:$8 sps:$4 sm:$0xff]   ;;  %v1061_v16 = vld [vmem:[%s5634_s14 + $0xc8] sm:$0xff]  ;;  %v1060_v17 = vld [vmem:[%s5634_s14 + $0xc0] sm:$0xff] }
  0x26   : > { %4626 = vmatpush3.bf16.msra.mxu0 %v5125_v25  ;;  %5099 = vmatpush3.bf16.msra.mxu1 %v5125_v25  ;;  %v1083_v14 = vld [vmem:[%s5684_s23 + $0x78] sm:$0xff]  ;;  %v1082_v15 = vld [vmem:[%s5684_s23 + $0x70] sm:$0xff]  ;;  %v5164_v19 = vld [vmem:[%s5669_s15 + $0x84] ss:$8 sps:$4 sm:$0xff]  }
  0x27   : > { %4627 = vmatprep.subr.bf16.mxu0 %v5126_v27  ;;  %5092 = vmatprep.subr.bf16.mxu1 %v5126_v27  ;;  %v5163_v18 = vld [vmem:[%s5669_s15 + $0x70] ss:$8 sps:$4 sm:$0xff]   ;;  %v1085_v20 = vld [vmem:[%s5684_s23 + $0x88] sm:$0xff]  ;;  %v1084_v21 = vld [vmem:[%s5684_s23 + $0x80] sm:$0xff] }
  0x28   : > { %1523 = vperm.xlu1 %5111, %v1069_v28   ;;  %1518 = vperm.xlu0 %5110, %v1068_v29   ;;  %v1063_v22 = vld [vmem:[%s5634_s14 + $0xd8] sm:$0xff]  ;;  %v1062_v23 = vld [vmem:[%s5634_s14 + $0xd0] sm:$0xff]  ;;  %v5166_v24 = vld [vmem:[%s5669_s15 + $0x80] ss:$8 sps:$4 sm:$0xff]  }
  0x29   : > { %v5167_v25 = vld [vmem:[%s5669_s15 + $0x94] ss:$8 sps:$4 sm:$0xff]   ;;  %v1065_v28 = vld [vmem:[%s5634_s14 + $0xe8] sm:$0xff]  ;;  %v1064_v29 = vld [vmem:[%s5634_s14 + $0xe0] sm:$0xff] }
  0x2a   : > { %4628 = vmatpush3.bf16.msra.mxu0 %v5127_v30  ;;  %5100 = vmatpush3.bf16.msra.mxu1 %v5127_v30  ;;  %v1087_v26 = vld [vmem:[%s5684_s23 + $0x98] sm:$0xff]  ;;  %v1086_v27 = vld [vmem:[%s5684_s23 + $0x90] sm:$0xff] }
  0x2b   : > { %v5169_v30 = vld [vmem:[%s5669_s15 + $0x90] ss:$8 sps:$4 sm:$0xff]  }
  0x2c   : > { %1157 = vperm.xlu1 %5111, %v1047_v31   ;;  %1152 = vperm.xlu0 %5110, %v1046_v32   ;;  %v5170_v31 = vld [vmem:[%s5669_s15 + $0xa4] ss:$8 sps:$4 sm:$0xff]  }
  0x2d   : > { %812 = vmatmul.mubr.bf16.vlgmr.msra.gmra.mxu0 %v5128_v33  ;;  %908 = vmatmul.mubr.bf16.vlgmr.msra.gmra.mxu1 %v5131_v34  ;;  %v1089_v32 = vld [vmem:[%s5684_s23 + $0xa8] sm:$0xff]  ;;  %v1088_v33 = vld [vmem:[%s5684_s23 + $0xa0] sm:$0xff]  ;;  %v5176_v34 = vld [vmem:[%s8181_s6 + $0x38] sm:$0xff]  }
  0x2e   : > { %819 = vmatprep.mubr.bf16.mxu0 %v5134_v35  ;;  %915 = vmatprep.mubr.bf16.mxu1 %v5136_v36  ;;  %v1067_v35 = vld [vmem:[%s5634_s14 + $0xf8] sm:$0xff]  ;;  %v1066_v36 = vld [vmem:[%s5634_s14 + $0xf0] sm:$0xff] }
  0x2f   : > { %4845 = vmatprep.subr.bf16.mxu1 %v5176_v34 }
  0x30   : > { %1533 = vperm.xlu1 %5111, %v1071_v37   ;;  %1528 = vperm.xlu0 %5110, %v1070_v38   ;;  %v5172_v37 = vld [vmem:[%s5669_s15 + $0xa0] ss:$8 sps:$4 sm:$0xff]   ;;  %v5173_v38 = vld [vmem:[%s5669_s15 + $0xb4] ss:$8 sps:$4 sm:$0xff]  }
  0x31   : > { %4846 = vmatpush3.bf16.msra.mxu1 %v5176_v34 }
  0x34   : > { %1167 = vperm.xlu1 %5111, %v1049_v39   ;;  %1162 = vperm.xlu0 %5110, %v1048_v40   ;;  %v5177_v39 = vld [vmem:[%s8181_s6 + $0x30] sm:$0xff]   ;;  %v1091_v40 = vld [vmem:[%s5684_s23 + $0xb8] sm:$0xff] }
  0x35   : > { %820 = vmatmul.mubr.bf16.gmra.mxu0 %v5138_v41  ;;  %916 = vmatmul.mubr.bf16.gmra.mxu1 %v5139_v42  ;;  %v1090_v41 = vld [vmem:[%s5684_s23 + $0xb0] sm:$0xff]  ;;  %v1093_v42 = vld [vmem:[%s5684_s23 + $0xc8] sm:$0xff] }
  0x36   : > { %827 = vmatprep.mubr.bf16.mxu0 %v5140_v43  ;;  %923 = vmatprep.mubr.bf16.mxu1 %v5142_v44  ;;  %v1092_v43 = vld [vmem:[%s5684_s23 + $0xc0] sm:$0xff]  ;;  %v5175_v44 = vld [vmem:[%s5669_s15 + $0xb0] ss:$8 sps:$4 sm:$0xff]  }
  0x37   : > { %4847 = vmatprep.subr.bf16.mxu1 %v5177_v39 }
  0x38   : > { %1543 = vperm.xlu1 %5111, %v1073_v45   ;;  %1538 = vperm.xlu0 %5110, %v1072_v46   ;;  %v5178_v45 = vld [vmem:[%s8181_s6 + $0x28] sm:$0xff]   ;;  %v1095_v46 = vld [vmem:[%s5684_s23 + $0xd8] sm:$0xff] }
  0x39   : > { %4848 = vmatpush3.bf16.msra.mxu1 %v5177_v39  ;;  %v5886_v39 = vld [vmem:[%s8179_s4] ss:$0 sm:$0xff] }
  0x3a   : > { %4849 = vmatprep.subr.bf16.mxu1 %v5178_v45 }
  0x3c   : > { %1177 = vperm.xlu1 %5111, %v1051_v47   ;;  %1172 = vperm.xlu0 %5110, %v1050_v48   ;;  %v1094_v47 = vld [vmem:[%s5684_s23 + $0xd0] sm:$0xff]  ;;  %v1097_v48 = vld [vmem:[%s5684_s23 + $0xe8] sm:$0xff] }
  0x3d   : > { %828 = vmatmul.mubr.bf16.gmra.mxu0 %v5144_v49  ;;  %924 = vmatmul.mubr.bf16.gmra.mxu1 %v5145_v50  ;;  %v1096_v49 = vld [vmem:[%s5684_s23 + $0xe0] sm:$0xff] }
  0x3e   : > { %835 = vmatprep.mubr.bf16.mxu0 %v5146_v51  ;;  %931 = vmatprep.mubr.bf16.mxu1 %v5148_v52  ;;  %v5179_v50 = vld [vmem:[%s8181_s6 + $0x20] sm:$0xff]   ;;  %v1099_v51 = vld [vmem:[%s5684_s23 + $0xf8] sm:$0xff]  ;;  %v1098_v52 = vld [vmem:[%s5684_s23 + $0xf0] sm:$0xff] }
  0x3f   : > { %4850 = vmatpush3.bf16.msra.mxu1 %v5178_v45 }
  0x40   : > { %1553 = vperm.xlu1 %5111, %v1075_v53   ;;  %1548 = vperm.xlu0 %5110, %v1074_v54  }
  0x41   : > { %4851 = vmatprep.subr.bf16.mxu1 %v5179_v50 }
  0x43   : > { %4852 = vmatpush3.bf16.msra.mxu1 %v5179_v50 }
  0x44   : > { %1187 = vperm.xlu1 %5111, %v1053_v55   ;;  %1182 = vperm.xlu0 %5110, %v1052_v56   ;;  %v5180_v55 = vld [vmem:[%s8181_s6 + $0x18] sm:$0xff]  }
  0x45   : > { %836 = vmatmul.mubr.bf16.gmra.mxu0 %v5150_v57  ;;  %932 = vmatmul.mubr.bf16.gmra.mxu1 %v5151_v58  ;;  %v5181_v58 = vld [vmem:[%s8181_s6 + $0x10] sm:$0xff]  }
  0x46   : > { %843 = vmatprep.mubr.bf16.mxu0 %v5152_v59  ;;  %4853 = vmatprep.subr.bf16.mxu1 %v5180_v55 }
  0x47   : > { %4854 = vmatpush3.bf16.msra.mxu1 %v5180_v55 }
  0x48   : > { %1563 = vperm.xlu1 %5111, %v1077_v60   ;;  %1558 = vperm.xlu0 %5110, %v1076_v61   ;;  %v5182_v61 = vld [vmem:[%s8181_s6 + $0x8] sm:$0xff]  }
  0x49   : > { %4855 = vmatprep.subr.bf16.mxu1 %v5181_v58 }
  0x4b   : > { %4856 = vmatpush3.bf16.msra.mxu1 %v5181_v58 }
  0x4c   : > { %1197 = vperm.xlu1 %5111, %v1055_v62   ;;  %1192 = vperm.xlu0 %5110, %v1054_v63  }
  0x4d   : > { %844 = vmatmul.mubr.bf16.gmra.mxu0 %v5154_v0  ;;  %4857 = vmatprep.subr.bf16.mxu1 %v5182_v61 }
  0x4e   : > { %851 = vmatprep.mubr.bf16.mxu0 %v5155_v1 }
  0x4f   : > { %4858 = vmatpush3.bf16.msra.mxu1 %v5182_v61 }
  0x50   : > { %1573 = vperm.xlu1 %5111, %v1079_v2   ;;  %1568 = vperm.xlu0 %5110, %v1078_v3  }
  0x54   : > { %1207 = vperm.xlu1 %5111, %v1057_v4   ;;  %1202 = vperm.xlu0 %5110, %v1056_v5  }
  0x55   : > { %852 = vmatmul.mubr.bf16.gmra.mxu0 %v5157_v6 }
  0x56   : > { %859 = vmatprep.mubr.bf16.mxu0 %v5158_v7 }
  0x58   : > { %1583 = vperm.xlu1 %5111, %v1081_v8   ;;  %1578 = vperm.xlu0 %5110, %v1080_v9   ;;  %v5183_v8 = vld [vmem:[%s8181_s6] sm:$0xff]  }
  0x59   : > { %4859 = vmatprep.subr.bf16.mxu1 %v5183_v8 }
  0x5a   : > { %4860 = vmatpush3.bf16.msra.mxu1 %v5183_v8 }
  0x5c   : > { %1217 = vperm.xlu1 %5111, %v1059_v10   ;;  %1212 = vperm.xlu0 %5110, %v1058_v11  }
  0x5d   : > { %860 = vmatmul.mubr.bf16.gmra.mxu0 %v5160_v12 }
  0x5e   : > { %867 = vmatprep.mubr.bf16.mxu0 %v5161_v13 }
  0x60   : > { %1593 = vperm.xlu1 %5111, %v1083_v14   ;;  %1588 = vperm.xlu0 %5110, %v1082_v15  }
  0x64   : > { %1227 = vperm.xlu1 %5111, %v1061_v16   ;;  %1222 = vperm.xlu0 %5110, %v1060_v17  }
  0x65   : > { %868 = vmatmul.mubr.bf16.gmra.mxu0 %v5163_v18 }
  0x66   : > { %875 = vmatprep.mubr.bf16.mxu0 %v5164_v19 }
  0x68   : > { %1603 = vperm.xlu1 %5111, %v1085_v20   ;;  %1598 = vperm.xlu0 %5110, %v1084_v21   ;;  %v5858_v20 = vld [vmem:[%s8180_s5 + $0x38] sm:$0xff]  }
  0x69   : > { %4893 = vmatprep.subr.bf16.mxu1 %v5858_v20 }
  0x6c   : > { %1237 = vperm.xlu1 %5111, %v1063_v22   ;;  %1232 = vperm.xlu0 %5110, %v1062_v23  }
  0x6d   : > { %876 = vmatmul.mubr.bf16.gmra.mxu0 %v5166_v24 }
  0x6e   : > { %883 = vmatprep.mubr.bf16.mxu0 %v5167_v25 }
  0x70   : > { %1613 = vperm.xlu1 %5111, %v1087_v26   ;;  %1608 = vperm.xlu0 %5110, %v1086_v27  }
  0x74   : > { %1247 = vperm.xlu1 %5111, %v1065_v28   ;;  %1242 = vperm.xlu0 %5110, %v1064_v29  }
  0x75   : > { %884 = vmatmul.mubr.bf16.gmra.mxu0 %v5169_v30 }
  0x76   : > { %891 = vmatprep.mubr.bf16.mxu0 %v5170_v31 }
  0x78   : > { %1623 = vperm.xlu1 %5111, %v1089_v32   ;;  %1618 = vperm.xlu0 %5110, %v1088_v33  }
  0x7c   : > { %1257 = vperm.xlu1 %5111, %v1067_v35   ;;  %1252 = vperm.xlu0 %5110, %v1066_v36  }
  0x7d   : > { %892 = vmatmul.mubr.bf16.gmra.mxu0 %v5172_v37 }
  0x7e   : > { %899 = vmatprep.mubr.bf16.mxu0 %v5173_v38 }
  0x80   : > { %1633 = vperm.xlu1 %5111, %v1091_v40   ;;  %1628 = vperm.xlu0 %5110, %v1090_v41  }
  0x84   : > { %1643 = vperm.xlu1 %5111, %v1093_v42   ;;  %1638 = vperm.xlu0 %5110, %v1092_v43  }
  0x85   : > { %900 = vmatmul.mubr.bf16.gmra.mxu0 %v5175_v44 }
  0x88   : > { %1653 = vperm.xlu1 %5111, %v1095_v46   ;;  %1648 = vperm.xlu0 %5110, %v1094_v47  }
  0x8c   : > { %1663 = vperm.xlu1 %5111, %v1097_v48   ;;  %1658 = vperm.xlu0 %5110, %v1096_v49  }
  0x8f   : > { %v5789_v53 = vpop.permute.xlu1 %1112  ;;  %v5791_v54 = vpop.permute.xlu0 %1102 }
  0x90   : > { %8372 = vst [vmem:[#allocation2_spill] sm:$0xff] %v5789_v53  ;;  %8373 = vst [vmem:[#allocation3_spill] sm:$0xff] %v5791_v54  ;;  %1673 = vperm.xlu1 %5111, %v1099_v51   ;;  %1668 = vperm.xlu0 %5110, %v1098_v52  }
  0x93   : > { %v5796_v56 = vpop.permute.xlu1 %1117  ;;  %v5798_v57 = vpop.permute.xlu0 %1107 }
  0x94   : > { %8374 = vst [vmem:[#allocation4_spill] sm:$0xff] %v5796_v56  ;;  %8375 = vst [vmem:[#allocation5_spill] sm:$0xff] %v5798_v57 }
  0x97   : > { %v5803_v59 = vpop.permute.xlu1 %1127  ;;  %v5805_v60 = vpop.permute.xlu0 %1122 }
  0x98   : > { %8376 = vst [vmem:[#allocation6_spill] sm:$0xff] %v5803_v59  ;;  %8377 = vst [vmem:[#allocation7_spill] sm:$0xff] %v5805_v60 }
  0x9b   : > { %v5810_v62 = vpop.permute.xlu1 %1137  ;;  %v5812_v63 = vpop.permute.xlu0 %1132 }
  0x9c   : > { %8378 = vst [vmem:[#allocation8_spill] sm:$0xff] %v5810_v62  ;;  %8379 = vst [vmem:[#allocation9_spill] sm:$0xff] %v5812_v63 }
  0x9f   : > { %v5814_v0 = vpop.permute.xlu1 %1147  ;;  %v5816_v1 = vpop.permute.xlu0 %1142 }
  0xa0   : > { %8380 = vst [vmem:[#allocation10_spill] sm:$0xff] %v5814_v0  ;;  %8381 = vst [vmem:[#allocation11_spill] sm:$0xff] %v5816_v1 }
  0xa3   : > { %v5818_v2 = vpop.permute.xlu1 %1523  ;;  %v5820_v3 = vpop.permute.xlu0 %1518 }
  0xa4   : > { %8382 = vst [vmem:[#allocation12_spill] sm:$0xff] %v5818_v2  ;;  %8383 = vst [vmem:[#allocation13_spill] sm:$0xff] %v5820_v3 }
  0xa7   : > { %v5822_v4 = vpop.permute.xlu0 %1152  ;;  %v5824_v5 = vpop.permute.xlu1 %1157 }
  0xa8   : > { %8384 = vst [vmem:[#allocation14_spill] sm:$0xff] %v5822_v4  ;;  %8385 = vst [vmem:[#allocation15_spill] sm:$0xff] %v5824_v5 }
  0xab   : > { %v5826_v6 = vpop.permute.xlu0 %1528  ;;  %v5828_v7 = vpop.permute.xlu1 %1533 }
  0xac   : > { %8386 = vst [vmem:[#allocation16_spill] sm:$0xff] %v5826_v6  ;;  %8387 = vst [vmem:[#allocation17_spill] sm:$0xff] %v5828_v7 }
  0xaf   : > { %v5833_v9 = vpop.permute.xlu0 %1162  ;;  %v5835_v10 = vpop.permute.xlu1 %1167 }
  0xb0   : > { %8388 = vst [vmem:[#allocation18_spill] sm:$0xff] %v5833_v9  ;;  %8389 = vst [vmem:[#allocation19_spill] sm:$0xff] %v5835_v10 }
  0xb3   : > { %v5837_v11 = vpop.permute.xlu0 %1538  ;;  %v5839_v12 = vpop.permute.xlu1 %1543 }
  0xb4   : > { %8390 = vst [vmem:[#allocation20_spill] sm:$0xff] %v5837_v11  ;;  %8391 = vst [vmem:[#allocation21_spill] sm:$0xff] %v5839_v12 }
  0xb7   : > { %v5841_v13 = vpop.permute.xlu0 %1172  ;;  %v5843_v14 = vpop.permute.xlu1 %1177 }
  0xb8   : > { %8392 = vst [vmem:[#allocation22_spill] sm:$0xff] %v5841_v13  ;;  %8393 = vst [vmem:[#allocation23_spill] sm:$0xff] %v5843_v14 }
  0xbb   : > { %v5845_v15 = vpop.permute.xlu0 %1548  ;;  %v5847_v16 = vpop.permute.xlu1 %1553 }
  0xbc   : > { %8394 = vst [vmem:[#allocation24_spill] sm:$0xff] %v5845_v15  ;;  %8395 = vst [vmem:[#allocation25_spill] sm:$0xff] %v5847_v16 }
  0xbf   : > { %v5849_v17 = vpop.permute.xlu0 %1182  ;;  %v5851_v18 = vpop.permute.xlu1 %1187 }
  0xc0   : > { %8396 = vst [vmem:[#allocation26_spill] sm:$0xff] %v5849_v17  ;;  %8397 = vst [vmem:[#allocation27_spill] sm:$0xff] %v5851_v18 }
  0xc3   : > { %v5853_v19 = vpop.permute.xlu0 %1558  ;;  %v5860_v21 = vpop.permute.xlu1 %1563 }
  0xc4   : > { %8398 = vst [vmem:[#allocation28_spill] sm:$0xff] %v5853_v19  ;;  %8399 = vst [vmem:[#allocation29_spill] sm:$0xff] %v5860_v21 }
  0xc7   : > { %v5863_v22 = vpop.permute.xlu0 %1192  ;;  %v5865_v23 = vpop.permute.xlu1 %1197 }
  0xc8   : > { %8400 = vst [vmem:[#allocation30_spill] sm:$0xff] %v5863_v22  ;;  %8401 = vst [vmem:[#allocation31_spill] sm:$0xff] %v5865_v23 }
  0xcb   : > { %v5867_v24 = vpop.permute.xlu0 %1568  ;;  %v5869_v25 = vpop.permute.xlu1 %1573 }
  0xcc   : > { %8402 = vst [vmem:[#allocation32_spill] sm:$0xff] %v5867_v24  ;;  %8403 = vst [vmem:[#allocation33_spill] sm:$0xff] %v5869_v25 }
  0xcf   : > { %v5871_v26 = vpop.permute.xlu0 %1202  ;;  %v5873_v27 = vpop.permute.xlu1 %1207 }
  0xd0   : > { %8404 = vst [vmem:[#allocation34_spill] sm:$0xff] %v5871_v26  ;;  %8405 = vst [vmem:[#allocation35_spill] sm:$0xff] %v5873_v27 }
  0xd3   : > { %v5875_v28 = vpop.permute.xlu0 %1578  ;;  %v5877_v29 = vpop.permute.xlu1 %1583 }
  0xd4   : > { %8406 = vst [vmem:[#allocation36_spill] sm:$0xff] %v5875_v28  ;;  %8407 = vst [vmem:[#allocation37_spill] sm:$0xff] %v5877_v29 }
  0xd7   : > { %v5879_v32 = vpop.permute.xlu0 %1212  ;;  %v5881_v35 = vpop.permute.xlu1 %1217 }
  0xd8   : > { %8408 = vst [vmem:[#allocation38_spill] sm:$0xff] %v5879_v32  ;;  %8409 = vst [vmem:[#allocation39_spill] sm:$0xff] %v5881_v35 }
  0xdb   : > { %v5888_v42 = vpop.permute.xlu0 %1588  ;;  %v5891_v47 = vpop.permute.xlu1 %1593 }
  0xdc   : > { %8410 = vst [vmem:[#allocation40_spill] sm:$0xff] %v5888_v42  ;;  %8411 = vst [vmem:[#allocation41_spill] sm:$0xff] %v5891_v47 }
  0xdf   : > { %v5894_v8 = vpop.permute.xlu0 %1222 }
  0xe0   : > { %8412 = vst [vmem:[#allocation42_spill] sm:$0xff] %v5894_v8 }
  0xed   : > { %v4629_v30 = vpop.f32.mrf.mxu0  ;;  %v4701_v31 = vpop.f32.mrf.mxu1 }
  0xef   : > { %v4630_v33 = vpop.f32.mrf.mxu0  ;;  %v4702_v34 = vpop.f32.mrf.mxu1 }
  0xf0   : > { %v4703_v36 = vadd.f32 %v4702_v34, %v4701_v31  ;;  %v4631_v48 = vadd.f32 %v4630_v33, %v4629_v30  ;;  %v5898_v30 = vpop.permute.xlu1 %1227 }
  0xf1   : > { %v4632_v37 = vpop.f32.mrf.mxu0  ;;  %v4704_v38 = vpop.f32.mrf.mxu1  ;;  %8413 = vst [vmem:[#allocation43_spill] sm:$0xff] %v5898_v30 }
  0xf2   : > { %v910_v43 = vadd.f32 %v4703_v36, %v5886_v39  ;;  %v814_v36 = vadd.f32 %v4631_v48, %v5886_v39 }
  0xf3   : > { %v4633_v40 = vpop.f32.mrf.mxu0  ;;  %v4705_v41 = vpop.f32.mrf.mxu1 }
  0xf4   : > { %v4706_v44 = vadd.f32 %v4705_v41, %v4704_v38  ;;  %v996_v55 = vmul.f32 0.01, %v910_v43  ;;  %vm964_vm1 = vcmp.gt.f32.partialorder %v910_v43, 0.0  ;;  %v4634_v28 = vadd.f32 %v4633_v40, %v4632_v37 }
  0xf5   : > { %v4635_v45 = vpop.f32.mrf.mxu0  ;;  %v4707_v46 = vpop.f32.mrf.mxu1  ;;  %vm940_vm4 = vcmp.gt.f32.partialorder %v814_v36, 0.0 }
  0xf6   : > { %v913_v49 = vadd.f32 %v4706_v44, %v5886_v39 }
  0xf7   : > { %v4636_v50 = vpop.f32.mrf.mxu0  ;;  %v4708_v51 = vpop.f32.mrf.mxu1 }
  0xf8   : > { %v4637_v52 = vadd.f32 %v4636_v50, %v4635_v45  ;;  %vm965_vm0 = vcmp.gt.f32.partialorder %v913_v49, 0.0  ;;  %v997_v31 = vmul.f32 0.01, %v913_v49  ;;  %v4709_v45 = vadd.f32 %v4708_v51, %v4707_v46  ;;  %v5915_v51 = vpop.permute.xlu0 %1598 }
  0xf9   : > { %v4638_v58 = vpop.f32.mrf.mxu0  ;;  %v4710_v61 = vpop.f32.mrf.mxu1  ;;  %v5902_v50 = vsel %vm964_vm1, %v910_v43, %v996_v55  ;;  %8418 = vst [vmem:[#allocation48_spill] sm:$0xff] %v5915_v51  ;;  %v972_v55 = vmul.f32 0.01, %v814_v36 }
  0xfa   : > { %v822_v34 = vadd.f32 %v4637_v52, %v5886_v39  ;;  %v5900_v33 = vsel %vm965_vm0, %v913_v49, %v997_v31  ;;  %8415 = vst [vmem:[#allocation45_spill] sm:$0xff] %v5902_v50  ;;  %v5921_v40 = vmul.f32 %v5894_v8, %v5902_v50 }
  0xfb   : > { %v4639_v38 = vpop.f32.mrf.mxu0  ;;  %v4711_v41 = vpop.f32.mrf.mxu1  ;;  %8414 = vst [vmem:[#allocation44_spill] sm:$0xff] %v5900_v33  ;;  %v5908_v48 = vmul.f32 %v5898_v30, %v5900_v33  ;;  %v5936_v51 = vsel %vm940_vm4, %v814_v36, %v972_v55 }
  0xfc   : > { %vm942_vm2 = vcmp.gt.f32.partialorder %v822_v34, 0.0  ;;  %v974_v44 = vmul.f32 0.01, %v822_v34  ;;  %v4640_v47 = vadd.f32 %v4639_v38, %v4638_v58  ;;  %v4712_v42 = vadd.f32 %v4711_v41, %v4710_v61  ;;  %8419 = vst [vmem:[#allocation49_spill] sm:$0xff] %v5921_v40  ;;  %v5925_v41 = vpop.permute.xlu1 %1603  ;;  %8422 = vst [vmem:[#allocation52_spill] sm:$0xff] %v5936_v51 }
  0xfd   : > { %v4641_v35 = vpop.f32.mrf.mxu0  ;;  %v4713_v29 = vpop.f32.mrf.mxu1  ;;  %8417 = vst [vmem:[#allocation47_spill] sm:$0xff] %v5908_v48  ;;  %v918_v58 = vadd.f32 %v4709_v45, %v5886_v39  ;;  %8420 = vst [vmem:[#allocation50_spill] sm:$0xff] %v5925_v41 }
  0xfe   : > { %v5904_v32 = vsel %vm942_vm2, %v822_v34, %v974_v44  ;;  %v825_v52 = vadd.f32 %v4640_v47, %v5886_v39  ;;  %v921_v37 = vadd.f32 %v4712_v42, %v5886_v39  ;;  %v1442_v34 = vrot.slane %v5908_v48, 4 }
  0xff   : > { %8416 = vst [vmem:[#allocation46_spill] sm:$0xff] %v5904_v32  ;;  %v5912_v49 = vmul.f32 %v5789_v53, %v5904_v32  ;;  %v4642_v46 = vpop.f32.mrf.mxu0  ;;  %v4714_v43 = vpop.f32.mrf.mxu1  ;;  %v817_v44 = vadd.f32 %v4634_v28, %v5886_v39  ;;  %v998_v53 = vmul.f32 0.01, %v918_v58  ;;  %v1436_v32 = vrot.slane %v5921_v40, 4 }
 0x100   : > { %vm943_vm3 = vcmp.gt.f32.partialorder %v825_v52, 0.0  ;;  %v975_v31 = vmul.f32 0.01, %v825_v52  ;;  %v4643_v45 = vadd.f32 %v4642_v46, %v4641_v35  ;;  %v999_v50 = vmul.f32 0.01, %v921_v37  ;;  %v5943_v26 = vpop.permute.xlu1 %1237 }
 0x101   : > { %v1304_v61 = vrot.slane %v5912_v49, 4  ;;  %v4644_v47 = vpop.f32.mrf.mxu0  ;;  %v4716_v38 = vpop.f32.mrf.mxu1  ;;  %vm966_vm5 = vcmp.gt.f32.partialorder %v918_v58, 0.0  ;;  %vm967_vm6 = vcmp.gt.f32.partialorder %v921_v37, 0.0  ;;  %v1443_v28 = vadd.f32 %v1442_v34, %v5908_v48  ;;  %8424 = vst [vmem:[#allocation54_spill] sm:$0xff] %v5943_v26 }
 0x102   : > { %v5929_v30 = vsel %vm943_vm3, %v825_v52, %v975_v31  ;;  %v973_v52 = vmul.f32 0.01, %v817_v44  ;;  %vm941_vm7 = vcmp.gt.f32.partialorder %v817_v44, 0.0  ;;  %v5945_v36 = vsel %vm966_vm5, %v918_v58, %v998_v53 }
 0x103   : > { %v1305_v42 = vadd.f32 %v1304_v61, %v5912_v49  ;;  %8421 = vst [vmem:[#allocation51_spill] sm:$0xff] %v5929_v30  ;;  %v4645_v8 = vpop.f32.mrf.mxu0  ;;  %v5933_v33 = vmul.f32 %v5796_v56, %v5929_v30  ;;  %v4717_v35 = vpop.f32.mrf.mxu1  ;;  %v830_v56 = vadd.f32 %v4643_v45, %v5886_v39  ;;  %v4715_v30 = vadd.f32 %v4714_v43, %v4713_v29 }
 0x104   : > { %v5939_v61 = vpop.permute.xlu0 %1232  ;;  %8425 = vst [vmem:[#allocation55_spill] sm:$0xff] %v5945_v36  ;;  %v5947_v55 = vsel %vm967_vm6, %v921_v37, %v999_v50  ;;  %v1437_v34 = vadd.f32 %v1436_v32, %v5921_v40  ;;  %v5952_v48 = vmul.f32 %v5791_v54, %v5936_v51  ;;  %v1444_v23 = vrot.slane %v1443_v28, 2 }
 0x105   : > { %v4647_v46 = vpop.f32.mrf.mxu0  ;;  %8423 = vst [vmem:[#allocation53_spill] sm:$0xff] %v5939_v61  ;;  %v1306_v31 = vrot.slane %v1305_v42, 2  ;;  %v1310_v41 = vrot.slane %v5933_v33, 4  ;;  %8426 = vst [vmem:[#allocation56_spill] sm:$0xff] %v5947_v55  ;;  %v4719_v24 = vpop.f32.mrf.mxu1  ;;  %v5955_v22 = vsel %vm941_vm7, %v817_v44, %v973_v52  ;;  %v976_v43 = vmul.f32 0.01, %v830_v56 }
 0x106   : > { %8427 = vst [vmem:[#allocation57_spill] sm:$0xff] %v5955_v22  ;;  %vm944_vm8 = vcmp.gt.f32.partialorder %v830_v56, 0.0  ;;  %v926_v53 = vadd.f32 %v4715_v30, %v5886_v39  ;;  %v5960_v50 = vmul.f32 %v5943_v26, %v5947_v55  ;;  %v5964_v32 = vmul.f32 %v5939_v61, %v5945_v36  ;;  %v5969_v30 = vpop.permute.xlu1 %1613 }
 0x107   : > { %v4648_v27 = vpop.f32.mrf.mxu0  ;;  %v1311_v25 = vadd.f32 %v1310_v41, %v5933_v33  ;;  %v1307_v29 = vadd.f32 %v1306_v31, %v1305_v42  ;;  %v1438_v41 = vrot.slane %v1437_v34, 2  ;;  %v4718_v54 = vadd.f32 %v4717_v35, %v4716_v38  ;;  %v4720_v31 = vpop.f32.mrf.mxu1  ;;  %8431 = vst [vmem:[#allocation61_spill] sm:$0xff] %v5969_v30 }
 0x108   : > { %8428 = vst [vmem:[#allocation58_spill] sm:$0xff] %v5960_v50  ;;  %8429 = vst [vmem:[#allocation59_spill] sm:$0xff] %v5964_v32  ;;  %v5966_v37 = vpop.permute.xlu0 %1608  ;;  %v1292_v44 = vrot.slane %v5952_v48, 4  ;;  %v1445_v52 = vadd.f32 %v1444_v23, %v1443_v28  ;;  %v5973_v26 = vmul.f32 %v5798_v57, %v5955_v22  ;;  %v5976_v61 = vsel %vm944_vm8, %v830_v56, %v976_v43 }
 0x109   : > { %v4650_v45 = vpop.f32.mrf.mxu0  ;;  %8430 = vst [vmem:[#allocation60_spill] sm:$0xff] %v5966_v37  ;;  %v1312_v42 = vrot.slane %v1311_v25, 2  ;;  %v1308_v55 = vrot.slane %v1307_v29, 1  ;;  %8432 = vst [vmem:[#allocation62_spill] sm:$0xff] %v5976_v61  ;;  %v4646_v36 = vadd.f32 %v4645_v8, %v4644_v47  ;;  %v1000_v40 = vmul.f32 0.01, %v926_v53  ;;  %v4722_v8 = vpop.f32.mrf.mxu1 }
 0x10a   : > { %v1454_v38 = vrot.slane %v5960_v50, 4  ;;  %v1448_v35 = vrot.slane %v5964_v32, 4  ;;  %v929_v23 = vadd.f32 %v4718_v54, %v5886_v39  ;;  %v5981_v37 = vadd.f32 %v1438_v41, %v1437_v34 }
 0x10b   : > { %v4651_v58 = vpop.f32.mrf.mxu0  ;;  %vm968_vm9 = vcmp.gt.f32.partialorder %v926_v53, 0.0  ;;  %v4649_v30 = vadd.f32 %v4648_v27, %v4647_v46  ;;  %v4721_v21 = vadd.f32 %v4720_v31, %v4719_v24  ;;  %v1313_v57 = vadd.f32 %v1312_v42, %v1311_v25  ;;  %v6002_v31 = vpop.permute.xlu1 %1247 }
 0x10c   : > { %8433 = vst [vmem:[#allocation63_spill] sm:$0xff] %v5981_v37  ;;  %v1446_v22 = vrot.slane %v1445_v52, 1  ;;  %v5985_v56 = vmul.f32 %v5805_v60, %v5976_v61  ;;  %vm969_vm10 = vcmp.gt.f32.partialorder %v929_v23, 0.0  ;;  %v5989_v43 = vpop.permute.xlu0 %1242  ;;  %v5991_v18 = vadd.f32 %v1308_v55, %v1307_v29  ;;  %8436 = vst [vmem:[#allocation66_spill] sm:$0xff] %v6002_v31 }
 0x10d   : > { %v4653_v51 = vpop.f32.mrf.mxu0  ;;  %8434 = vst [vmem:[#allocation64_spill] sm:$0xff] %v5989_v43  ;;  %v833_v54 = vadd.f32 %v4646_v36, %v5886_v39  ;;  %v1001_v34 = vmul.f32 0.01, %v929_v23  ;;  %v1293_v27 = vadd.f32 %v1292_v44, %v5952_v48  ;;  %v5996_v25 = vsel %vm968_vm9, %v926_v53, %v1000_v40 }
 0x10e   : > { %8435 = vst [vmem:[#allocation65_spill] sm:$0xff] %v5996_v25  ;;  %v1455_v46 = vadd.f32 %v1454_v38, %v5960_v50  ;;  %v1449_v41 = vadd.f32 %v1448_v35, %v5964_v32  ;;  %v838_v36 = vadd.f32 %v4649_v30, %v5886_v39  ;;  %v934_v44 = vadd.f32 %v4721_v21, %v5886_v39  ;;  %v4723_v38 = vpop.f32.mrf.mxu1 }
 0x10f   : > { %v4654_v28 = vpop.f32.mrf.mxu0  ;;  %v6005_v29 = vsel %vm969_vm10, %v929_v23, %v1001_v34  ;;  %v1314_v60 = vrot.slane %v1313_v57, 1  ;;  %v6009_v24 = vadd.f32 %v1446_v22, %v1445_v52  ;;  %v977_v23 = vmul.f32 0.01, %v833_v54 }
 0x110   : > { %8437 = vst [vmem:[#allocation67_spill] sm:$0xff] %v6005_v29  ;;  %v6014_v53 = vmul.f32 %v6002_v31, %v6005_v29  ;;  %v6020_v30 = vmul.f32 %v5989_v43, %v5996_v25  ;;  %v4652_v21 = vadd.f32 %v4651_v58, %v4650_v45  ;;  %v1456_v34 = vrot.slane %v1455_v46, 2  ;;  %v6023_v61 = vpop.permute.xlu0 %1618 }
 0x111   : > { %v5987_v47 = vpop.f32.mrf.mxu0  ;;  %8438 = vst [vmem:[#allocation68_spill] sm:$0xff] %v6009_v24  ;;  %v1450_v22 = vrot.slane %v1449_v41, 2  ;;  %vm945_vm11 = vcmp.gt.f32.partialorder %v833_v54, 0.0  ;;  %8439 = vst [vmem:[#allocation69_spill] sm:$0xff] %v6023_v61  ;;  %v978_v31 = vmul.f32 0.01, %v838_v36  ;;  %v4724_v50 = vadd.f32 %v4723_v38, %v4722_v8 }
 0x112   : > { %v1466_v52 = vrot.slane %v6014_v53, 4  ;;  %v1002_v29 = vmul.f32 0.01, %v934_v44  ;;  %v841_v32 = vadd.f32 %v4652_v21, %v5886_v39  ;;  %v1315_v55 = vadd.f32 %v1314_v60, %v1313_v57 }
 0x113   : > { %v6000_v42 = vpop.f32.mrf.mxu0  ;;  %vm946_vm12 = vcmp.gt.f32.partialorder %v838_v36, 0.0  ;;  %vm970_vm13 = vcmp.gt.f32.partialorder %v934_v44, 0.0  ;;  %v4655_v24 = vadd.f32 %v4654_v28, %v4653_v51  ;;  %v6026_v25 = vsel %vm945_vm11, %v833_v54, %v977_v23 }
 0x114   : > { %v1460_v45 = vrot.slane %v6020_v30, 4  ;;  %v979_v58 = vmul.f32 0.01, %v841_v32  ;;  %v937_v37 = vadd.f32 %v4724_v50, %v5886_v39  ;;  %v1467_v19 = vadd.f32 %v1466_v52, %v6014_v53  ;;  %v6047_v23 = vpop.permute.xlu0 %1252 }
 0x115   : > { %v4659_v35 = vpop.f32.mrf.mxu0  ;;  %vm947_vm14 = vcmp.gt.f32.partialorder %v841_v32, 0.0  ;;  %v846_v61 = vadd.f32 %v4655_v24, %v5886_v39  ;;  %v1294_v16 = vrot.slane %v1293_v27, 2  ;;  %v6032_v8 = vadd.f32 %v1456_v34, %v1455_v46  ;;  %v6045_v24 = vpop.permute.xlu1 %1623  ;;  %8442 = vst [vmem:[#allocation72_spill] sm:$0xff] %v6047_v23 }
 0x116   : > { %v6034_v57 = vadd.f32 %v1450_v22, %v1449_v41  ;;  %v6036_v60 = vsel %vm946_vm12, %v838_v36, %v978_v31  ;;  %v6038_v51 = vsel %vm970_vm13, %v934_v44, %v1002_v29  ;;  %v1487_v28 = vsub.f32 %v1315_v55, %v5933_v33  ;;  %8441 = vst [vmem:[#allocation71_spill] sm:$0xff] %v6045_v24 }
 0x117   : > { %v4660_v40 = vpop.f32.mrf.mxu0  ;;  %8440 = vst [vmem:[#allocation70_spill] sm:$0xff] %v6038_v51  ;;  %v6043_v50 = vmul.f32 %v5803_v59, %v6026_v25  ;;  %v1003_v54 = vmul.f32 0.01, %v937_v37  ;;  %vm948_vm15 = vcmp.gt.f32.partialorder %v846_v61, 0.0  ;;  %v6049_v46 = vsel %vm947_vm14, %v841_v32, %v979_v58 }
 0x118   : > { %8443 = vst [vmem:[#allocation73_spill] sm:$0xff] %v6049_v46  ;;  %vm971_vm0 = vcmp.gt.f32.partialorder %v937_v37, 0.0  ;;  %v980_v41 = vmul.f32 0.01, %v846_v61  ;;  %v1295_v31 = vadd.f32 %v1294_v16, %v1293_v27  ;;  %v1468_v29 = vrot.slane %v1467_v19, 2 }
 0x119   : > { %v4662_v43 = vpop.f32.mrf.mxu0  ;;  %v6052_v36 = vadd.f32 %v1460_v45, %v6020_v30  ;;  %v6056_v33 = vmul.f32 %v5812_v63, %v6036_v60  ;;  %v6060_v55 = vmul.f32 %v6047_v23, %v6038_v51  ;;  %v8444_v22 = vrot.slane %v5973_v26, 4 }
 0x11a   : > { %v6062_v34 = vsel %vm948_vm15, %v846_v61, %v980_v41  ;;  %v1296_v32 = vrot.slane %v1295_v31, 1  ;;  %v4658_v27 = vadd.f32 %v6000_v42, %v5987_v47  ;;  %v1322_v52 = vrot.slane %v6043_v50, 4 }
 0x11b   : > { %v4663_v21 = vpop.f32.mrf.mxu0  ;;  %v1299_v16 = vadd.f32 %v8444_v22, %v5973_v26  ;;  %v6072_v45 = vmul.f32 %v5810_v62, %v6049_v46  ;;  %v6074_v58 = vsel %vm971_vm0, %v937_v37, %v1003_v54  ;;  %v6078_v61 = vmul.f32 %v5816_v1, %v6062_v34  ;;  %v6086_v54 = vpop.permute.xlu1 %1257 }
 0x11c   : > { %8445 = vst [vmem:[#allocation74_spill] sm:$0xff] %v6074_v58  ;;  %v1297_v23 = vadd.f32 %v1296_v32, %v1295_v31  ;;  %v849_v22 = vadd.f32 %v4658_v27, %v5886_v39  ;;  %v4661_v59 = vadd.f32 %v4660_v40, %v4659_v35  ;;  %v6081_v51 = vadd.f32 %v1468_v29, %v1467_v19 }
 0x11d   : > { %v4665_v38 = vpop.f32.mrf.mxu0  ;;  %v1300_v63 = vrot.slane %v1299_v16, 2  ;;  %v1328_v42 = vrot.slane %v6056_v33, 4  ;;  %8446 = vst [vmem:[#allocation75_spill] sm:$0xff] %v6086_v54  ;;  %v6092_v19 = vmul.f32 %v6086_v54, %v6074_v58  ;;  %v1679_v35 = vmul.f32 %v5828_v7, %v1487_v28 }
 0x11e   : > { %v1484_v1 = vsub.f32 %v1297_v23, %v5952_v48  ;;  %vm949_vm1 = vcmp.gt.f32.partialorder %v849_v22, 0.0  ;;  %v981_v31 = vmul.f32 0.01, %v849_v22  ;;  %v854_v40 = vadd.f32 %v4661_v59, %v5886_v39 }
 0x11f   : > { %v4666_v44 = vpop.f32.mrf.mxu0  ;;  %v1301_v46 = vadd.f32 %v1300_v63, %v1299_v16  ;;  %v4664_v63 = vadd.f32 %v4663_v21, %v4662_v43  ;;  %v8447_v16 = vsub.f32 %v5991_v18, %v5912_v49 }
 0x120   : > { %v6097_v62 = vsel %vm949_vm1, %v849_v22, %v981_v31  ;;  %vm950_vm2 = vcmp.gt.f32.partialorder %v854_v40, 0.0  ;;  %v982_v23 = vmul.f32 0.01, %v854_v40  ;;  %v1676_v54 = vmul.f32 %v5820_v3, %v1484_v1 }
 0x121   : > { %v4668_v41 = vpop.f32.mrf.mxu0  ;;  %v1302_v47 = vrot.slane %v1301_v46, 1  ;;  %v6101_v48 = vmul.f32 %v5814_v0, %v6097_v62  ;;  %v1678_v59 = vmul.f32 %v5826_v6, %v8447_v16  ;;  %v857_v27 = vadd.f32 %v4664_v63, %v5886_v39 }
 0x122   : > { %v4667_v22 = vadd.f32 %v4666_v44, %v4665_v38  ;;  %v6110_v21 = vsel %vm950_vm2, %v854_v40, %v982_v23  ;;  %v8448_v0 = vrot.slane %v5985_v56, 4  ;;  %v1323_v44 = vadd.f32 %v1322_v52, %v6043_v50 }
 0x123   : > { %v4669_v37 = vpop.f32.mrf.mxu0  ;;  %v1303_v28 = vadd.f32 %v1302_v47, %v1301_v46  ;;  %v1741_v31 = vpack.c.bf16 %v1679_v35, %v1678_v59  ;;  %v6118_v49 = vmul.f32 %v5822_v4, %v6110_v21  ;;  %vm951_vm3 = vcmp.gt.f32.partialorder %v857_v27, 0.0 }
 0x124   : > { %v1317_v7 = vadd.f32 %v8448_v0, %v5985_v56  ;;  %v983_v1 = vmul.f32 0.01, %v857_v27  ;;  %v862_v38 = vadd.f32 %v4667_v22, %v5886_v39  ;;  %v4670_v47 = vadd.f32 %v4669_v37, %v4668_v41 }
 0x125   : > { %v4671_v29 = vpop.f32.mrf.mxu0  ;;  %v1485_v18 = vsub.f32 %v1303_v28, %v5973_v26  ;;  %v1324_v43 = vrot.slane %v1323_v44, 2 }
 0x126   : > { %v1318_v46 = vrot.slane %v1317_v7, 2  ;;  %v6124_v63 = vsel %vm951_vm3, %v857_v27, %v983_v1  ;;  %vm952_vm4 = vcmp.gt.f32.partialorder %v862_v38, 0.0  ;;  %v984_v16 = vmul.f32 0.01, %v862_v38  ;;  %v5185_v1 = vld [vmem:[%s8180_s5 + $0x30] sm:$0xff]  }
 0x127   : > { %v4672_v32 = vpop.f32.mrf.mxu0  ;;  %v1677_v35 = vmul.f32 %v5818_v2, %v1485_v18  ;;  %v6128_v23 = vmul.f32 %v5824_v5, %v6124_v63  ;;  %v865_v52 = vadd.f32 %v4670_v47, %v5886_v39 }
 0x128   : > { %v4673_v26 = vadd.f32 %v4672_v32, %v4671_v29  ;;  %v1319_v59 = vadd.f32 %v1318_v46, %v1317_v7  ;;  %v6133_v18 = vsel %vm952_vm4, %v862_v38, %v984_v16  ;;  %v1329_v32 = vadd.f32 %v1328_v42, %v6056_v33 }
 0x129   : > { %v4674_v58 = vpop.f32.mrf.mxu0  ;;  %v1740_v22 = vpack.c.bf16 %v1677_v35, %v1676_v54  ;;  %8449 = vst [vmem:[#allocation76_spill] sm:$0xff] %v6133_v18  ;;  %v6141_v7 = vmul.f32 %v5833_v9, %v6133_v18  ;;  %v1325_v54 = vadd.f32 %v1324_v43, %v1323_v44  ;;  %vm953_vm5 = vcmp.gt.f32.partialorder %v865_v52, 0.0 }
 0x12a   : > { %v870_v41 = vadd.f32 %v4673_v26, %v5886_v39  ;;  %v1320_v27 = vrot.slane %v1319_v59, 1  ;;  %v985_v46 = vmul.f32 0.01, %v865_v52  ;;  %v1330_v35 = vrot.slane %v1329_v32, 2 }
 0x12b   : > { %v4675_v40 = vpop.f32.mrf.mxu0  ;;  %4861 = vmatprep.mubr.bf16.mxu1 %v1740_v22  ;;  %v1326_v16 = vrot.slane %v1325_v54, 1  ;;  %v8451_v22 = vrot.slane %v6072_v45, 4 }
 0x12c   : > { %4862 = vmatmul.mubr.bf16.vlgmr.msra.gmra.mxu1 %v1741_v31  ;;  %v1321_v47 = vadd.f32 %v1320_v27, %v1319_v59  ;;  %vm954_vm6 = vcmp.gt.f32.partialorder %v870_v41, 0.0  ;;  %v986_v38 = vmul.f32 0.01, %v870_v41  ;;  %v6144_v37 = vsel %vm953_vm5, %v865_v52, %v985_v46  ;;  %v5186_v52 = vld [vmem:[%s8180_s5 + $0x28] sm:$0xff]  }
 0x12d   : > { %v4677_v28 = vpop.f32.mrf.mxu0  ;;  %8450 = vst [vmem:[#allocation77_spill] sm:$0xff] %v6144_v37  ;;  %v1335_v0 = vadd.f32 %v8451_v22, %v6072_v45  ;;  %4894 = vmatpush3.bf16.msra.mxu1 %v5858_v20  ;;  %v6153_v31 = vmul.f32 %v5835_v10, %v6144_v37  ;;  %v1331_v59 = vadd.f32 %v1330_v35, %v1329_v32 }
 0x12e   : > { %v1488_v43 = vsub.f32 %v1321_v47, %v5985_v56  ;;  %v6155_v44 = vsel %vm954_vm6, %v870_v41, %v986_v38  ;;  %4895 = vmatprep.subr.bf16.mxu1 %v5185_v1  ;;  %v1327_v46 = vadd.f32 %v1326_v16, %v1325_v54  ;;  %v4676_v56 = vadd.f32 %v4675_v40, %v4674_v58 }
 0x12f   : > { %v4678_v29 = vpop.f32.mrf.mxu0  ;;  %8452 = vst [vmem:[#allocation78_spill] sm:$0xff] %v6155_v44  ;;  %v6162_v22 = vmul.f32 %v5841_v13, %v6155_v44  ;;  %v1336_v20 = vrot.slane %v1335_v0, 2  ;;  %v1332_v41 = vrot.slane %v1331_v59, 1  ;;  %v8453_v58 = vrot.slane %v6078_v61, 4 }
 0x130   : > { %v1680_v47 = vmul.f32 %v5837_v11, %v1488_v43  ;;  %v4679_v38 = vadd.f32 %v4678_v29, %v4677_v28  ;;  %v1489_v35 = vsub.f32 %v1327_v46, %v6043_v50  ;;  %v873_v54 = vadd.f32 %v4676_v56, %v5886_v39  ;;  %v5187_v50 = vld [vmem:[%s8180_s5 + $0x20] sm:$0xff]   ;;  %v8479_v11 = vld [vmem:[#allocation36_spill] sm:$0xff] }
 0x131   : > { %v4680_v26 = vpop.f32.mrf.mxu0  ;;  %v1337_v9 = vadd.f32 %v1336_v20, %v1335_v0  ;;  %4896 = vmatpush3.bf16.msra.mxu1 %v5185_v1  ;;  %v1333_v16 = vadd.f32 %v1332_v41, %v1331_v59  ;;  %v1341_v40 = vadd.f32 %v8453_v58, %v6078_v61  ;;  %v8454_v43 = vrot.slane %v6101_v48, 4 }
 0x132   : > { %v878_v13 = vadd.f32 %v4679_v38, %v5886_v39  ;;  %4897 = vmatprep.subr.bf16.mxu1 %v5186_v52  ;;  %v1681_v0 = vmul.f32 %v5839_v12, %v1489_v35  ;;  %vm955_vm7 = vcmp.gt.f32.partialorder %v873_v54, 0.0  ;;  %v987_v59 = vmul.f32 0.01, %v873_v54 }
 0x133   : > { %v4681_v27 = vpop.f32.mrf.mxu0  ;;  %v1347_v28 = vadd.f32 %v8454_v43, %v6101_v48  ;;  %v1338_v1 = vrot.slane %v1337_v9, 1  ;;  %v1490_v46 = vsub.f32 %v1333_v16, %v6056_v33  ;;  %v1342_v56 = vrot.slane %v1341_v40, 2 }
 0x134   : > { %vm956_vm8 = vcmp.gt.f32.partialorder %v878_v13, 0.0  ;;  %v988_v20 = vmul.f32 0.01, %v878_v13  ;;  %v1742_v38 = vpack.c.bf16 %v1681_v0, %v1680_v47  ;;  %v6181_v43 = vsel %vm955_vm7, %v873_v54, %v987_v59  ;;  %v5188_v47 = vld [vmem:[%s8180_s5 + $0x18] sm:$0xff]  }
 0x135   : > { %v4683_v32 = vpop.f32.mrf.mxu0  ;;  %v1339_v58 = vadd.f32 %v1338_v1, %v1337_v9  ;;  %8455 = vst [vmem:[#allocation79_spill] sm:$0xff] %v6181_v43  ;;  %v1348_v10 = vrot.slane %v1347_v28, 2  ;;  %4898 = vmatpush3.bf16.msra.mxu1 %v5186_v52  ;;  %v1682_v42 = vmul.f32 %v5845_v15, %v1490_v46  ;;  %v6186_v35 = vmul.f32 %v5843_v14, %v6181_v43 }
 0x136   : > { %v6188_v5 = vsel %vm956_vm8, %v878_v13, %v988_v20  ;;  %v1343_v4 = vadd.f32 %v1342_v56, %v1341_v40  ;;  %4899 = vmatprep.subr.bf16.mxu1 %v5187_v50  ;;  %4865 = vmatprep.mubr.bf16.mxu1 %v1742_v38  ;;  %v4682_v16 = vadd.f32 %v4681_v27, %v4680_v26  ;;  %v8457_v40 = vrot.slane %v6118_v49, 4  ;;  %v8458_v20 = vld [vmem:[#allocation25_spill] sm:$0xff]  ;;  %v5189_v38 = vld [vmem:[%s8180_s5 + $0x10] sm:$0xff]  }
 0x137   : > { %v4684_v29 = vpop.f32.mrf.mxu0  ;;  %8456 = vst [vmem:[#allocation80_spill] sm:$0xff] %v6188_v5  ;;  %v1491_v9 = vsub.f32 %v1339_v58, %v6072_v45  ;;  %v6196_v52 = vmul.f32 %v5849_v17, %v6188_v5  ;;  %v1349_v54 = vadd.f32 %v1348_v10, %v1347_v28  ;;  %v8459_v27 = vrot.slane %v6128_v23, 4 }
 0x138   : > { %v1344_v13 = vrot.slane %v1343_v4, 1  ;;  %v4685_v1 = vadd.f32 %v4684_v29, %v4683_v32  ;;  %v1353_v59 = vadd.f32 %v8457_v40, %v6118_v49  ;;  %v881_v58 = vadd.f32 %v4682_v16, %v5886_v39 }
 0x139   : > { %v4686_v41 = vpop.f32.mrf.mxu0  ;;  %v1683_v56 = vmul.f32 %v8458_v20, %v1491_v9  ;;  %v1350_v45 = vrot.slane %v1349_v54, 1  ;;  %4900 = vmatpush3.bf16.msra.mxu1 %v5187_v50  ;;  %v1359_v32 = vadd.f32 %v8459_v27, %v6128_v23 }
 0x13a   : > { %v1345_v17 = vadd.f32 %v1344_v13, %v1343_v4  ;;  %v886_v10 = vadd.f32 %v4685_v1, %v5886_v39  ;;  %v1354_v26 = vrot.slane %v1353_v59, 2  ;;  %4901 = vmatprep.subr.bf16.mxu1 %v5188_v47  ;;  %vm957_vm9 = vcmp.gt.f32.partialorder %v881_v58, 0.0 }
 0x13b   : > { %v4687_v33 = vpop.f32.mrf.mxu0  ;;  %v1743_v29 = vpack.c.bf16 %v1683_v56, %v1682_v42  ;;  %v1351_v40 = vadd.f32 %v1350_v45, %v1349_v54  ;;  %v989_v9 = vmul.f32 0.01, %v881_v58  ;;  %v1360_v0 = vrot.slane %v1359_v32, 2  ;;  %v8461_v54 = vld [vmem:[#allocation28_spill] sm:$0xff]  ;;  %v8462_v45 = vld [vmem:[#allocation27_spill] sm:$0xff] }
 0x13c   : > { %v1492_v50 = vsub.f32 %v1345_v17, %v6078_v61  ;;  %vm958_vm10 = vcmp.gt.f32.partialorder %v886_v10, 0.0  ;;  %v990_v4 = vmul.f32 0.01, %v886_v10  ;;  %v1355_v16 = vadd.f32 %v1354_v26, %v1353_v59  ;;  %v8463_v59 = vld [vmem:[#allocation29_spill] sm:$0xff] }
 0x13d   : > { %v4689_v46 = vpop.f32.mrf.mxu0  ;;  %4866 = vmatmul.mubr.bf16.gmra.mxu1 %v1743_v29  ;;  %v1493_v1 = vsub.f32 %v1351_v40, %v6101_v48  ;;  %v6214_v27 = vsel %vm957_vm9, %v881_v58, %v989_v9  ;;  %v4688_v42 = vadd.f32 %v4687_v33, %v4686_v41  ;;  %v8464_v29 = vld [vmem:[#allocation30_spill] sm:$0xff]  ;;  %v1361_v58 = vadd.f32 %v1360_v0, %v1359_v32 }
 0x13e   : > { %8460 = vst [vmem:[#allocation81_spill] sm:$0xff] %v6214_v27  ;;  %v1684_v56 = vmul.f32 %v8461_v54, %v1492_v50  ;;  %v6219_v14 = vmul.f32 %v8462_v45, %v6214_v27  ;;  %v6221_v20 = vsel %vm958_vm10, %v886_v10, %v990_v4  ;;  %v1356_v17 = vrot.slane %v1355_v16, 1  ;;  %4902 = vmatpush3.bf16.msra.mxu1 %v5188_v47  ;;  %v5190_v47 = vld [vmem:[%s8180_s5 + $0x8] sm:$0xff]  }
 0x13f   : > { %v4690_v28 = vpop.f32.mrf.mxu0  ;;  %v1685_v26 = vmul.f32 %v8463_v59, %v1493_v1  ;;  %v6226_v48 = vmul.f32 %v8464_v29, %v6221_v20  ;;  %v889_v41 = vadd.f32 %v4688_v42, %v5886_v39  ;;  %4903 = vmatprep.subr.bf16.mxu1 %v5189_v38  ;;  %v8465_v10 = vrot.slane %v6141_v7, 4  ;;  %v8467_v29 = vld [vmem:[#allocation32_spill] sm:$0xff] }
 0x140   : > { %v1357_v40 = vadd.f32 %v1356_v17, %v1355_v16  ;;  %v4691_v9 = vadd.f32 %v4690_v28, %v4689_v46  ;;  %v1362_v0 = vrot.slane %v1361_v58, 1 }
 0x141   : > { %v4692_v13 = vpop.f32.mrf.mxu0  ;;  %v1365_v50 = vadd.f32 %v8465_v10, %v6141_v7  ;;  %v1744_v1 = vpack.c.bf16 %v1685_v26, %v1684_v56  ;;  %vm959_vm11 = vcmp.gt.f32.partialorder %v889_v41, 0.0  ;;  %v991_v42 = vmul.f32 0.01, %v889_v41  ;;  %v5191_v26 = vld [vmem:[%s8180_s5] sm:$0xff]  }
 0x142   : > { %v1494_v32 = vsub.f32 %v1357_v40, %v6118_v49  ;;  %v894_v16 = vadd.f32 %v4691_v9, %v5886_v39  ;;  %4904 = vmatpush3.bf16.msra.mxu1 %v5189_v38  ;;  %v1363_v17 = vadd.f32 %v1362_v0, %v1361_v58  ;;  %v8466_v10 = vrot.slane %v6153_v31, 4  ;;  %v8469_v58 = vld [vmem:[#allocation31_spill] sm:$0xff] }
 0x143   : > { %v4693_v61 = vpop.f32.mrf.mxu0  ;;  %v1366_v46 = vrot.slane %v1365_v50, 2  ;;  %4869 = vmatprep.mubr.bf16.mxu1 %v1744_v1  ;;  %v6246_v40 = vsel %vm959_vm11, %v889_v41, %v991_v42  ;;  %4905 = vmatprep.subr.bf16.mxu1 %v5190_v47  ;;  %v8471_v41 = vrot.slane %v6162_v22, 4 }
 0x144   : > { %v1371_v33 = vadd.f32 %v8466_v10, %v6153_v31  ;;  %v4694_v45 = vadd.f32 %v4693_v61, %v4692_v13  ;;  %v1686_v49 = vmul.f32 %v8467_v29, %v1494_v32  ;;  %8468 = vst [vmem:[#allocation82_spill] sm:$0xff] %v6246_v40  ;;  %vm960_vm12 = vcmp.gt.f32.partialorder %v894_v16, 0.0 }
 0x145   : > { %v4695_v4 = vpop.f32.mrf.mxu0  ;;  %v992_v9 = vmul.f32 0.01, %v894_v16  ;;  %v1495_v38 = vsub.f32 %v1363_v17, %v6128_v23  ;;  %v6251_v1 = vmul.f32 %v8469_v58, %v6246_v40  ;;  %v1367_v13 = vadd.f32 %v1366_v46, %v1365_v50  ;;  %v8473_v17 = vld [vmem:[#allocation34_spill] sm:$0xff] }
 0x146   : > { %v1372_v61 = vrot.slane %v1371_v33, 2  ;;  %v897_v0 = vadd.f32 %v4694_v45, %v5886_v39  ;;  %v1377_v42 = vadd.f32 %v8471_v41, %v6162_v22  ;;  %4906 = vmatpush3.bf16.msra.mxu1 %v5190_v47 }
 0x147   : > { %v4696_v28 = vpop.f32.mrf.mxu0  ;;  %v1406_v23 = vrot.slane %v6251_v1, 4  ;;  %v1368_v50 = vrot.slane %v1367_v13, 1  ;;  %4907 = vmatprep.subr.bf16.mxu1 %v5191_v26 }
 0x148   : > { %v4697_v56 = vadd.f32 %v4696_v28, %v4695_v4  ;;  %v6253_v4 = vsel %vm960_vm12, %v894_v16, %v992_v9  ;;  %v8472_v28 = vld [vmem:[#allocation33_spill] sm:$0xff]  ;;  %v1373_v16 = vadd.f32 %v1372_v61, %v1371_v33  ;;  %vm961_vm13 = vcmp.gt.f32.partialorder %v897_v0, 0.0  ;;  %v8476_v61 = vld [vmem:[#allocation35_spill] sm:$0xff] }
 0x149   : > { %v4698_v59 = vpop.f32.mrf.mxu0  ;;  %8470 = vst [vmem:[#allocation83_spill] sm:$0xff] %v6253_v4  ;;  %v1687_v10 = vmul.f32 %v8472_v28, %v1495_v38  ;;  %v6264_v58 = vmul.f32 %v8473_v17, %v6253_v4  ;;  %v993_v45 = vmul.f32 0.01, %v897_v0  ;;  %v1369_v41 = vadd.f32 %v1368_v50, %v1367_v13 }
 0x14a   : > { %v902_v32 = vadd.f32 %v4697_v56, %v5886_v39  ;;  %v1374_v29 = vrot.slane %v1373_v16, 1  ;;  %v1378_v28 = vrot.slane %v1377_v42, 2  ;;  %v8475_v17 = vrot.slane %v6186_v35, 4  ;;  %4908 = vmatpush3.bf16.msra.mxu1 %v5191_v26 }
 0x14b   : > { %v4699_v46 = vpop.f32.mrf.mxu0  ;;  %v1745_v56 = vpack.c.bf16 %v1687_v10, %v1686_v49  ;;  %v1412_v9 = vrot.slane %v6264_v58, 4  ;;  %v6267_v38 = vsel %vm961_vm13, %v897_v0, %v993_v45  ;;  %v1496_v33 = vsub.f32 %v1369_v41, %v6141_v7  ;;  %v8478_v0 = vld [vmem:[#allocation38_spill] sm:$0xff] }
 0x14c   : > { %vm962_vm14 = vcmp.gt.f32.partialorder %v902_v32, 0.0  ;;  %v994_v47 = vmul.f32 0.01, %v902_v32  ;;  %8474 = vst [vmem:[#allocation84_spill] sm:$0xff] %v6267_v38  ;;  %v1383_v54 = vadd.f32 %v8475_v17, %v6186_v35  ;;  %v6275_v15 = vmul.f32 %v8476_v61, %v6267_v38 }
 0x14d   : > { %4870 = vmatmul.mubr.bf16.gmra.mxu1 %v1745_v56  ;;  %v4700_v13 = vadd.f32 %v4699_v46, %v4698_v59  ;;  %v1375_v10 = vadd.f32 %v1374_v29, %v1373_v16  ;;  %v1379_v45 = vadd.f32 %v1378_v28, %v1377_v42  ;;  %v1688_v17 = vmul.f32 %v8479_v11, %v1496_v33  ;;  %v8482_v33 = vld [vmem:[#allocation37_spill] sm:$0xff] }
 0x14e   : > { %v6277_v49 = vsel %vm962_vm14, %v902_v32, %v994_v47  ;;  %v1384_v12 = vrot.slane %v1383_v54, 2  ;;  %v1418_v26 = vrot.slane %v6275_v15, 4  ;;  %v8480_v56 = vrot.slane %v6196_v52, 4 }
 0x14f   : > { %8477 = vst [vmem:[#allocation85_spill] sm:$0xff] %v6277_v49  ;;  %v6281_v50 = vmul.f32 %v8478_v0, %v6277_v49  ;;  %v905_v7 = vadd.f32 %v4700_v13, %v5886_v39  ;;  %v1497_v32 = vsub.f32 %v1375_v10, %v6153_v31  ;;  %v1380_v29 = vrot.slane %v1379_v45, 1 }
 0x150   : > { %v1389_v41 = vadd.f32 %v8480_v56, %v6196_v52  ;;  %v1385_v16 = vadd.f32 %v1384_v12, %v1383_v54  ;;  %v8481_v28 = vrot.slane %v6219_v14, 4  ;;  %v8483_v56 = vrot.slane %v6226_v48, 4 }
 0x151   : > { %v1424_v59 = vrot.slane %v6281_v50, 4  ;;  %vm963_vm15 = vcmp.gt.f32.partialorder %v905_v7, 0.0  ;;  %v995_v46 = vmul.f32 0.01, %v905_v7  ;;  %v1689_v0 = vmul.f32 %v8482_v33, %v1497_v32 }
 0x152   : > { %v1390_v42 = vrot.slane %v1389_v41, 2  ;;  %v1395_v47 = vadd.f32 %v8481_v28, %v6219_v14  ;;  %v1381_v39 = vadd.f32 %v1380_v29, %v1379_v45  ;;  %v1386_v13 = vrot.slane %v1385_v16, 1  ;;  %v8485_v28 = vld [vmem:[#allocation39_spill] sm:$0xff] }
 0x153   : > { %v1401_v61 = vadd.f32 %v8483_v56, %v6226_v48  ;;  %v6298_v31 = vsel %vm963_vm15, %v905_v7, %v995_v46  ;;  %v1407_v12 = vadd.f32 %v1406_v23, %v6251_v1  ;;  %v1746_v54 = vpack.c.bf16 %v1689_v0, %v1688_v17  ;;  %v8486_v46 = vld [vmem:[#allocation40_spill] sm:$0xff] }
 0x154   : > { %8484 = vst [vmem:[#allocation86_spill] sm:$0xff] %v6298_v31  ;;  %v1391_v10 = vadd.f32 %v1390_v42, %v1389_v41  ;;  %v1396_v11 = vrot.slane %v1395_v47, 2  ;;  %v1387_v2 = vadd.f32 %v1386_v13, %v1385_v16  ;;  %v1498_v6 = vsub.f32 %v1381_v39, %v6162_v22  ;;  %v8487_v39 = vld [vmem:[#allocation41_spill] sm:$0xff] }
 0x155   : > { %v6304_v3 = vmul.f32 %v8485_v28, %v6298_v31  ;;  %v1402_v29 = vrot.slane %v1401_v61, 2  ;;  %v1408_v33 = vrot.slane %v1407_v12, 2  ;;  %4873 = vmatprep.mubr.bf16.mxu1 %v1746_v54  ;;  %v1413_v23 = vadd.f32 %v1412_v9, %v6264_v58 }
 0x156   : > { %v1392_v45 = vrot.slane %v1391_v10, 1  ;;  %v1397_v32 = vadd.f32 %v1396_v11, %v1395_v47  ;;  %v1499_v7 = vsub.f32 %v1387_v2, %v6186_v35  ;;  %v1690_v41 = vmul.f32 %v8486_v46, %v1498_v6 }
 0x157   : > { %v1430_v42 = vrot.slane %v6304_v3, 4  ;;  %v1403_v22 = vadd.f32 %v1402_v29, %v1401_v61  ;;  %v1409_v16 = vadd.f32 %v1408_v33, %v1407_v12  ;;  %v1414_v56 = vrot.slane %v1413_v23, 2  ;;  %v8489_v29 = vld [vmem:[#allocation48_spill] sm:$0xff] }
 0x158   : > { %v1393_v0 = vadd.f32 %v1392_v45, %v1391_v10  ;;  %v1398_v17 = vrot.slane %v1397_v32, 1  ;;  %v1691_v13 = vmul.f32 %v8487_v39, %v1499_v7  ;;  %v1419_v11 = vadd.f32 %v1418_v26, %v6275_v15  ;;  %v6316_v45 = vpop.permute.xlu1 %1633 }
 0x159   : > { %v1425_v47 = vadd.f32 %v1424_v59, %v6281_v50  ;;  %v1404_v35 = vrot.slane %v1403_v22, 1  ;;  %v1410_v6 = vrot.slane %v1409_v16, 1  ;;  %v1415_v46 = vadd.f32 %v1414_v56, %v1413_v23  ;;  %8488 = vst [vmem:[#allocation87_spill] sm:$0xff] %v6316_v45 }
 0x15a   : > { %v1399_v54 = vadd.f32 %v1398_v17, %v1397_v32  ;;  %v1500_v2 = vsub.f32 %v1393_v0, %v6196_v52  ;;  %v1747_v28 = vpack.c.bf16 %v1691_v13, %v1690_v41  ;;  %v1420_v31 = vrot.slane %v1419_v11, 2  ;;  %v8490_v41 = vld [vmem:[#allocation50_spill] sm:$0xff]  ;;  %v6323_v13 = vpop.permute.xlu0 %1628 }
 0x15b   : > { %v1426_v9 = vrot.slane %v1425_v47, 2  ;;  %v1478_v10 = vrot.slane %v6092_v19, 4  ;;  %v1405_v33 = vadd.f32 %v1404_v35, %v1403_v22  ;;  %v1411_v12 = vadd.f32 %v1410_v6, %v1409_v16  ;;  %8491 = vst [vmem:[#allocation88_spill] sm:$0xff] %v6323_v13 }
 0x15c   : > { %v1501_v61 = vsub.f32 %v1399_v54, %v6219_v14  ;;  %4874 = vmatmul.mubr.bf16.gmra.mxu1 %v1747_v28  ;;  %v1416_v26 = vrot.slane %v1415_v46, 1  ;;  %v1421_v59 = vadd.f32 %v1420_v31, %v1419_v11  ;;  %v1431_v52 = vadd.f32 %v1430_v42, %v6304_v3  ;;  %v8493_v42 = vld [vmem:[#allocation60_spill] sm:$0xff]  ;;  %v8494_v54 = vld [vmem:[#allocation61_spill] sm:$0xff] }
 0x15d   : > { %v1427_v32 = vadd.f32 %v1426_v9, %v1425_v47  ;;  %v1692_v7 = vmul.f32 %v8489_v29, %v1500_v2  ;;  %v1502_v0 = vsub.f32 %v1405_v33, %v6226_v48  ;;  %v1503_v17 = vsub.f32 %v1411_v12, %v6251_v1  ;;  %v8495_v9 = vld [vmem:[#allocation63_spill] sm:$0xff] }
 0x15e   : > { %v1693_v23 = vmul.f32 %v8490_v41, %v1501_v61  ;;  %v1417_v14 = vadd.f32 %v1416_v26, %v1415_v46  ;;  %v1422_v22 = vrot.slane %v1421_v59, 1  ;;  %v1432_v56 = vrot.slane %v1431_v52, 2 }
 0x15f   : > { %v1428_v16 = vrot.slane %v1427_v32, 1  ;;  %v8492_v31 = vrot.slane %v6060_v55, 4  ;;  %v1694_v47 = vmul.f32 %v8493_v42, %v1502_v0  ;;  %v1695_v2 = vmul.f32 %v8494_v54, %v1503_v17  ;;  %v8499_v0 = vld [vmem:[#allocation47_spill] sm:$0xff] }
 0x160   : > { %v1748_v11 = vpack.c.bf16 %v1693_v23, %v1692_v7  ;;  %v1423_v35 = vadd.f32 %v1422_v22, %v1421_v59  ;;  %v1504_v48 = vsub.f32 %v1417_v14, %v6264_v58  ;;  %v1433_v1 = vadd.f32 %v1432_v56, %v1431_v52  ;;  %v6338_v23 = vpop.permute.xlu1 %1643  ;;  %v8500_v59 = vld [vmem:[#allocation68_spill] sm:$0xff]  ;;  %v6346_v56 = vpop.permute.xlu0 %1638 }
 0x161   : > { %v1473_v28 = vadd.f32 %v8492_v31, %v6060_v55  ;;  %v1429_v6 = vadd.f32 %v1428_v16, %v1427_v32  ;;  %v8496_v46 = vrot.slane %v8495_v9, 1  ;;  %v8497_v33 = vrot.slane %v6052_v36, 2  ;;  %8498 = vst [vmem:[#allocation63_spill] sm:$0xff] %v6338_v23  ;;  %8501 = vst [vmem:[#allocation47_spill] sm:$0xff] %v6346_v56 }
 0x162   : > { %4877 = vmatprep.mubr.bf16.mxu1 %v1748_v11  ;;  %v1749_v26 = vpack.c.bf16 %v1695_v2, %v1694_v47  ;;  %v1479_v7 = vadd.f32 %v1478_v10, %v6092_v19  ;;  %v1509_v17 = vsub.f32 %v8500_v59, %v8499_v0  ;;  %v1458_v58 = vrot.slane %v6032_v8, 1  ;;  %v8502_v10 = vld [vmem:[#allocation69_spill] sm:$0xff] }
 0x163   : > { %v1441_v61 = vadd.f32 %v8496_v46, %v8495_v9  ;;  %v1463_v12 = vadd.f32 %v8497_v33, %v6052_v36  ;;  %v1505_v32 = vsub.f32 %v1423_v35, %v6275_v15  ;;  %v1434_v52 = vrot.slane %v1433_v1, 1  ;;  %v8503_v9 = vld [vmem:[#allocation49_spill] sm:$0xff] }
 0x164   : > { %v1452_v14 = vrot.slane %v6034_v57, 1  ;;  %v1470_v22 = vrot.slane %v6081_v51, 1  ;;  %v1474_v16 = vrot.slane %v1473_v28, 2  ;;  %v1480_v36 = vrot.slane %v1479_v7, 2  ;;  %4878 = vmatmul.mubr.bf16.gmra.mxu1 %v1749_v26  ;;  %v6356_v42 = vpop.permute.xlu1 %1653 }
 0x165   : > { %v1696_v31 = vmul.f32 %v8502_v10, %v1504_v48  ;;  %v1697_v11 = vmul.f32 %v6045_v24, %v1505_v32  ;;  %v1435_v47 = vadd.f32 %v1434_v52, %v1433_v1  ;;  %v1506_v2 = vsub.f32 %v1429_v6, %v6281_v50  ;;  %8504 = vst [vmem:[#allocation68_spill] sm:$0xff] %v6356_v42 }
 0x166   : > { %v1508_v46 = vsub.f32 %v1441_v61, %v8503_v9  ;;  %v1464_v15 = vrot.slane %v1463_v12, 1  ;;  %v1459_v35 = vadd.f32 %v1458_v58, %v6032_v8  ;;  %v1481_v59 = vadd.f32 %v1480_v36, %v1479_v7  ;;  %v8505_v58 = vld [vmem:[#allocation58_spill] sm:$0xff]  ;;  %v6363_v7 = vpop.permute.xlu0 %1648 }
 0x167   : > { %v1750_v33 = vpack.c.bf16 %v1697_v11, %v1696_v31  ;;  %v1507_v0 = vsub.f32 %v1435_v47, %v6304_v3  ;;  %v1701_v54 = vmul.f32 %v6338_v23, %v1509_v17  ;;  %v1471_v26 = vadd.f32 %v1470_v22, %v6081_v51  ;;  %8506 = vst [vmem:[#allocation49_spill] sm:$0xff] %v6363_v7  ;;  %v8507_v22 = vld [vmem:[#allocation59_spill] sm:$0xff] }
 0x168   : > { %v1453_v48 = vadd.f32 %v1452_v14, %v6034_v57  ;;  %v1475_v1 = vadd.f32 %v1474_v16, %v1473_v28  ;;  %v1698_v50 = vmul.f32 %v6323_v13, %v1506_v2  ;;  %v1700_v8 = vmul.f32 %v6346_v56, %v1508_v46  ;;  %v6369_v36 = vpop.permute.xlu1 %1663 }
 0x169   : > { %4881 = vmatprep.mubr.bf16.mxu1 %v1750_v33  ;;  %v1699_v6 = vmul.f32 %v6316_v45, %v1507_v0  ;;  %v1465_v61 = vadd.f32 %v1464_v15, %v1463_v12  ;;  %v1511_v3 = vsub.f32 %v1459_v35, %v8505_v58  ;;  %v1482_v32 = vrot.slane %v1481_v59, 1  ;;  %8508 = vst [vmem:[#allocation58_spill] sm:$0xff] %v6369_v36 }
 0x16a   : > { %v1513_v51 = vsub.f32 %v1471_v26, %v6014_v53  ;;  %v1752_v52 = vpack.c.bf16 %v1701_v54, %v1700_v8  ;;  %v1510_v57 = vsub.f32 %v1453_v48, %v8507_v22  ;;  %v1476_v28 = vrot.slane %v1475_v1, 1  ;;  %v6373_v47 = vpop.permute.xlu0 %1658  ;;  %v8512_v26 = vld [vmem:[#allocation52_spill] sm:$0xff]  ;;  %v8513_v48 = vld [vmem:[#allocation57_spill] sm:$0xff] }
 0x16b   : > { %v1751_v17 = vpack.c.bf16 %v1699_v6, %v1698_v50  ;;  %v1512_v14 = vsub.f32 %v1465_v61, %v6020_v30  ;;  %v1703_v16 = vmul.f32 %v6356_v42, %v1511_v3  ;;  %v1483_v12 = vadd.f32 %v1482_v32, %v1481_v59  ;;  %8509 = vst [vmem:[#allocation59_spill] sm:$0xff] %v6373_v47  ;;  %v8515_v50 = vld [vmem:[#allocation51_spill] sm:$0xff]  ;;  %v8517_v61 = vld [vmem:[#allocation73_spill] sm:$0xff] }
 0x16c   : > { %v1705_v31 = vmul.f32 %v6369_v36, %v1513_v51  ;;  %v1702_v11 = vmul.f32 %v6363_v7, %v1510_v57  ;;  %v1477_v53 = vadd.f32 %v1476_v28, %v1475_v1  ;;  %v6378_v15 = vpop.permute.xlu1 %1673  ;;  %v1708_v1 = vpack.c.bf16 %v8513_v48, %v8512_v26  ;;  %v5192_v57 = vld [vmem:[%s8181_s6 + $0x78] sm:$0xff]  }
 0x16d   : > { %4882 = vmatmul.mubr.bf16.gmra.mxu1 %v1751_v17  ;;  %v1704_v54 = vmul.f32 %v6373_v47, %v1512_v14  ;;  %v1515_v9 = vsub.f32 %v1483_v12, %v6092_v19  ;;  %8510 = vst [vmem:[#allocation89_spill] sm:$0xff] %v6378_v15  ;;  %v8514_v19 = vld [vmem:[#allocation46_spill] sm:$0xff]  ;;  %v1711_v58 = vpack.c.bf16 %v8517_v61, %v6036_v60  ;;  %v5193_v14 = vld [vmem:[%s8181_s6 + $0x70] sm:$0xff]  }
 0x16e   : > { %4885 = vmatprep.mubr.bf16.mxu1 %v1752_v52  ;;  %v1753_v2 = vpack.c.bf16 %v1703_v16, %v1702_v11  ;;  %v1514_v30 = vsub.f32 %v1477_v53, %v6060_v55  ;;  %v6381_v33 = vpop.permute.xlu0 %1668  ;;  %v1709_v6 = vpack.c.bf16 %v8515_v50, %v8514_v19  ;;  %v8516_v55 = vld [vmem:[#allocation62_spill] sm:$0xff]  ;;  %v1712_v3 = vpack.c.bf16 %v6097_v62, %v6062_v34  ;;  %v8519_v11 = vld [vmem:[#allocation45_spill] sm:$0xff]  ;;  %v8520_v53 = vld [vmem:[#allocation44_spill] sm:$0xff] }
 0x16f   : > { %v1754_v46 = vpack.c.bf16 %v1705_v31, %v1704_v54  ;;  %v1707_v35 = vmul.f32 %v6378_v15, %v1515_v9  ;;  %8511 = vst [vmem:[#allocation90_spill] sm:$0xff] %v6381_v33  ;;  %v1710_v8 = vpack.c.bf16 %v6026_v25, %v8516_v55  ;;  %v1713_v17 = vpack.c.bf16 %v6124_v63, %v6110_v21  ;;  %v8518_v16 = vld [vmem:[#allocation86_spill] sm:$0xff]  ;;  %v5194_v31 = vld [vmem:[%s8181_s6 + $0x68] sm:$0xff]   ;;  %v8522_v9 = vld [vmem:[#allocation56_spill] sm:$0xff] }
 0x170   : > { %v1706_v0 = vmul.f32 %v6381_v33, %v1514_v30  ;;  %v1714_v32 = vpack.c.bf16 %v6144_v37, %v6133_v18  ;;  %v1715_v51 = vpack.c.bf16 %v6181_v43, %v6155_v44  ;;  %v1716_v52 = vpack.c.bf16 %v6214_v27, %v6188_v5  ;;  %4941 = vmatprep.subr.bf16.mxu0 %v5192_v57  ;;  %v5195_v30 = vld [vmem:[%s8180_s5 + $0x78] sm:$0xff]  }
 0x171   : > { %v1717_v22 = vpack.c.bf16 %v6246_v40, %v6221_v20  ;;  %v1718_v28 = vpack.c.bf16 %v6267_v38, %v6253_v4  ;;  %4942 = vmatpush3.bf16.msra.mxu0 %v5192_v57  ;;  %v1719_v12 = vpack.c.bf16 %v8518_v16, %v6277_v49  ;;  %v1720_v54 = vpack.c.bf16 %v8520_v53, %v8519_v11  ;;  %v5205_v57 = vld [vmem:[%s8181_s6 + $0x48] sm:$0xff]  }
 0x172   : > { %v1755_v59 = vpack.c.bf16 %v1707_v35, %v1706_v0  ;;  %4943 = vmatprep.subr.bf16.mxu0 %v5193_v14  ;;  %v8523_v35 = vld [vmem:[#allocation65_spill] sm:$0xff]  ;;  %v8524_v0 = vld [vmem:[#allocation67_spill] sm:$0xff]  ;;  %4989 = vmatprep.subr.bf16.mxu1 %v5195_v30 }
 0x175   : > { %4886 = vmatmul.mubr.bf16.gmra.mxu1 %v1753_v2  ;;  %4944 = vmatpush3.bf16.msra.mxu0 %v5193_v14  ;;  %v8521_v2 = vld [vmem:[#allocation55_spill] sm:$0xff] }
 0x176   : > { %4889 = vmatprep.mubr.bf16.mxu1 %v1754_v46  ;;  %4945 = vmatprep.subr.bf16.mxu0 %v5194_v31  ;;  %v1721_v46 = vpack.c.bf16 %v8522_v9, %v8521_v2  ;;  %v5204_v14 = vld [vmem:[%s8180_s5 + $0x48] sm:$0xff]  }
 0x179   : > { %4946 = vmatpush3.bf16.msra.mxu0 %v5194_v31  ;;  %v5207_v31 = vld [vmem:[%s8181_s6 + $0x40] sm:$0xff]  }
 0x17d   : > { %4890 = vmatmul.mubr.bf16.gmra.mxu1 %v1755_v59  ;;  %v1722_v59 = vpack.c.bf16 %v8524_v0, %v8523_v35  ;;  %v6513_v35 = vld [vmem:[%s8182_s7] ss:$0 sm:$0xff] }
 0x17e   : > { %4909 = vmatprep.mubr.bf16.mxu1 %v1708_v1  ;;  %v5196_v1 = vld [vmem:[%s8181_s6 + $0x60] sm:$0xff]  }
 0x17f   : > { %4947 = vmatprep.subr.bf16.mxu0 %v5196_v1 }
 0x180   : > { %4948 = vmatpush3.bf16.msra.mxu0 %v5196_v1 }
 0x185   : > { %4910 = vmatmul.mubr.bf16.vlgmr.msra.gmra.mxu1 %v1709_v6  ;;  %v8525_v6 = vld [vmem:[#allocation70_spill] sm:$0xff] }
 0x186   : > { %4913 = vmatprep.mubr.bf16.mxu1 %v1710_v8  ;;  %4990 = vmatpush3.bf16.msra.mxu1 %v5195_v30  ;;  %v8526_v8 = vld [vmem:[#allocation74_spill] sm:$0xff] }
 0x18d   : > { %4914 = vmatmul.mubr.bf16.gmra.mxu1 %v1711_v58  ;;  %v1723_v58 = vpack.c.bf16 %v8526_v8, %v8525_v6 }
 0x18e   : > { %4917 = vmatprep.mubr.bf16.mxu1 %v1712_v3  ;;  %v5197_v3 = vld [vmem:[%s8180_s5 + $0x70] sm:$0xff]  }
 0x18f   : > { %4991 = vmatprep.subr.bf16.mxu1 %v5197_v3 }
 0x190   : > { %4992 = vmatpush3.bf16.msra.mxu1 %v5197_v3 }
 0x195   : > { %4918 = vmatmul.mubr.bf16.gmra.mxu1 %v1713_v17  ;;  %v5198_v17 = vld [vmem:[%s8181_s6 + $0x58] sm:$0xff]  }
 0x196   : > { %4921 = vmatprep.mubr.bf16.mxu1 %v1714_v32  ;;  %v5199_v32 = vld [vmem:[%s8180_s5 + $0x68] sm:$0xff]   ;;  %4949 = vmatprep.subr.bf16.mxu0 %v5198_v17 }
 0x197   : > { %4993 = vmatprep.subr.bf16.mxu1 %v5199_v32  ;;  %4950 = vmatpush3.bf16.msra.mxu0 %v5198_v17 }
 0x198   : > { %4994 = vmatpush3.bf16.msra.mxu1 %v5199_v32 }
 0x19d   : > { %4922 = vmatmul.mubr.bf16.gmra.mxu1 %v1715_v51  ;;  %v5200_v51 = vld [vmem:[%s8180_s5 + $0x60] sm:$0xff]  }
 0x19e   : > { %4925 = vmatprep.mubr.bf16.mxu1 %v1716_v52  ;;  %v5201_v52 = vld [vmem:[%s8181_s6 + $0x50] sm:$0xff]   ;;  %4995 = vmatprep.subr.bf16.mxu1 %v5200_v51 }
 0x19f   : > { %4951 = vmatprep.subr.bf16.mxu0 %v5201_v52  ;;  %4996 = vmatpush3.bf16.msra.mxu1 %v5200_v51 }
 0x1a0   : > { %4952 = vmatpush3.bf16.msra.mxu0 %v5201_v52 }
 0x1a1   : > { %4953 = vmatprep.subr.bf16.mxu0 %v5205_v57 }
 0x1a4   : > { %4954 = vmatpush3.bf16.msra.mxu0 %v5205_v57 }
 0x1a5   : > { %4926 = vmatmul.mubr.bf16.gmra.mxu1 %v1717_v22  ;;  %v5202_v22 = vld [vmem:[%s8180_s5 + $0x58] sm:$0xff]   ;;  %4955 = vmatprep.subr.bf16.mxu0 %v5207_v31 }
 0x1a6   : > { %4929 = vmatprep.mubr.bf16.mxu1 %v1718_v28  ;;  %4997 = vmatprep.subr.bf16.mxu1 %v5202_v22  ;;  %v5203_v28 = vld [vmem:[%s8180_s5 + $0x50] sm:$0xff]  }
 0x1a7   : > { %4998 = vmatpush3.bf16.msra.mxu1 %v5202_v22 }
 0x1a8   : > { %4999 = vmatprep.subr.bf16.mxu1 %v5203_v28  ;;  %4956 = vmatpush3.bf16.msra.mxu0 %v5207_v31 }
 0x1ab   : > { %5000 = vmatpush3.bf16.msra.mxu1 %v5203_v28 }
 0x1ac   : > { %5001 = vmatprep.subr.bf16.mxu1 %v5204_v14 }
 0x1ad   : > { %4930 = vmatmul.mubr.bf16.gmra.mxu1 %v1719_v12  ;;  %v5206_v12 = vld [vmem:[%s8180_s5 + $0x40] sm:$0xff]  }
 0x1ae   : > { %4933 = vmatprep.mubr.bf16.mxu1 %v1720_v54 }
 0x1af   : > { %5002 = vmatpush3.bf16.msra.mxu1 %v5204_v14 }
 0x1b0   : > { %5003 = vmatprep.subr.bf16.mxu1 %v5206_v12 }
 0x1b3   : > { %5004 = vmatpush3.bf16.msra.mxu1 %v5206_v12 }
 0x1b5   : > { %4934 = vmatmul.mubr.bf16.gmra.mxu1 %v1721_v46 }
 0x1b6   : > { %4937 = vmatprep.mubr.bf16.mxu1 %v1722_v59 }
 0x1bd   : > { %4938 = vmatmul.mubr.bf16.gmra.mxu1 %v1723_v58 }
 0x1ec   : > { %v4863_v54 = vpop.f32.mrf.mxu1 }
 0x1ee   : > { %v1854_v46 = vpop.f32.mrf.mxu1 }
 0x1f0   : > { %v4864_v30 = vpop.f32.mrf.mxu1 }
 0x1f2   : > { %v1857_v59 = vpop.f32.mrf.mxu1 }
 0x1fd   : > { %v4867_v1 = vpop.f32.mrf.mxu1 }
 0x1ff   : > { %v1870_v58 = vpop.f32.mrf.mxu1 }
 0x201   : > { %v4868_v3 = vpop.f32.mrf.mxu1 }
 0x203   : > { %v1873_v17 = vpop.f32.mrf.mxu1 }
 0x20d   : > { %v4871_v32 = vpop.f32.mrf.mxu1 }
 0x20f   : > { %v6464_v51 = vpop.f32.mrf.mxu1 }
 0x211   : > { %v6466_v52 = vpop.f32.mrf.mxu1 }
 0x213   : > { %v6468_v22 = vpop.f32.mrf.mxu1 }
 0x21c   : > { %v6470_v57 = vpop.f32.mrf.mxu1 }
 0x21e   : > { %v6472_v28 = vpop.f32.mrf.mxu1 }
 0x220   : > { %v6474_v14 = vpop.f32.mrf.mxu1 }
 0x222   : > { %v6476_v12 = vpop.f32.mrf.mxu1 }
 0x224   : > { %v6478_v31 = vpop.f32.mrf.mxu1 }
 0x226   : > { %v6480_v15 = vpop.f32.mrf.mxu1 }
 0x228   : > { %v6482_v33 = vpop.f32.mrf.mxu1 }
 0x22a   : > { %v6484_v36 = vpop.f32.mrf.mxu1 }
 0x22d   : > { %v6486_v47 = vpop.f32.mrf.mxu1 }
 0x22f   : > { %v6488_v42 = vpop.f32.mrf.mxu1 }
 0x231   : > { %v6490_v7 = vpop.f32.mrf.mxu1 }
 0x233   : > { %v6492_v23 = vpop.f32.mrf.mxu1 }
 0x235   : > { %v6494_v56 = vpop.f32.mrf.mxu1 }
 0x237   : > { %v6496_v45 = vpop.f32.mrf.mxu1 }
 0x238   : > { %8527 = vst [vmem:[#allocation52_spill] sm:$0xff] %v6496_v45  ;;  %v6523_v45 = vld [vmem:[%s8183_s8 + $0x38] sm:$0xff]  }
 0x239   : > { %v6498_v13 = vpop.f32.mrf.mxu1  ;;  %5037 = vmatprep.subr.bf16.mxu0 %v6523_v45 }
 0x23a   : > { %8528 = vst [vmem:[#allocation57_spill] sm:$0xff] %v6498_v13 }
 0x23b   : > { %v6500_v24 = vpop.f32.mrf.mxu1 }
 0x23c   : > { %8529 = vst [vmem:[#allocation46_spill] sm:$0xff] %v6500_v24 }
 0x23d   : > { %v6502_v10 = vpop.f32.mrf.mxu1 }
 0x23e   : > { %8530 = vst [vmem:[#allocation51_spill] sm:$0xff] %v6502_v10 }
 0x23f   : > { %v6504_v41 = vpop.f32.mrf.mxu1 }
 0x240   : > { %8531 = vst [vmem:[#allocation62_spill] sm:$0xff] %v6504_v41 }
 0x241   : > { %v6506_v29 = vpop.f32.mrf.mxu1 }
 0x242   : > { %8532 = vst [vmem:[#allocation73_spill] sm:$0xff] %v6506_v29 }
 0x243   : > { %v6508_v39 = vpop.f32.mrf.mxu1 }
 0x244   : > { %8533 = vst [vmem:[#allocation91_spill] sm:$0xff] %v6508_v39 }
 0x245   : > { %v4911_v0 = vpop.f32.mrf.mxu1 }
 0x246   : > { %v2072_v8 = vadd.f32 %v4911_v0, %v4863_v54 }
 0x247   : > { %v2063_v6 = vpop.f32.mrf.mxu1 }
 0x248   : > { %v2192_v53 = vadd.f32 %v2072_v8, %v8514_v19  ;;  %v2064_v9 = vadd.f32 %v2063_v6, %v1854_v46 }
 0x249   : > { %v4912_v24 = vpop.f32.mrf.mxu1 }
 0x24a   : > { %v2231_v10 = vadd.f32 %v6513_v35, %v2192_v53  ;;  %v2190_v41 = vadd.f32 %v2064_v9, %v8512_v26  ;;  %v2075_v13 = vadd.f32 %v4912_v24, %v4864_v30 }
 0x24b   : > { %v2066_v29 = vpop.f32.mrf.mxu1 }
 0x24c   : > { %5216 = vtanh.f32 %v2231_v10  ;;  %v2229_v39 = vadd.f32 %v6513_v35, %v2190_v41  ;;  %v2193_v0 = vadd.f32 %v2075_v13, %v8515_v50  ;;  %v2067_v54 = vadd.f32 %v2066_v29, %v1857_v59 }
 0x24d   : > { %v4915_v11 = vpop.f32.mrf.mxu1 }
 0x24e   : > { %5218 = vtanh.f32 %v2229_v39  ;;  %v2232_v6 = vadd.f32 %v6513_v35, %v2193_v0  ;;  %v2191_v53 = vadd.f32 %v2067_v54, %v8513_v48  ;;  %v2088_v9 = vadd.f32 %v4915_v11, %v4867_v1 }
 0x24f   : > { %v2079_v24 = vpop.f32.mrf.mxu1 }
 0x250   : > { %5220 = vtanh.f32 %v2232_v6  ;;  %v2230_v41 = vadd.f32 %v6513_v35, %v2191_v53  ;;  %v2080_v13 = vadd.f32 %v2079_v24, %v1870_v58  ;;  %v2196_v29 = vadd.f32 %v2088_v9, %v6036_v60 }
 0x251   : > { %v4916_v10 = vpop.f32.mrf.mxu1 }
 0x252   : > { %5222 = vtanh.f32 %v2230_v41  ;;  %v2091_v8 = vadd.f32 %v4916_v10, %v4868_v3  ;;  %v2194_v46 = vadd.f32 %v2080_v13, %v8516_v55  ;;  %v2235_v11 = vadd.f32 %v6513_v35, %v2196_v29  ;;  %v8534_v13 = vld [vmem:[#allocation2_spill] sm:$0xff] }
 0x253   : > { %v2082_v39 = vpop.f32.mrf.mxu1 }
 0x254   : > { %v2197_v30 = vadd.f32 %v2091_v8, %v8517_v61  ;;  %v2083_v59 = vadd.f32 %v2082_v39, %v1873_v17  ;;  %v2233_v58 = vadd.f32 %v6513_v35, %v2194_v46 }
 0x255   : > { %v4919_v1 = vpop.f32.mrf.mxu1 }
 0x256   : > { %v2236_v0 = vadd.f32 %v6513_v35, %v2197_v30  ;;  %v2195_v54 = vadd.f32 %v2083_v59, %v6026_v25  ;;  %v2104_v6 = vadd.f32 %v4919_v1, %v4871_v32 }
 0x257   : > { %v2095_v53 = vpop.f32.mrf.mxu1 }
 0x258   : > { %5224 = vtanh.f32 %v2236_v0  ;;  %v2234_v3 = vadd.f32 %v6513_v35, %v2195_v54  ;;  %v2200_v9 = vadd.f32 %v2104_v6, %v6110_v21  ;;  %v2096_v24 = vadd.f32 %v2095_v53, %v6464_v51  ;;  %v8535_v54 = vld [vmem:[#allocation3_spill] sm:$0xff]  ;;  %v8536_v53 = vld [vmem:[#allocation4_spill] sm:$0xff] }
 0x259   : > { %v5217_v41 = vpop.eup %5216  ;;  %5226 = vtanh.f32 %v2235_v11  ;;  %v4920_v17 = vpop.f32.mrf.mxu1 }
 0x25a   : > { %v6540_v29 = vmul.f32 %v5217_v41, %v8534_v13  ;;  %5228 = vtanh.f32 %v2234_v3  ;;  %v2239_v10 = vadd.f32 %v6513_v35, %v2200_v9  ;;  %v2198_v32 = vadd.f32 %v2096_v24, %v6062_v34 }
 0x25b   : > { %v5219_v8 = vpop.eup %5218  ;;  %5230 = vtanh.f32 %v2233_v58  ;;  %v2107_v46 = vadd.f32 %v4920_v17, %v6466_v52  ;;  %v2098_v39 = vpop.f32.mrf.mxu1 }
 0x25c   : > { %v2337_v30 = vrot.slane %v6540_v29, 4  ;;  %v2237_v51 = vadd.f32 %v6513_v35, %v2198_v32  ;;  %v2099_v59 = vadd.f32 %v2098_v39, %v6468_v22  ;;  %5232 = vtanh.f32 %v2239_v10 }
 0x25d   : > { %v5221_v11 = vpop.eup %5220  ;;  %v2201_v1 = vadd.f32 %v2107_v46, %v6124_v63  ;;  %v4923_v0 = vpop.f32.mrf.mxu1  ;;  %v6550_v6 = vmul.f32 %v5219_v8, %v8535_v54 }
 0x25e   : > { %v6553_v3 = vmul.f32 %v5221_v11, %v8536_v53  ;;  %5234 = vtanh.f32 %v2237_v51  ;;  %v2199_v52 = vadd.f32 %v2099_v59, %v6097_v62  ;;  %v2120_v58 = vadd.f32 %v4923_v0, %v6470_v57  ;;  %v8537_v0 = vld [vmem:[#allocation5_spill] sm:$0xff] }
 0x25f   : > { %v5223_v9 = vpop.eup %5222  ;;  %v2240_v24 = vadd.f32 %v6513_v35, %v2201_v1  ;;  %v2111_v22 = vpop.f32.mrf.mxu1  ;;  %v2582_v17 = vpack.c.bf16 %v5221_v11, %v5217_v41  ;;  %v2325_v13 = vrot.slane %v6550_v6, 4  ;;  %v2338_v10 = vadd.f32 %v2337_v30, %v6540_v29 }
 0x260   : > { %v2343_v32 = vrot.slane %v6553_v3, 4  ;;  %v2238_v46 = vadd.f32 %v6513_v35, %v2199_v52  ;;  %v2204_v39 = vadd.f32 %v2120_v58, %v6155_v44  ;;  %v2112_v51 = vadd.f32 %v2111_v22, %v6472_v28 }
 0x261   : > { %5236 = vtanh.f32 %v2240_v24  ;;  %v4924_v59 = vpop.f32.mrf.mxu1  ;;  %v2581_v57 = vpack.c.bf16 %v5223_v9, %v5219_v8  ;;  %v6565_v54 = vmul.f32 %v5223_v9, %v8537_v0  ;;  %v2326_v41 = vadd.f32 %v2325_v13, %v6550_v6 }
 0x262   : > { %5238 = vtanh.f32 %v2238_v46  ;;  %v2243_v11 = vadd.f32 %v6513_v35, %v2204_v39  ;;  %v2202_v30 = vadd.f32 %v2112_v51, %v6133_v18  ;;  %v2123_v1 = vadd.f32 %v4924_v59, %v6474_v14 }
 0x263   : > { %5005 = vmatprep.mubr.bf16.mxu1 %v2581_v57  ;;  %v2114_v53 = vpop.f32.mrf.mxu1  ;;  %v2327_v52 = vrot.slane %v2326_v41, 2  ;;  %v2331_v28 = vrot.slane %v6565_v54, 4  ;;  %v2339_v58 = vrot.slane %v2338_v10, 2  ;;  %v2344_v8 = vadd.f32 %v2343_v32, %v6553_v3 }
 0x264   : > { %5240 = vtanh.f32 %v2243_v11  ;;  %v2241_v9 = vadd.f32 %v6513_v35, %v2202_v30  ;;  %v2205_v24 = vadd.f32 %v2123_v1, %v6181_v43  ;;  %v2115_v22 = vadd.f32 %v2114_v53, %v6476_v12  ;;  %5006 = vmatmul.mubr.bf16.vlgmr.msra.gmra.mxu1 %v2582_v17 }
 0x265   : > { %v6576_v13 = vpop.eup %5224  ;;  %v4927_v46 = vpop.f32.mrf.mxu1  ;;  %v2328_v14 = vadd.f32 %v2327_v52, %v2326_v41  ;;  %v2332_v39 = vadd.f32 %v2331_v28, %v6565_v54  ;;  %v2340_v51 = vadd.f32 %v2339_v58, %v2338_v10  ;;  %v2345_v59 = vrot.slane %v2344_v8, 2 }
 0x266   : > { %v6579_v57 = vpop.eup %5226  ;;  %5242 = vtanh.f32 %v2241_v9  ;;  %v2244_v32 = vadd.f32 %v6513_v35, %v2205_v24  ;;  %v2203_v0 = vadd.f32 %v2115_v22, %v6144_v37  ;;  %v2136_v11 = vadd.f32 %v4927_v46, %v6478_v31 }
 0x267   : > { %v5229_v30 = vpop.eup %5228  ;;  %v2127_v12 = vpop.f32.mrf.mxu1  ;;  %v2584_v17 = vpack.c.bf16 %v6576_v13, %v6579_v57  ;;  %v2329_v1 = vrot.slane %v2328_v14, 1  ;;  %v2333_v41 = vrot.slane %v2332_v39, 2  ;;  %v2341_v53 = vrot.slane %v2340_v51, 1 }
 0x268   : > { %v5231_v52 = vpop.eup %5230  ;;  %5244 = vtanh.f32 %v2244_v32  ;;  %v2242_v10 = vadd.f32 %v6513_v35, %v2203_v0  ;;  %v2208_v28 = vadd.f32 %v2136_v11, %v6221_v20  ;;  %v2128_v58 = vadd.f32 %v2127_v12, %v6480_v15 }
 0x269   : > { %v4928_v9 = vpop.f32.mrf.mxu1  ;;  %v2583_v24 = vpack.c.bf16 %v5229_v30, %v5231_v52  ;;  %v2330_v22 = vadd.f32 %v2329_v1, %v2328_v14  ;;  %v2334_v31 = vadd.f32 %v2333_v41, %v2332_v39  ;;  %v2342_v46 = vadd.f32 %v2341_v53, %v2340_v51  ;;  %v6589_v37 = vpop.eup %5232  ;;  %v8538_v53 = vld [vmem:[#allocation13_spill] sm:$0xff] }
 0x26a   : > { %5246 = vtanh.f32 %v2242_v10  ;;  %v2247_v43 = vadd.f32 %v6513_v35, %v2208_v28  ;;  %v2206_v18 = vadd.f32 %v2128_v58, %v6188_v5  ;;  %v2139_v32 = vadd.f32 %v4928_v9, %v6482_v33 }
 0x26b   : > { %v6594_v44 = vpop.eup %5234  ;;  %5009 = vmatprep.mubr.bf16.mxu1 %v2583_v24  ;;  %v2130_v0 = vpop.f32.mrf.mxu1  ;;  %v2335_v11 = vrot.slane %v2334_v31, 1  ;;  %v2517_v15 = vsub.f32 %v2330_v22, %v6550_v6  ;;  %v2346_v12 = vadd.f32 %v2345_v59, %v2344_v8  ;;  %v2519_v14 = vsub.f32 %v2342_v46, %v6540_v29  ;;  %v8540_v24 = vld [vmem:[#allocation7_spill] sm:$0xff] }
 0x26c   : > { %v2245_v39 = vadd.f32 %v6513_v35, %v2206_v18  ;;  %v2209_v51 = vadd.f32 %v2139_v32, %v6246_v40  ;;  %v2131_v1 = vadd.f32 %v2130_v0, %v6484_v36  ;;  %5010 = vmatmul.mubr.bf16.gmra.mxu1 %v2584_v17  ;;  %5248 = vtanh.f32 %v2247_v43  ;;  %v8539_v18 = vld [vmem:[#allocation16_spill] sm:$0xff] }
 0x26d   : > { %v4931_v41 = vpop.f32.mrf.mxu1  ;;  %v2336_v33 = vadd.f32 %v2335_v11, %v2334_v31  ;;  %v2549_v10 = vmul.f32 %v2517_v15, %v8538_v53  ;;  %v2347_v28 = vrot.slane %v2346_v12, 1  ;;  %v2551_v59 = vmul.f32 %v2519_v14, %v8539_v18  ;;  %v8541_v15 = vld [vmem:[#allocation12_spill] sm:$0xff]  ;;  %v8543_v53 = vld [vmem:[#allocation17_spill] sm:$0xff] }
 0x26e   : > { %v6602_v58 = vpop.eup %5236  ;;  %v2248_v6 = vadd.f32 %v6513_v35, %v2209_v51  ;;  %v2207_v8 = vadd.f32 %v2131_v1, %v6214_v27  ;;  %v2152_v29 = vadd.f32 %v4931_v41, %v6486_v47  ;;  %5250 = vtanh.f32 %v2245_v39  ;;  %v8572_v40 = vld [vmem:[#allocation28_spill] sm:$0xff] }
 0x26f   : > { %v6608_v9 = vpop.eup %5238  ;;  %v2143_v36 = vpop.f32.mrf.mxu1  ;;  %v2518_v43 = vsub.f32 %v2336_v33, %v6565_v54  ;;  %v2348_v17 = vadd.f32 %v2347_v28, %v2346_v12  ;;  %v6612_v22 = vmul.f32 %v5231_v52, %v8540_v24  ;;  %v8542_v12 = vld [vmem:[#allocation6_spill] sm:$0xff]  ;;  %v8544_v24 = vld [vmem:[#allocation9_spill] sm:$0xff] }
 0x270   : > { %5252 = vtanh.f32 %v2248_v6  ;;  %v2246_v31 = vadd.f32 %v6513_v35, %v2207_v8  ;;  %v2212_v46 = vadd.f32 %v2152_v29, %v6277_v49  ;;  %v2144_v32 = vadd.f32 %v2143_v36, %v6488_v42 }
 0x271   : > { %v6617_v47 = vpop.eup %5240  ;;  %v4932_v0 = vpop.f32.mrf.mxu1  ;;  %v2585_v11 = vpack.c.bf16 %v6608_v9, %v6594_v44  ;;  %v2550_v14 = vmul.f32 %v2518_v43, %v8541_v15  ;;  %v2520_v54 = vsub.f32 %v2348_v17, %v6553_v3  ;;  %v6624_v52 = vmul.f32 %v5229_v30, %v8542_v12 }
 0x272   : > { %5254 = vtanh.f32 %v2246_v31  ;;  %v2210_v39 = vadd.f32 %v2144_v32, %v6253_v4  ;;  %v2155_v51 = vadd.f32 %v4932_v0, %v6490_v7  ;;  %v2586_v42 = vpack.c.bf16 %v6602_v58, %v6589_v37 }
 0x273   : > { %v6630_v1 = vpop.eup %5242  ;;  %5013 = vmatprep.mubr.bf16.mxu1 %v2585_v11  ;;  %v2146_v41 = vpop.f32.mrf.mxu1  ;;  %v2614_v33 = vpack.c.bf16 %v2550_v14, %v2549_v10  ;;  %v2552_v28 = vmul.f32 %v2520_v54, %v8543_v53  ;;  %v2349_v3 = vrot.slane %v6612_v22, 4  ;;  %v2355_v30 = vrot.slane %v6624_v52, 4  ;;  %v8545_v54 = vld [vmem:[#allocation8_spill] sm:$0xff] }
 0x274   : > { %v2251_v6 = vadd.f32 %v6513_v35, %v2212_v46  ;;  %v2249_v8 = vadd.f32 %v6513_v35, %v2210_v39  ;;  %v2213_v7 = vadd.f32 %v2155_v51, %v8518_v16  ;;  %v2147_v29 = vadd.f32 %v2146_v41, %v6492_v23  ;;  %5014 = vmatmul.mubr.bf16.gmra.mxu1 %v2586_v42  ;;  %v5209_v46 = vld [vmem:[%s8183_s8 + $0x30] sm:$0xff]  }
 0x275   : > { %v6639_v18 = vpop.eup %5244  ;;  %4957 = vmatprep.mubr.bf16.mxu0 %v2614_v33  ;;  %v4935_v36 = vpop.f32.mrf.mxu1  ;;  %v2615_v10 = vpack.c.bf16 %v2552_v28, %v2551_v59  ;;  %v2350_v43 = vadd.f32 %v2349_v3, %v6612_v22  ;;  %v2356_v17 = vadd.f32 %v2355_v30, %v6624_v52  ;;  %v6645_v31 = vmul.f32 %v6579_v57, %v8544_v24  ;;  %v8546_v42 = vld [vmem:[#allocation52_spill] sm:$0xff] }
 0x276   : > { %5256 = vtanh.f32 %v2249_v8  ;;  %v2252_v23 = vadd.f32 %v6513_v35, %v2213_v7  ;;  %v2211_v32 = vadd.f32 %v2147_v29, %v6267_v38  ;;  %v2168_v0 = vadd.f32 %v4935_v36, %v6494_v56  ;;  %v8547_v7 = vld [vmem:[#allocation45_spill] sm:$0xff] }
 0x277   : > { %v6653_v59 = vpop.eup %5246  ;;  %4958 = vmatmul.mubr.bf16.vlgmr.msra.gmra.mxu0 %v2615_v10  ;;  %v2159_v11 = vpop.f32.mrf.mxu1  ;;  %v2588_v15 = vpack.c.bf16 %v6639_v18, %v6617_v47  ;;  %v2351_v57 = vrot.slane %v2350_v43, 2  ;;  %v2357_v14 = vrot.slane %v2356_v17, 2  ;;  %v6659_v12 = vmul.f32 %v6576_v13, %v8545_v54  ;;  %v5210_v13 = vld [vmem:[%s8183_s8 + $0x28] sm:$0xff]   ;;  %v8548_v29 = vld [vmem:[#allocation57_spill] sm:$0xff] }
 0x278   : > { %5258 = vtanh.f32 %v2252_v23  ;;  %v2250_v39 = vadd.f32 %v6513_v35, %v2211_v32  ;;  %v2216_v51 = vadd.f32 %v2168_v0, %v8521_v2  ;;  %v2160_v56 = vadd.f32 %v2159_v11, %v8546_v42  ;;  %5038 = vmatpush3.bf16.msra.mxu0 %v6523_v45  ;;  %v8549_v11 = vld [vmem:[#allocation56_spill] sm:$0xff] }
 0x279   : > { %v4936_v41 = vpop.f32.mrf.mxu1  ;;  %v2587_v33 = vpack.c.bf16 %v6653_v59, %v6630_v1  ;;  %v2352_v53 = vadd.f32 %v2351_v57, %v2350_v43  ;;  %v2358_v28 = vadd.f32 %v2357_v14, %v2356_v17  ;;  %v2361_v3 = vrot.slane %v6645_v31, 4  ;;  %5039 = vmatprep.subr.bf16.mxu0 %v5209_v46  ;;  %v6671_v30 = vpop.eup %5248  ;;  %v8550_v14 = vld [vmem:[#allocation46_spill] sm:$0xff] }
 0x27a   : > { %5260 = vtanh.f32 %v2250_v39  ;;  %v2255_v8 = vadd.f32 %v6513_v35, %v2216_v51  ;;  %v2214_v45 = vadd.f32 %v2160_v56, %v8547_v7  ;;  %v2171_v36 = vadd.f32 %v4936_v41, %v8548_v29  ;;  %v8552_v29 = vld [vmem:[#allocation51_spill] sm:$0xff] }
 0x27b   : > { %5017 = vmatprep.mubr.bf16.mxu1 %v2587_v33  ;;  %v2162_v10 = vpop.f32.mrf.mxu1  ;;  %v2353_v43 = vrot.slane %v2352_v53, 1  ;;  %v2359_v17 = vrot.slane %v2358_v28, 1  ;;  %v2362_v24 = vadd.f32 %v2361_v3, %v6645_v31  ;;  %v2367_v23 = vrot.slane %v6659_v12, 4  ;;  %v6678_v32 = vpop.eup %5250  ;;  %v8551_v3 = vld [vmem:[#allocation44_spill] sm:$0xff] }
 0x27c   : > { %5262 = vtanh.f32 %v2251_v6  ;;  %v2253_v0 = vadd.f32 %v6513_v35, %v2214_v45  ;;  %v2217_v57 = vadd.f32 %v2171_v36, %v8549_v11  ;;  %v2163_v54 = vadd.f32 %v2162_v10, %v8550_v14  ;;  %5018 = vmatmul.mubr.bf16.gmra.mxu1 %v2588_v15  ;;  %5040 = vmatpush3.bf16.msra.mxu0 %v5209_v46  ;;  %v8555_v14 = vld [vmem:[#allocation20_spill] sm:$0xff] }
 0x27d   : > { %v6683_v39 = vpop.eup %5252  ;;  %v2354_v51 = vadd.f32 %v2353_v43, %v2352_v53  ;;  %v2360_v42 = vadd.f32 %v2359_v17, %v2358_v28  ;;  %v4939_v56 = vpop.f32.mrf.mxu1  ;;  %v2363_v41 = vrot.slane %v2362_v24, 2  ;;  %v2368_v33 = vadd.f32 %v2367_v23, %v6659_v12  ;;  %5041 = vmatprep.subr.bf16.mxu0 %v5210_v13  ;;  %v8553_v17 = vld [vmem:[#allocation70_spill] sm:$0xff] }
 0x27e   : > { %5264 = vtanh.f32 %v2255_v8  ;;  %v2256_v6 = vadd.f32 %v6513_v35, %v2217_v57  ;;  %v2215_v45 = vadd.f32 %v2163_v54, %v8551_v3  ;;  %v2184_v36 = vadd.f32 %v4939_v56, %v8552_v29  ;;  %v8554_v23 = vld [vmem:[#allocation62_spill] sm:$0xff]  ;;  %v8556_v56 = vld [vmem:[#allocation21_spill] sm:$0xff] }
 0x27f   : > { %v6689_v11 = vpop.eup %5254  ;;  %v2521_v46 = vsub.f32 %v2354_v51, %v6612_v22  ;;  %v2522_v15 = vsub.f32 %v2360_v42, %v6624_v52  ;;  %v2364_v53 = vadd.f32 %v2363_v41, %v2362_v24  ;;  %v2369_v28 = vrot.slane %v2368_v33, 2  ;;  %v2175_v10 = vpop.f32.mrf.mxu1  ;;  %v8557_v24 = vld [vmem:[#allocation65_spill] sm:$0xff] }
 0x280   : > { %5266 = vtanh.f32 %v2253_v0  ;;  %v2254_v43 = vadd.f32 %v6513_v35, %v2215_v45  ;;  %v2220_v8 = vadd.f32 %v2184_v36, %v8553_v17  ;;  %v2176_v57 = vadd.f32 %v2175_v10, %v8554_v23  ;;  %5042 = vmatpush3.bf16.msra.mxu0 %v5210_v13  ;;  %v8558_v0 = vld [vmem:[#allocation73_spill] sm:$0xff] }
 0x281   : > { %v2553_v54 = vmul.f32 %v2521_v46, %v8555_v14  ;;  %v2554_v29 = vmul.f32 %v2522_v15, %v8556_v56  ;;  %v2365_v3 = vrot.slane %v2364_v53, 1  ;;  %v2370_v7 = vadd.f32 %v2369_v28, %v2368_v33  ;;  %v4940_v22 = vpop.f32.mrf.mxu1  ;;  %v8559_v15 = vld [vmem:[#allocation74_spill] sm:$0xff]  ;;  %v8560_v28 = vld [vmem:[#allocation91_spill] sm:$0xff] }
 0x282   : > { %5268 = vtanh.f32 %v2256_v6  ;;  %v2259_v52 = vadd.f32 %v6513_v35, %v2220_v8  ;;  %v2218_v51 = vadd.f32 %v2176_v57, %v8557_v24  ;;  %v2187_v42 = vadd.f32 %v4940_v22, %v8558_v0  ;;  %v8562_v56 = vld [vmem:[#allocation11_spill] sm:$0xff] }
 0x283   : > { %v6701_v41 = vpop.eup %5256  ;;  %v2616_v45 = vpack.c.bf16 %v2554_v29, %v2553_v54  ;;  %v2366_v36 = vadd.f32 %v2365_v3, %v2364_v53  ;;  %v2371_v10 = vrot.slane %v2370_v7, 1  ;;  %v2589_v13 = vpack.c.bf16 %v6689_v11, %v6678_v32  ;;  %v2178_v46 = vpop.f32.mrf.mxu1 }
 0x284   : > { %5270 = vtanh.f32 %v2254_v43  ;;  %v2257_v33 = vadd.f32 %v6513_v35, %v2218_v51  ;;  %v2221_v6 = vadd.f32 %v2187_v42, %v8559_v15  ;;  %v2179_v8 = vadd.f32 %v2178_v46, %v8560_v28  ;;  %v8561_v43 = vld [vmem:[#allocation67_spill] sm:$0xff]  ;;  %v8565_v42 = vld [vmem:[#allocation14_spill] sm:$0xff]  ;;  %v8567_v46 = vld [vmem:[#allocation25_spill] sm:$0xff] }
 0x285   : > { %v6708_v23 = vpop.eup %5258  ;;  %4961 = vmatprep.mubr.bf16.mxu0 %v2616_v45  ;;  %5272 = vtanh.f32 %v2259_v52  ;;  %v2372_v57 = vadd.f32 %v2371_v10, %v2370_v7  ;;  %v2523_v14 = vsub.f32 %v2366_v36, %v6645_v31  ;;  %5021 = vmatprep.mubr.bf16.mxu1 %v2589_v13  ;;  %v2590_v3 = vpack.c.bf16 %v6683_v39, %v6671_v30  ;;  %v8563_v7 = vld [vmem:[#allocation24_spill] sm:$0xff]  ;;  %v8564_v31 = vld [vmem:[#allocation10_spill] sm:$0xff]  ;;  %v8566_v10 = vld [vmem:[#allocation15_spill] sm:$0xff] }
 0x286   : > { %5274 = vtanh.f32 %v2257_v33  ;;  %v2260_v53 = vadd.f32 %v6513_v35, %v2221_v6  ;;  %v2219_v54 = vadd.f32 %v2179_v8, %v8561_v43  ;;  %v6717_v29 = vmul.f32 %v6594_v44, %v8562_v56 }
 0x287   : > { %v6719_v22 = vpop.eup %5260  ;;  %v2524_v52 = vsub.f32 %v2372_v57, %v6659_v12  ;;  %v2555_v51 = vmul.f32 %v2523_v14, %v8563_v7  ;;  %5022 = vmatmul.mubr.bf16.gmra.mxu1 %v2590_v3  ;;  %v6725_v0 = vmul.f32 %v6608_v9, %v8564_v31  ;;  %v6729_v45 = vmul.f32 %v6589_v37, %v8565_v42  ;;  %v8569_v7 = vld [vmem:[#allocation19_spill] sm:$0xff]  ;;  %v8570_v42 = vld [vmem:[#allocation22_spill] sm:$0xff] }
 0x288   : > { %5276 = vtanh.f32 %v2260_v53  ;;  %v2258_v36 = vadd.f32 %v6513_v35, %v2219_v54  ;;  %v2373_v44 = vrot.slane %v6717_v29, 4  ;;  %v6735_v13 = vmul.f32 %v6602_v58, %v8566_v10  ;;  %v8568_v53 = vld [vmem:[#allocation18_spill] sm:$0xff] }
 0x289   : > { %v6737_v12 = vpop.eup %5262  ;;  %v2556_v33 = vmul.f32 %v2524_v52, %v8567_v46  ;;  %v2379_v9 = vrot.slane %v6725_v0, 4  ;;  %v2385_v6 = vrot.slane %v6729_v45, 4  ;;  %v2591_v37 = vpack.c.bf16 %v6719_v22, %v6701_v41 }
 0x28a   : > { %5278 = vtanh.f32 %v2258_v36  ;;  %v2374_v35 = vadd.f32 %v2373_v44, %v6717_v29  ;;  %v2391_v28 = vrot.slane %v6735_v13, 4  ;;  %v2592_v58 = vpack.c.bf16 %v6708_v23, %v6737_v12 }
 0x28b   : > { %v6748_v8 = vpop.eup %5264  ;;  %v2617_v57 = vpack.c.bf16 %v2556_v33, %v2555_v51  ;;  %v2380_v14 = vadd.f32 %v2379_v9, %v6725_v0  ;;  %v2386_v3 = vadd.f32 %v2385_v6, %v6729_v45  ;;  %5025 = vmatprep.mubr.bf16.mxu1 %v2591_v37  ;;  %v6754_v54 = vmul.f32 %v6630_v1, %v8568_v53  ;;  %v8571_v1 = vld [vmem:[#allocation23_spill] sm:$0xff] }
 0x28c   : > { %v2375_v56 = vrot.slane %v2374_v35, 2  ;;  %v2392_v52 = vadd.f32 %v2391_v28, %v6735_v13  ;;  %v6759_v31 = vmul.f32 %v6653_v59, %v8569_v7  ;;  %v6763_v36 = vmul.f32 %v6617_v47, %v8570_v42 }
 0x28d   : > { %v6765_v51 = vpop.eup %5266  ;;  %4962 = vmatmul.mubr.bf16.gmra.mxu0 %v2617_v57  ;;  %v2381_v44 = vrot.slane %v2380_v14, 2  ;;  %v2387_v10 = vrot.slane %v2386_v3, 2  ;;  %v2397_v46 = vrot.slane %v6754_v54, 4  ;;  %v6770_v33 = vmul.f32 %v6639_v18, %v8571_v1 }
 0x28e   : > { %v2376_v9 = vadd.f32 %v2375_v56, %v2374_v35  ;;  %v2393_v6 = vrot.slane %v2392_v52, 2  ;;  %v2403_v59 = vrot.slane %v6759_v31, 4  ;;  %v2409_v37 = vrot.slane %v6763_v36, 4 }
 0x28f   : > { %v6774_v28 = vpop.eup %5268  ;;  %v2382_v47 = vadd.f32 %v2381_v44, %v2380_v14  ;;  %v2388_v53 = vadd.f32 %v2387_v10, %v2386_v3  ;;  %5026 = vmatmul.mubr.bf16.gmra.mxu1 %v2592_v58  ;;  %v2398_v57 = vadd.f32 %v2397_v46, %v6754_v54  ;;  %v2415_v7 = vrot.slane %v6770_v33, 4 }
 0x290   : > { %v2377_v42 = vrot.slane %v2376_v9, 1  ;;  %v2394_v43 = vadd.f32 %v2393_v6, %v2392_v52  ;;  %v2404_v18 = vadd.f32 %v2403_v59, %v6759_v31  ;;  %v2410_v35 = vadd.f32 %v2409_v37, %v6763_v36 }
 0x291   : > { %v6780_v56 = vpop.eup %5270  ;;  %v2383_v1 = vrot.slane %v2382_v47, 1  ;;  %v2389_v15 = vrot.slane %v2388_v53, 1  ;;  %v2399_v24 = vrot.slane %v2398_v57, 2  ;;  %v2416_v17 = vadd.f32 %v2415_v7, %v6770_v33 }
 0x292   : > { %v6783_v14 = vpop.eup %5272  ;;  %v2378_v58 = vadd.f32 %v2377_v42, %v2376_v9  ;;  %v2395_v3 = vrot.slane %v2394_v43, 1  ;;  %v2405_v44 = vrot.slane %v2404_v18, 2  ;;  %v2411_v10 = vrot.slane %v2410_v35, 2 }
 0x293   : > { %v6785_v46 = vpop.eup %5274  ;;  %v2384_v52 = vadd.f32 %v2383_v1, %v2382_v47  ;;  %v2390_v6 = vadd.f32 %v2389_v15, %v2388_v53  ;;  %v2400_v59 = vadd.f32 %v2399_v24, %v2398_v57  ;;  %v2417_v2 = vrot.slane %v2416_v17, 2  ;;  %v8574_v57 = vld [vmem:[#allocation32_spill] sm:$0xff] }
 0x294   : > { %v2525_v37 = vsub.f32 %v2378_v58, %v6717_v29  ;;  %v2396_v38 = vadd.f32 %v2395_v3, %v2394_v43  ;;  %v2406_v16 = vadd.f32 %v2405_v44, %v2404_v18  ;;  %v2412_v4 = vadd.f32 %v2411_v10, %v2410_v35  ;;  %v8573_v29 = vld [vmem:[#allocation29_spill] sm:$0xff] }
 0x295   : > { %v6788_v49 = vpop.eup %5276  ;;  %v2526_v7 = vsub.f32 %v2384_v52, %v6725_v0  ;;  %v2527_v9 = vsub.f32 %v2390_v6, %v6729_v45  ;;  %v2401_v42 = vrot.slane %v2400_v59, 1  ;;  %v2418_v27 = vadd.f32 %v2417_v2, %v2416_v17  ;;  %v8575_v58 = vld [vmem:[#allocation33_spill] sm:$0xff]  ;;  %v8576_v6 = vld [vmem:[#allocation26_spill] sm:$0xff] }
 0x296   : > { %v2557_v5 = vmul.f32 %v2525_v37, %v8572_v40  ;;  %v2528_v47 = vsub.f32 %v2396_v38, %v6735_v13  ;;  %v2407_v15 = vrot.slane %v2406_v16, 1  ;;  %v2413_v24 = vrot.slane %v2412_v4, 1  ;;  %v8579_v37 = vld [vmem:[#allocation37_spill] sm:$0xff] }
 0x297   : > { %v6794_v53 = vpop.eup %5278  ;;  %v2558_v43 = vmul.f32 %v2526_v7, %v8573_v29  ;;  %v2559_v18 = vmul.f32 %v2527_v9, %v8574_v57  ;;  %v2402_v35 = vadd.f32 %v2401_v42, %v2400_v59  ;;  %v2419_v1 = vrot.slane %v2418_v27, 1  ;;  %v8580_v7 = vld [vmem:[#allocation40_spill] sm:$0xff]  ;;  %v8581_v42 = vld [vmem:[#allocation30_spill] sm:$0xff] }
 0x298   : > { %v2560_v0 = vmul.f32 %v2528_v47, %v8575_v58  ;;  %v2408_v3 = vadd.f32 %v2407_v15, %v2406_v16  ;;  %v2414_v45 = vadd.f32 %v2413_v24, %v2412_v4  ;;  %v2593_v2 = vpack.c.bf16 %v6780_v56, %v6765_v51  ;;  %v8577_v4 = vld [vmem:[#allocation36_spill] sm:$0xff]  ;;  %v8582_v47 = vld [vmem:[#allocation41_spill] sm:$0xff]  ;;  %v8583_v24 = vld [vmem:[#allocation31_spill] sm:$0xff] }
 0x299   : > { %v2618_v40 = vpack.c.bf16 %v2558_v43, %v2557_v5  ;;  %v2529_v38 = vsub.f32 %v2402_v35, %v6754_v54  ;;  %v2420_v17 = vadd.f32 %v2419_v1, %v2418_v27  ;;  %v2594_v13 = vpack.c.bf16 %v6774_v28, %v6748_v8  ;;  %v8578_v27 = vld [vmem:[#allocation27_spill] sm:$0xff] }
 0x29a   : > { %v2619_v44 = vpack.c.bf16 %v2560_v0, %v2559_v18  ;;  %v2530_v10 = vsub.f32 %v2408_v3, %v6759_v31  ;;  %v2531_v52 = vsub.f32 %v2414_v45, %v6763_v36  ;;  %5029 = vmatprep.mubr.bf16.mxu1 %v2593_v2  ;;  %v6808_v16 = vmul.f32 %v6678_v32, %v8576_v6  ;;  %v8584_v0 = vld [vmem:[#allocation34_spill] sm:$0xff]  ;;  %v8585_v2 = vld [vmem:[#allocation35_spill] sm:$0xff] }
 0x29b   : > { %4965 = vmatprep.mubr.bf16.mxu0 %v2618_v40  ;;  %v2561_v59 = vmul.f32 %v2529_v38, %v8577_v4  ;;  %v2532_v5 = vsub.f32 %v2420_v17, %v6770_v33  ;;  %5030 = vmatmul.mubr.bf16.gmra.mxu1 %v2594_v13  ;;  %v6814_v54 = vmul.f32 %v6689_v11, %v8578_v27  ;;  %v8586_v38 = vld [vmem:[#allocation38_spill] sm:$0xff] }
 0x29c   : > { %4966 = vmatmul.mubr.bf16.gmra.mxu0 %v2619_v44  ;;  %v2562_v31 = vmul.f32 %v2530_v10, %v8579_v37  ;;  %v2563_v36 = vmul.f32 %v2531_v52, %v8580_v7  ;;  %v2421_v9 = vrot.slane %v6808_v16, 4  ;;  %v6821_v32 = vmul.f32 %v6671_v30, %v8581_v42  ;;  %v8587_v52 = vld [vmem:[#allocation39_spill] sm:$0xff] }
 0x29d   : > { %v2564_v15 = vmul.f32 %v2532_v5, %v8582_v47  ;;  %v2427_v33 = vrot.slane %v6814_v54, 4  ;;  %v6827_v29 = vmul.f32 %v6683_v39, %v8583_v24  ;;  %v2595_v11 = vpack.c.bf16 %v6794_v53, %v6785_v46 }
 0x29e   : > { %v2620_v43 = vpack.c.bf16 %v2562_v31, %v2561_v59  ;;  %v2422_v57 = vadd.f32 %v2421_v9, %v6808_v16  ;;  %v2433_v18 = vrot.slane %v6821_v32, 4  ;;  %v2596_v30 = vpack.c.bf16 %v6788_v49, %v6783_v14 }
 0x29f   : > { %v2621_v35 = vpack.c.bf16 %v2564_v15, %v2563_v36  ;;  %v2428_v1 = vadd.f32 %v2427_v33, %v6814_v54  ;;  %v2439_v58 = vrot.slane %v6827_v29, 4  ;;  %5033 = vmatprep.mubr.bf16.mxu1 %v2595_v11  ;;  %v6839_v39 = vmul.f32 %v6701_v41, %v8584_v0 }
 0x2a0   : > { %4969 = vmatprep.mubr.bf16.mxu0 %v2620_v43  ;;  %v2423_v3 = vrot.slane %v2422_v57, 2  ;;  %v2434_v45 = vadd.f32 %v2433_v18, %v6821_v32  ;;  %v6844_v40 = vmul.f32 %v6719_v22, %v8585_v2  ;;  %v6848_v17 = vmul.f32 %v6737_v12, %v8586_v38 }
 0x2a1   : > { %v2429_v13 = vrot.slane %v2428_v1, 2  ;;  %v2440_v44 = vadd.f32 %v2439_v58, %v6827_v29  ;;  %v2445_v10 = vrot.slane %v6839_v39, 4  ;;  %v6854_v41 = vmul.f32 %v6708_v23, %v8587_v52 }
 0x2a2   : > { %v2424_v6 = vadd.f32 %v2423_v3, %v2422_v57  ;;  %v2435_v4 = vrot.slane %v2434_v45, 2  ;;  %v2451_v59 = vrot.slane %v6844_v40, 4  ;;  %v2457_v22 = vrot.slane %v6848_v17, 4 }
 0x2a3   : > { %v2430_v5 = vadd.f32 %v2429_v13, %v2428_v1  ;;  %v2441_v27 = vrot.slane %v2440_v44, 2  ;;  %5034 = vmatmul.mubr.bf16.gmra.mxu1 %v2596_v30  ;;  %v2446_v12 = vadd.f32 %v2445_v10, %v6839_v39  ;;  %v2463_v37 = vrot.slane %v6854_v41, 4 }
 0x2a4   : > { %4970 = vmatmul.mubr.bf16.gmra.mxu0 %v2621_v35  ;;  %v2425_v31 = vrot.slane %v2424_v6, 1  ;;  %v2436_v7 = vadd.f32 %v2435_v4, %v2434_v45  ;;  %v2452_v36 = vadd.f32 %v2451_v59, %v6844_v40  ;;  %v2458_v23 = vadd.f32 %v2457_v22, %v6848_v17  ;;  %v5211_v59 = vld [vmem:[%s8183_s8 + $0x20] sm:$0xff]  }
 0x2a5   : > { %v2431_v9 = vrot.slane %v2430_v5, 1  ;;  %v2442_v42 = vadd.f32 %v2441_v27, %v2440_v44  ;;  %v2447_v47 = vrot.slane %v2446_v12, 2  ;;  %v2464_v15 = vadd.f32 %v2463_v37, %v6854_v41  ;;  %v8588_v44 = vld [vmem:[#allocation48_spill] sm:$0xff]  ;;  %v8589_v22 = vld [vmem:[#allocation50_spill] sm:$0xff]  ;;  %5043 = vmatprep.subr.bf16.mxu0 %v5211_v59 }
 0x2a6   : > { %v2426_v33 = vadd.f32 %v2425_v31, %v2424_v6  ;;  %v2437_v24 = vrot.slane %v2436_v7, 1  ;;  %v2453_v11 = vrot.slane %v2452_v36, 2  ;;  %v2459_v43 = vrot.slane %v2458_v23, 2  ;;  %5044 = vmatpush3.bf16.msra.mxu0 %v5211_v59  ;;  %v5212_v59 = vld [vmem:[%s8183_s8 + $0x18] sm:$0xff]  }
 0x2a7   : > { %v2432_v57 = vadd.f32 %v2431_v9, %v2430_v5  ;;  %v2443_v18 = vrot.slane %v2442_v42, 1  ;;  %v2448_v30 = vadd.f32 %v2447_v47, %v2446_v12  ;;  %v2465_v1 = vrot.slane %v2464_v15, 2  ;;  %v8592_v9 = vld [vmem:[#allocation61_spill] sm:$0xff]  ;;  %5045 = vmatprep.subr.bf16.mxu0 %v5212_v59 }
 0x2a8   : > { %v2533_v35 = vsub.f32 %v2426_v33, %v6808_v16  ;;  %v2438_v58 = vadd.f32 %v2437_v24, %v2436_v7  ;;  %v2454_v0 = vadd.f32 %v2453_v11, %v2452_v36  ;;  %v2460_v3 = vadd.f32 %v2459_v43, %v2458_v23  ;;  %v8591_v36 = vld [vmem:[#allocation42_spill] sm:$0xff]  ;;  %v8593_v24 = vld [vmem:[#allocation43_spill] sm:$0xff] }
 0x2a9   : > { %v2534_v45 = vsub.f32 %v2432_v57, %v6814_v54  ;;  %v2444_v2 = vadd.f32 %v2443_v18, %v2442_v42  ;;  %v2449_v38 = vrot.slane %v2448_v30, 1  ;;  %v2466_v13 = vadd.f32 %v2465_v1, %v2464_v15  ;;  %v8590_v54 = vld [vmem:[#allocation60_spill] sm:$0xff]  ;;  %v8594_v57 = vld [vmem:[#allocation69_spill] sm:$0xff] }
 0x2aa   : > { %v2565_v10 = vmul.f32 %v2533_v35, %v8588_v44  ;;  %v2535_v52 = vsub.f32 %v2438_v58, %v6821_v32  ;;  %v2455_v6 = vrot.slane %v2454_v0, 1  ;;  %v2461_v4 = vrot.slane %v2460_v3, 1  ;;  %v8595_v1 = vld [vmem:[#allocation53_spill] sm:$0xff]  ;;  %v8596_v35 = vld [vmem:[#allocation71_spill] sm:$0xff]  ;;  %v8597_v58 = vld [vmem:[#allocation88_spill] sm:$0xff]  ;;  %5046 = vmatpush3.bf16.msra.mxu0 %v5212_v59 }
 0x2ab   : > { %v2566_v16 = vmul.f32 %v2534_v45, %v8589_v22  ;;  %v2536_v5 = vsub.f32 %v2444_v2, %v6827_v29  ;;  %v2450_v27 = vadd.f32 %v2449_v38, %v2448_v30  ;;  %v2467_v12 = vrot.slane %v2466_v13, 1  ;;  %v8599_v2 = vld [vmem:[#allocation54_spill] sm:$0xff] }
 0x2ac   : > { %v2567_v37 = vmul.f32 %v2535_v52, %v8590_v54  ;;  %v2456_v31 = vadd.f32 %v2455_v6, %v2454_v0  ;;  %v2462_v7 = vadd.f32 %v2461_v4, %v2460_v3  ;;  %v6875_v23 = vmul.f32 %v6765_v51, %v8591_v36  ;;  %v8598_v3 = vld [vmem:[#allocation87_spill] sm:$0xff]  ;;  %v8601_v6 = vld [vmem:[#allocation66_spill] sm:$0xff]  ;;  %v8602_v54 = vld [vmem:[#allocation72_spill] sm:$0xff] }
 0x2ad   : > { %v2622_v32 = vpack.c.bf16 %v2566_v16, %v2565_v10  ;;  %v2568_v42 = vmul.f32 %v2536_v5, %v8592_v9  ;;  %v2537_v47 = vsub.f32 %v2450_v27, %v6839_v39  ;;  %v2468_v15 = vadd.f32 %v2467_v12, %v2466_v13  ;;  %v8600_v13 = vld [vmem:[#allocation64_spill] sm:$0xff]  ;;  %v8603_v36 = vld [vmem:[#allocation75_spill] sm:$0xff] }
 0x2ae   : > { %v2538_v29 = vsub.f32 %v2456_v31, %v6844_v40  ;;  %v2539_v33 = vsub.f32 %v2462_v7, %v6848_v17  ;;  %v6883_v11 = vmul.f32 %v6780_v56, %v8593_v24  ;;  %v2469_v43 = vrot.slane %v6875_v23, 4 }
 0x2af   : > { %4973 = vmatprep.mubr.bf16.mxu0 %v2622_v32  ;;  %v2623_v51 = vpack.c.bf16 %v2568_v42, %v2567_v37  ;;  %v2569_v18 = vmul.f32 %v2537_v47, %v8594_v57  ;;  %v2540_v30 = vsub.f32 %v2468_v15, %v6854_v41  ;;  %v6890_v39 = vmul.f32 %v6748_v8, %v8595_v1 }
 0x2b0   : > { %v2570_v40 = vmul.f32 %v2538_v29, %v8596_v35  ;;  %v2571_v17 = vmul.f32 %v2539_v33, %v8597_v58  ;;  %v2470_v0 = vadd.f32 %v2469_v43, %v6875_v23  ;;  %v2475_v56 = vrot.slane %v6883_v11, 4 }
 0x2b1   : > { %4974 = vmatmul.mubr.bf16.gmra.mxu0 %v2623_v51  ;;  %v2572_v45 = vmul.f32 %v2540_v30, %v8598_v3  ;;  %v6899_v38 = vmul.f32 %v6774_v28, %v8599_v2  ;;  %v2481_v41 = vrot.slane %v6890_v39, 4  ;;  %v6904_v8 = vmul.f32 %v6785_v46, %v8600_v13 }
 0x2b2   : > { %v2624_v44 = vpack.c.bf16 %v2570_v40, %v2569_v18  ;;  %v2471_v10 = vrot.slane %v2470_v0, 2  ;;  %v2476_v52 = vadd.f32 %v2475_v56, %v6883_v11  ;;  %v6909_v4 = vmul.f32 %v6794_v53, %v8601_v6 }
 0x2b3   : > { %v2625_v28 = vpack.c.bf16 %v2572_v45, %v2571_v17  ;;  %v2482_v22 = vadd.f32 %v2481_v41, %v6890_v39  ;;  %v2487_v16 = vrot.slane %v6899_v38, 4  ;;  %v2493_v46 = vrot.slane %v6904_v8, 4 }
 0x2b4   : > { %4977 = vmatprep.mubr.bf16.mxu0 %v2624_v44  ;;  %v2472_v5 = vadd.f32 %v2471_v10, %v2470_v0  ;;  %v2477_v27 = vrot.slane %v2476_v52, 2  ;;  %v2499_v12 = vrot.slane %v6909_v4, 4  ;;  %v2323_v53 = vmul.f32 %v6783_v14, %v8602_v54 }
 0x2b5   : > { %v2483_v37 = vrot.slane %v2482_v22, 2  ;;  %v2488_v31 = vadd.f32 %v2487_v16, %v6899_v38  ;;  %v2494_v7 = vadd.f32 %v2493_v46, %v6904_v8  ;;  %v2324_v32 = vmul.f32 %v6788_v49, %v8603_v36  ;;  %v8605_v16 = vld [vmem:[#allocation63_spill] sm:$0xff] }
 0x2b6   : > { %v2473_v9 = vrot.slane %v2472_v5, 1  ;;  %v2478_v42 = vadd.f32 %v2477_v27, %v2476_v52  ;;  %v2500_v47 = vadd.f32 %v2499_v12, %v6909_v4  ;;  %v2505_v15 = vrot.slane %v2323_v53, 4 }
 0x2b7   : > { %v2484_v29 = vadd.f32 %v2483_v37, %v2482_v22  ;;  %v2489_v33 = vrot.slane %v2488_v31, 2  ;;  %v2495_v24 = vrot.slane %v2494_v7, 2  ;;  %v2511_v43 = vrot.slane %v2324_v32, 4 }
 0x2b8   : > { %v2474_v14 = vadd.f32 %v2473_v9, %v2472_v5  ;;  %v2479_v51 = vrot.slane %v2478_v42, 1  ;;  %v2501_v57 = vrot.slane %v2500_v47, 2  ;;  %v2506_v18 = vadd.f32 %v2505_v15, %v2323_v53 }
 0x2b9   : > { %4978 = vmatmul.mubr.bf16.gmra.mxu0 %v2625_v28  ;;  %v2485_v30 = vrot.slane %v2484_v29, 1  ;;  %v2490_v1 = vadd.f32 %v2489_v33, %v2488_v31  ;;  %v2496_v35 = vadd.f32 %v2495_v24, %v2494_v7  ;;  %v2512_v40 = vadd.f32 %v2511_v43, %v2324_v32  ;;  %v8604_v28 = vld [vmem:[#allocation47_spill] sm:$0xff]  ;;  %v8606_v7 = vld [vmem:[#allocation49_spill] sm:$0xff] }
 0x2ba   : > { %v2480_v49 = vadd.f32 %v2479_v51, %v2478_v42  ;;  %v2541_v58 = vsub.f32 %v2474_v14, %v6875_v23  ;;  %v2502_v17 = vadd.f32 %v2501_v57, %v2500_v47  ;;  %v2507_v0 = vrot.slane %v2506_v18, 2  ;;  %v8608_v47 = vld [vmem:[#allocation59_spill] sm:$0xff]  ;;  %v8611_v57 = vld [vmem:[#allocation89_spill] sm:$0xff] }
 0x2bb   : > { %v2486_v56 = vadd.f32 %v2485_v30, %v2484_v29  ;;  %v2491_v3 = vrot.slane %v2490_v1, 1  ;;  %v2497_v45 = vrot.slane %v2496_v35, 1  ;;  %v2513_v2 = vrot.slane %v2512_v40, 2  ;;  %v8609_v29 = vld [vmem:[#allocation58_spill] sm:$0xff]  ;;  %v5213_v30 = vld [vmem:[%s8183_s8 + $0x10] sm:$0xff]  }
 0x2bc   : > { %v2542_v41 = vsub.f32 %v2480_v49, %v6883_v11  ;;  %v2503_v13 = vrot.slane %v2502_v17, 1  ;;  %v2508_v44 = vadd.f32 %v2507_v0, %v2506_v18  ;;  %v2573_v22 = vmul.f32 %v2541_v58, %v8604_v28  ;;  %5047 = vmatprep.subr.bf16.mxu0 %v5213_v30 }
 0x2bd   : > { %v2492_v10 = vadd.f32 %v2491_v3, %v2490_v1  ;;  %v2543_v52 = vsub.f32 %v2486_v56, %v6890_v39  ;;  %v2498_v6 = vadd.f32 %v2497_v45, %v2496_v35  ;;  %v2514_v59 = vadd.f32 %v2513_v2, %v2512_v40  ;;  %v8607_v39 = vld [vmem:[#allocation68_spill] sm:$0xff]  ;;  %5048 = vmatpush3.bf16.msra.mxu0 %v5213_v30 }
 0x2be   : > { %v2574_v46 = vmul.f32 %v2542_v41, %v8605_v16  ;;  %v2504_v23 = vadd.f32 %v2503_v13, %v2502_v17  ;;  %v2509_v5 = vrot.slane %v2508_v44, 1  ;;  %v6953_v41 = vld [vmem:[%s8182_s7 + $0x1] ss:$0 sm:$0xff] }
 0x2bf   : > { %v2544_v27 = vsub.f32 %v2492_v10, %v6899_v38  ;;  %v2545_v12 = vsub.f32 %v2498_v6, %v6904_v8  ;;  %v2515_v54 = vrot.slane %v2514_v59, 1  ;;  %v2575_v36 = vmul.f32 %v2543_v52, %v8606_v7  ;;  %v8610_v8 = vld [vmem:[#allocation90_spill] sm:$0xff] }
 0x2c0   : > { %v2626_v37 = vpack.c.bf16 %v2574_v46, %v2573_v22  ;;  %v2546_v11 = vsub.f32 %v2504_v23, %v6909_v4  ;;  %v2510_v31 = vadd.f32 %v2509_v5, %v2508_v44 }
 0x2c1   : > { %v2576_v9 = vmul.f32 %v2544_v27, %v8607_v39  ;;  %v2516_v42 = vadd.f32 %v2515_v54, %v2514_v59  ;;  %v2577_v15 = vmul.f32 %v2545_v12, %v8608_v47 }
 0x2c2   : > { %4981 = vmatprep.mubr.bf16.mxu0 %v2626_v37  ;;  %v2578_v33 = vmul.f32 %v2546_v11, %v8609_v29  ;;  %v2547_v24 = vsub.f32 %v2510_v31, %v2323_v53  ;;  %v5214_v53 = vld [vmem:[%s8183_s8 + $0x8] sm:$0xff]  }
 0x2c3   : > { %v2627_v43 = vpack.c.bf16 %v2576_v9, %v2575_v36  ;;  %v2548_v38 = vsub.f32 %v2516_v42, %v2324_v32  ;;  %5049 = vmatprep.subr.bf16.mxu0 %v5214_v53  ;;  %v5215_v32 = vld [vmem:[%s8183_s8] sm:$0xff]  }
 0x2c4   : > { %v2628_v14 = vpack.c.bf16 %v2578_v33, %v2577_v15  ;;  %v2579_v51 = vmul.f32 %v2547_v24, %v8610_v8  ;;  %5050 = vmatpush3.bf16.msra.mxu0 %v5214_v53 }
 0x2c5   : > { %4982 = vmatmul.mubr.bf16.gmra.mxu0 %v2627_v43  ;;  %v2580_v4 = vmul.f32 %v2548_v38, %v8611_v57  ;;  %5051 = vmatprep.subr.bf16.mxu0 %v5215_v32 }
 0x2c6   : > { %4985 = vmatprep.mubr.bf16.mxu0 %v2628_v14 }
 0x2c7   : > { %v2629_v18 = vpack.c.bf16 %v2580_v4, %v2579_v51 }
 0x2c8   : > { %5052 = vmatpush3.bf16.msra.mxu0 %v5215_v32 }
 0x2cd   : > { %4986 = vmatmul.mubr.bf16.gmra.mxu0 %v2629_v18 }
 0x324   : > { %v5007_v1 = vpop.f32.mrf.mxu1 }
 0x326   : > { %v2938_v35 = vpop.f32.mrf.mxu1 }
 0x328   : > { %v5008_v40 = vpop.f32.mrf.mxu1 }
 0x32a   : > { %v2941_v49 = vpop.f32.mrf.mxu1 }
 0x32c   : > { %v5011_v58 = vpop.f32.mrf.mxu1 }
 0x32e   : > { %v2954_v17 = vpop.f32.mrf.mxu1 }
 0x330   : > { %v5012_v0 = vpop.f32.mrf.mxu1 }
 0x332   : > { %v2957_v56 = vpop.f32.mrf.mxu1 }
 0x334   : > { %v6948_v3 = vpop.f32.mrf.mxu1 }
 0x336   : > { %v2970_v52 = vpop.f32.mrf.mxu1 }
 0x337   : > { %v4959_v45 = vpop.f32.mrf.mxu0 }
 0x338   : > { %v2947_v2 = vadd.f32 %v5007_v1, %v4959_v45  ;;  %v5016_v27 = vpop.f32.mrf.mxu1 }
 0x339   : > { %v2729_v13 = vpop.f32.mrf.mxu0 }
 0x33a   : > { %v3067_v44 = vadd.f32 %v2947_v2, %v8514_v19  ;;  %v2939_v10 = vadd.f32 %v2938_v35, %v2729_v13  ;;  %v2973_v37 = vpop.f32.mrf.mxu1 }
 0x33b   : > { %v4960_v6 = vpop.f32.mrf.mxu0 }
 0x33c   : > { %v3107_v59 = vadd.f32 %v6953_v41, %v3067_v44  ;;  %v3065_v28 = vadd.f32 %v2939_v10, %v8512_v26  ;;  %v2950_v22 = vadd.f32 %v5008_v40, %v4960_v6  ;;  %v6963_v26 = vpop.f32.mrf.mxu1 }
 0x33d   : > { %v2732_v16 = vpop.f32.mrf.mxu0 }
 0x33e   : > { %5280 = vtanh.f32 %v3107_v59  ;;  %v3105_v46 = vadd.f32 %v6953_v41, %v3065_v28  ;;  %v3068_v23 = vadd.f32 %v2950_v22, %v8515_v50  ;;  %v2942_v5 = vadd.f32 %v2941_v49, %v2732_v16  ;;  %v6971_v11 = vpop.f32.mrf.mxu1 }
 0x340   : > { %5282 = vtanh.f32 %v3105_v46  ;;  %v3108_v19 = vadd.f32 %v6953_v41, %v3068_v23  ;;  %v3066_v12 = vadd.f32 %v2942_v5, %v8513_v48  ;;  %v6975_v9 = vpop.f32.mrf.mxu1  ;;  %v8612_v23 = vld [vmem:[#allocation78_spill] sm:$0xff] }
 0x342   : > { %5284 = vtanh.f32 %v3108_v19  ;;  %v3106_v54 = vadd.f32 %v6953_v41, %v3066_v12  ;;  %v6982_v14 = vpop.f32.mrf.mxu1 }
 0x344   : > { %5286 = vtanh.f32 %v3106_v54 }
 0x34b   : > { %v5281_v50 = vpop.eup %5280 }
 0x34c   : > { %3171 = vst [vmem:[%s6969_s13 + $0x10] sm:$0xff] %v5281_v50 }
 0x34d   : > { %v5283_v48 = vpop.eup %5282  ;;  %v4963_v31 = vpop.f32.mrf.mxu0 }
 0x34e   : > { %3169 = vst [vmem:[%s6969_s13] sm:$0xff] %v5283_v48  ;;  %v2963_v7 = vadd.f32 %v5011_v58, %v4963_v31 }
 0x34f   : > { %v5285_v36 = vpop.eup %5284  ;;  %v2745_v39 = vpop.f32.mrf.mxu0 }
 0x350   : > { %3172 = vst [vmem:[%s6969_s13 + $0x18] sm:$0xff] %v5285_v36  ;;  %v3071_v42 = vadd.f32 %v2963_v7, %v6036_v60  ;;  %v2955_v47 = vadd.f32 %v2954_v17, %v2745_v39  ;;  %v3202_v51 = vpack.c.bf16 %v5285_v36, %v5281_v50  ;;  %v8614_v36 = vld [vmem:[#allocation79_spill] sm:$0xff] }
 0x351   : > { %v5287_v15 = vpop.eup %5286  ;;  %v4964_v29 = vpop.f32.mrf.mxu0 }
 0x352   : > { %3170 = vst [vmem:[%s6969_s13 + $0x8] sm:$0xff] %v5287_v15  ;;  %v3111_v33 = vadd.f32 %v6953_v41, %v3071_v42  ;;  %v3069_v24 = vadd.f32 %v2955_v47, %v8516_v55  ;;  %v2966_v43 = vadd.f32 %v5012_v0, %v4964_v29  ;;  %v3201_v38 = vpack.c.bf16 %v5287_v15, %v5283_v48  ;;  %v6988_v55 = vpop.f32.mrf.mxu1  ;;  %v8615_v47 = vld [vmem:[#allocation77_spill] sm:$0xff] }
 0x353   : > { %v2748_v8 = vpop.f32.mrf.mxu0 }
 0x354   : > { %5288 = vtanh.f32 %v3111_v33  ;;  %v3109_v57 = vadd.f32 %v6953_v41, %v3069_v24  ;;  %v3072_v4 = vadd.f32 %v2966_v43, %v8517_v61  ;;  %v2958_v60 = vadd.f32 %v2957_v56, %v2748_v8  ;;  %5053 = vmatprep.mubr.bf16.mxu0 %v3201_v38  ;;  %v6991_v32 = vpop.f32.mrf.mxu1 }
 0x355   : > { %5054 = vmatmul.mubr.bf16.vlgmr.msra.gmra.mxu0 %v3202_v51 }
 0x356   : > { %5290 = vtanh.f32 %v3109_v57  ;;  %v3112_v18 = vadd.f32 %v6953_v41, %v3072_v4  ;;  %v3070_v30 = vadd.f32 %v2958_v60, %v6026_v25  ;;  %v6995_v58 = vpop.f32.mrf.mxu1 }
 0x358   : > { %5292 = vtanh.f32 %v3112_v18  ;;  %v3110_v53 = vadd.f32 %v6953_v41, %v3070_v30  ;;  %v7002_v44 = vpop.f32.mrf.mxu1 }
 0x35a   : > { %5294 = vtanh.f32 %v3110_v53  ;;  %v5027_v46 = vpop.f32.mrf.mxu1  ;;  %v8616_v53 = vld [vmem:[#allocation80_spill] sm:$0xff] }
 0x35c   : > { %v4967_v1 = vpop.f32.mrf.mxu0  ;;  %v3018_v31 = vpop.f32.mrf.mxu1 }
 0x35d   : > { %v2979_v61 = vadd.f32 %v6948_v3, %v4967_v1 }
 0x35e   : > { %v2761_v35 = vpop.f32.mrf.mxu0 }
 0x35f   : > { %v3075_v40 = vadd.f32 %v2979_v61, %v6110_v21  ;;  %v2971_v49 = vadd.f32 %v2970_v52, %v2761_v35 }
 0x360   : > { %v4968_v25 = vpop.f32.mrf.mxu0 }
 0x361   : > { %v5289_v17 = vpop.eup %5288  ;;  %v3115_v0 = vadd.f32 %v6953_v41, %v3075_v40  ;;  %v3073_v56 = vadd.f32 %v2971_v49, %v6062_v34  ;;  %v2982_v45 = vadd.f32 %v5016_v27, %v4968_v25 }
 0x362   : > { %3175 = vst [vmem:[%s6969_s13 + $0x30] sm:$0xff] %v5289_v17  ;;  %v2764_v2 = vpop.f32.mrf.mxu0 }
 0x363   : > { %v5291_v13 = vpop.eup %5290  ;;  %5296 = vtanh.f32 %v3115_v0  ;;  %v3113_v3 = vadd.f32 %v6953_v41, %v3073_v56  ;;  %v3076_v21 = vadd.f32 %v2982_v45, %v6124_v63  ;;  %v2974_v10 = vadd.f32 %v2973_v37, %v2764_v2  ;;  %v8613_v37 = vld [vmem:[#allocation76_spill] sm:$0xff]  ;;  %v8618_v2 = vld [vmem:[#allocation81_spill] sm:$0xff] }
 0x364   : > { %3173 = vst [vmem:[%s6969_s13 + $0x20] sm:$0xff] %v5291_v13  ;;  %v4971_v52 = vpop.f32.mrf.mxu0 }
 0x365   : > { %v5293_v6 = vpop.eup %5292  ;;  %5298 = vtanh.f32 %v3113_v3  ;;  %v3116_v34 = vadd.f32 %v6953_v41, %v3076_v21  ;;  %v3074_v59 = vadd.f32 %v2974_v10, %v6097_v62  ;;  %v2995_v28 = vadd.f32 %v6963_v26, %v4971_v52 }
 0x366   : > { %3176 = vst [vmem:[%s6969_s13 + $0x38] sm:$0xff] %v5293_v6  ;;  %v2777_v22 = vpop.f32.mrf.mxu0  ;;  %v3204_v54 = vpack.c.bf16 %v5293_v6, %v5289_v17  ;;  %v8619_v6 = vld [vmem:[#allocation85_spill] sm:$0xff] }
 0x367   : > { %v5295_v16 = vpop.eup %5294  ;;  %5300 = vtanh.f32 %v3116_v34  ;;  %v3114_v63 = vadd.f32 %v6953_v41, %v3074_v59  ;;  %v3079_v5 = vadd.f32 %v2995_v28, %v8612_v23  ;;  %v2987_v27 = vadd.f32 %v6971_v11, %v2777_v22 }
 0x368   : > { %3174 = vst [vmem:[%s6969_s13 + $0x28] sm:$0xff] %v5295_v16  ;;  %v4972_v19 = vpop.f32.mrf.mxu0  ;;  %v3203_v12 = vpack.c.bf16 %v5295_v16, %v5291_v13 }
 0x369   : > { %5302 = vtanh.f32 %v3114_v63  ;;  %v3119_v62 = vadd.f32 %v6953_v41, %v3079_v5  ;;  %v3077_v26 = vadd.f32 %v2987_v27, %v8613_v37  ;;  %v2998_v50 = vadd.f32 %v6975_v9, %v4972_v19  ;;  %v5028_v9 = vpop.f32.mrf.mxu1  ;;  %v8620_v63 = vld [vmem:[#allocation83_spill] sm:$0xff] }
 0x36a   : > { %v2780_v48 = vpop.f32.mrf.mxu0  ;;  %5057 = vmatprep.mubr.bf16.mxu0 %v3203_v12 }
 0x36b   : > { %5304 = vtanh.f32 %v3119_v62  ;;  %v3117_v7 = vadd.f32 %v6953_v41, %v3077_v26  ;;  %v3080_v11 = vadd.f32 %v2998_v50, %v8614_v36  ;;  %v2990_v39 = vadd.f32 %v6982_v14, %v2780_v48  ;;  %5058 = vmatmul.mubr.bf16.gmra.mxu0 %v3204_v54  ;;  %v3021_v14 = vpop.f32.mrf.mxu1  ;;  %v8621_v62 = vld [vmem:[#allocation86_spill] sm:$0xff]  ;;  %v8622_v48 = vld [vmem:[#allocation84_spill] sm:$0xff] }
 0x36d   : > { %5306 = vtanh.f32 %v3117_v7  ;;  %v3120_v42 = vadd.f32 %v6953_v41, %v3080_v11  ;;  %v3078_v15 = vadd.f32 %v2990_v39, %v8615_v47 }
 0x36f   : > { %5308 = vtanh.f32 %v3120_v42  ;;  %v3118_v29 = vadd.f32 %v6953_v41, %v3078_v15 }
 0x370   : > { %v5297_v33 = vpop.eup %5296 }
 0x371   : > { %3179 = vst [vmem:[%s6969_s13 + $0x50] sm:$0xff] %v5297_v33  ;;  %5310 = vtanh.f32 %v3118_v29  ;;  %v4975_v24 = vpop.f32.mrf.mxu0  ;;  %v8623_v29 = vld [vmem:[#allocation55_spill] sm:$0xff] }
 0x372   : > { %v5299_v43 = vpop.eup %5298  ;;  %v3011_v38 = vadd.f32 %v6988_v55, %v4975_v24  ;;  %v5031_v55 = vpop.f32.mrf.mxu1 }
 0x373   : > { %3177 = vst [vmem:[%s6969_s13 + $0x40] sm:$0xff] %v5299_v43  ;;  %v2793_v8 = vpop.f32.mrf.mxu0 }
 0x374   : > { %v5301_v51 = vpop.eup %5300  ;;  %v3083_v57 = vadd.f32 %v3011_v38, %v6221_v20  ;;  %v3003_v4 = vadd.f32 %v6991_v32, %v2793_v8  ;;  %v8617_v32 = vld [vmem:[#allocation82_spill] sm:$0xff]  ;;  %v3034_v21 = vpop.f32.mrf.mxu1  ;;  %v8624_v8 = vld [vmem:[#allocation45_spill] sm:$0xff] }
 0x375   : > { %3180 = vst [vmem:[%s6969_s13 + $0x58] sm:$0xff] %v5301_v51  ;;  %v4976_v60 = vpop.f32.mrf.mxu0  ;;  %v3206_v49 = vpack.c.bf16 %v5301_v51, %v5297_v33 }
 0x376   : > { %v5303_v18 = vpop.eup %5302  ;;  %v3123_v30 = vadd.f32 %v6953_v41, %v3083_v57  ;;  %v3081_v1 = vadd.f32 %v3003_v4, %v8616_v53  ;;  %v3014_v61 = vadd.f32 %v6995_v58, %v4976_v60  ;;  %v5032_v5 = vpop.f32.mrf.mxu1  ;;  %v8625_v53 = vld [vmem:[#allocation56_spill] sm:$0xff] }
 0x377   : > { %3178 = vst [vmem:[%s6969_s13 + $0x48] sm:$0xff] %v5303_v18  ;;  %v2796_v35 = vpop.f32.mrf.mxu0  ;;  %v3205_v40 = vpack.c.bf16 %v5303_v18, %v5299_v43 }
 0x378   : > { %v5305_v25 = vpop.eup %5304  ;;  %5312 = vtanh.f32 %v3123_v30  ;;  %v3121_v20 = vadd.f32 %v6953_v41, %v3081_v1  ;;  %v3084_v17 = vadd.f32 %v3014_v61, %v8617_v32  ;;  %v3006_v0 = vadd.f32 %v7002_v44, %v2796_v35  ;;  %v3037_v7 = vpop.f32.mrf.mxu1 }
 0x379   : > { %3183 = vst [vmem:[%s6969_s13 + $0x70] sm:$0xff] %v5305_v25  ;;  %v4979_v56 = vpop.f32.mrf.mxu0  ;;  %5061 = vmatprep.mubr.bf16.mxu0 %v3205_v40 }
 0x37a   : > { %v5307_v45 = vpop.eup %5306  ;;  %5314 = vtanh.f32 %v3121_v20  ;;  %v3124_v58 = vadd.f32 %v6953_v41, %v3084_v17  ;;  %v3082_v13 = vadd.f32 %v3006_v0, %v8618_v2  ;;  %v3027_v3 = vadd.f32 %v5027_v46, %v4979_v56  ;;  %5062 = vmatmul.mubr.bf16.gmra.mxu0 %v3206_v49  ;;  %v5035_v15 = vpop.f32.mrf.mxu1  ;;  %v8626_v20 = vld [vmem:[#allocation44_spill] sm:$0xff]  ;;  %v8627_v2 = vld [vmem:[#allocation70_spill] sm:$0xff] }
 0x37b   : > { %3181 = vst [vmem:[%s6969_s13 + $0x60] sm:$0xff] %v5307_v45  ;;  %v2809_v10 = vpop.f32.mrf.mxu0 }
 0x37c   : > { %v5309_v52 = vpop.eup %5308  ;;  %5316 = vtanh.f32 %v3124_v58  ;;  %v3122_v44 = vadd.f32 %v6953_v41, %v3082_v13  ;;  %v3087_v34 = vadd.f32 %v3027_v3, %v8619_v6  ;;  %v3019_v59 = vadd.f32 %v3018_v31, %v2809_v10  ;;  %v3050_v60 = vpop.f32.mrf.mxu1 }
 0x37d   : > { %3184 = vst [vmem:[%s6969_s13 + $0x78] sm:$0xff] %v5309_v52  ;;  %v4980_v28 = vpop.f32.mrf.mxu0  ;;  %v3208_v12 = vpack.c.bf16 %v5309_v52, %v5305_v25 }
 0x37e   : > { %v5311_v22 = vpop.eup %5310  ;;  %5318 = vtanh.f32 %v3122_v44  ;;  %v3127_v16 = vadd.f32 %v6953_v41, %v3087_v34  ;;  %v3085_v46 = vadd.f32 %v3019_v59, %v8620_v63  ;;  %v3030_v23 = vadd.f32 %v5028_v9, %v4980_v28  ;;  %v5036_v56 = vpop.f32.mrf.mxu1  ;;  %v8628_v44 = vld [vmem:[#allocation65_spill] sm:$0xff]  ;;  %v8629_v63 = vld [vmem:[#allocation74_spill] sm:$0xff] }
 0x37f   : > { %3182 = vst [vmem:[%s6969_s13 + $0x68] sm:$0xff] %v5311_v22  ;;  %v2812_v27 = vpop.f32.mrf.mxu0  ;;  %v3207_v19 = vpack.c.bf16 %v5311_v22, %v5307_v45 }
 0x380   : > { %5320 = vtanh.f32 %v3127_v16  ;;  %v3125_v54 = vadd.f32 %v6953_v41, %v3085_v46  ;;  %v3088_v37 = vadd.f32 %v3030_v23, %v8621_v62  ;;  %v3022_v26 = vadd.f32 %v3021_v14, %v2812_v27  ;;  %v3053_v28 = vpop.f32.mrf.mxu1 }
 0x381   : > { %5065 = vmatprep.mubr.bf16.mxu0 %v3207_v19  ;;  %v8630_v19 = vld [vmem:[#allocation67_spill] sm:$0xff] }
 0x382   : > { %5322 = vtanh.f32 %v3125_v54  ;;  %v3128_v50 = vadd.f32 %v6953_v41, %v3088_v37  ;;  %v3086_v31 = vadd.f32 %v3022_v26, %v8622_v48  ;;  %5066 = vmatmul.mubr.bf16.gmra.mxu0 %v3208_v12 }
 0x384   : > { %5324 = vtanh.f32 %v3128_v50  ;;  %v3126_v36 = vadd.f32 %v6953_v41, %v3086_v31 }
 0x385   : > { %v5313_v11 = vpop.eup %5312  ;;  %v4983_v39 = vpop.f32.mrf.mxu0 }
 0x386   : > { %3187 = vst [vmem:[%s6969_s13 + $0x90] sm:$0xff] %v5313_v11  ;;  %5326 = vtanh.f32 %v3126_v36  ;;  %v3043_v42 = vadd.f32 %v5031_v55, %v4983_v39 }
 0x387   : > { %v5315_v47 = vpop.eup %5314  ;;  %v2825_v9 = vpop.f32.mrf.mxu0 }
 0x388   : > { %3185 = vst [vmem:[%s6969_s13 + $0x80] sm:$0xff] %v5315_v47  ;;  %v3091_v33 = vadd.f32 %v3043_v42, %v8623_v29  ;;  %v3035_v24 = vadd.f32 %v3034_v21, %v2825_v9  ;;  %v7091_v29 = vld [vmem:[%s8184_s9] ss:$0 sm:$0xff] }
 0x389   : > { %v5317_v43 = vpop.eup %5316  ;;  %v4984_v38 = vpop.f32.mrf.mxu0 }
 0x38a   : > { %3188 = vst [vmem:[%s6969_s13 + $0x98] sm:$0xff] %v5317_v43  ;;  %v3131_v14 = vadd.f32 %v6953_v41, %v3091_v33  ;;  %v3089_v51 = vadd.f32 %v3035_v24, %v8624_v8  ;;  %v3046_v57 = vadd.f32 %v5032_v5, %v4984_v38  ;;  %v3210_v49 = vpack.c.bf16 %v5317_v43, %v5313_v11 }
 0x38b   : > { %v5319_v4 = vpop.eup %5318  ;;  %v2828_v18 = vpop.f32.mrf.mxu0 }
 0x38c   : > { %3186 = vst [vmem:[%s6969_s13 + $0x88] sm:$0xff] %v5319_v4  ;;  %5328 = vtanh.f32 %v3131_v14  ;;  %v3129_v30 = vadd.f32 %v6953_v41, %v3089_v51  ;;  %v3092_v1 = vadd.f32 %v3046_v57, %v8625_v53  ;;  %v3038_v61 = vadd.f32 %v3037_v7, %v2828_v18 }
 0x38d   : > { %v5321_v55 = vpop.eup %5320  ;;  %v4987_v35 = vpop.f32.mrf.mxu0  ;;  %v3209_v40 = vpack.c.bf16 %v5319_v4, %v5315_v47 }
 0x38e   : > { %3191 = vst [vmem:[%s6969_s13 + $0xb0] sm:$0xff] %v5321_v55  ;;  %5330 = vtanh.f32 %v3129_v30  ;;  %v3132_v25 = vadd.f32 %v6953_v41, %v3092_v1  ;;  %v3090_v32 = vadd.f32 %v3038_v61, %v8626_v20  ;;  %v3059_v17 = vadd.f32 %v5035_v15, %v4987_v35 }
 0x38f   : > { %v5323_v0 = vpop.eup %5322  ;;  %v2841_v45 = vpop.f32.mrf.mxu0  ;;  %5069 = vmatprep.mubr.bf16.mxu0 %v3209_v40  ;;  %v3449_v15 = vlaneseq }
 0x390   : > { %3189 = vst [vmem:[%s6969_s13 + $0xa0] sm:$0xff] %v5323_v0  ;;  %5332 = vtanh.f32 %v3132_v25  ;;  %v3130_v58 = vadd.f32 %v6953_v41, %v3090_v32  ;;  %v3095_v13 = vadd.f32 %v3059_v17, %v8627_v2  ;;  %v3051_v3 = vadd.f32 %v3050_v60, %v2841_v45  ;;  %5070 = vmatmul.mubr.bf16.gmra.mxu0 %v3210_v49 }
 0x391   : > { %v5325_v21 = vpop.eup %5324  ;;  %v4988_v10 = vpop.f32.mrf.mxu0  ;;  %v7082_v9 = vand.u32 127, %v3449_v15 }
 0x392   : > { %3192 = vst [vmem:[%s6969_s13 + $0xb8] sm:$0xff] %v5325_v21  ;;  %5334 = vtanh.f32 %v3130_v58  ;;  %v3135_v52 = vadd.f32 %v6953_v41, %v3095_v13  ;;  %v3093_v6 = vadd.f32 %v3051_v3, %v8628_v44  ;;  %v3062_v34 = vadd.f32 %v5036_v56, %v4988_v10 }
 0x393   : > { %v5327_v59 = vpop.eup %5326  ;;  %v2844_v22 = vpop.f32.mrf.mxu0  ;;  %v3212_v54 = vpack.c.bf16 %v5325_v21, %v5321_v55  ;;  %vm3451_vm0 = vcmp.ge.s32.totalorder %v7082_v9, 1  ;;  %vm3452_vm1 = vcmp.lt.s32.totalorder %v7082_v9, 6  ;;  %vm3454_vm2 = vcmp.ge.s32.totalorder %v7082_v9, 6 }
 0x394   : > { %3190 = vst [vmem:[%s6969_s13 + $0xa8] sm:$0xff] %v5327_v59  ;;  %5336 = vtanh.f32 %v3135_v52  ;;  %v3133_v16 = vadd.f32 %v6953_v41, %v3093_v6  ;;  %v3096_v46 = vadd.f32 %v3062_v34, %v8629_v63  ;;  %v3054_v23 = vadd.f32 %v3053_v28, %v2844_v22  ;;  %vm7093_vm4 = vmand %vm3451_vm0, %vm3452_vm1 }
 0x395   : > { %v3211_v5 = vpack.c.bf16 %v5327_v59, %v5323_v0  ;;  %vm3455_vm3 = vcmp.lt.s32.totalorder %v7082_v9, 8  ;;  %vm4258_vm7 = vcmp.eq.s32.totalorder %v7082_v9, 0 }
 0x396   : > { %5338 = vtanh.f32 %v3133_v16  ;;  %v3136_v27 = vadd.f32 %v6953_v41, %v3096_v46  ;;  %v3094_v12 = vadd.f32 %v3054_v23, %v8630_v19  ;;  %vm7097_vm5 = vmand %vm3454_vm2, %vm3455_vm3 }
 0x397   : > { %5073 = vmatprep.mubr.bf16.mxu0 %v3211_v5  ;;  %vm7428_vm6 = vmor %vm7093_vm4, %vm7097_vm5 }
 0x398   : > { %5340 = vtanh.f32 %v3136_v27  ;;  %v3134_v62 = vadd.f32 %v6953_v41, %v3094_v12  ;;  %5074 = vmatmul.mubr.bf16.gmra.mxu0 %v3212_v54 }
 0x399   : > { %v5329_v37 = vpop.eup %5328 }
 0x39a   : > { %3195 = vst [vmem:[%s6969_s13 + $0xd0] sm:$0xff] %v5329_v37  ;;  %5342 = vtanh.f32 %v3134_v62 }
 0x39b   : > { %v5331_v26 = vpop.eup %5330 }
 0x39c   : > { %3193 = vst [vmem:[%s6969_s13 + $0xc0] sm:$0xff] %v5331_v26 }
 0x39d   : > { %v5333_v50 = vpop.eup %5332 }
 0x39e   : > { %3196 = vst [vmem:[%s6969_s13 + $0xd8] sm:$0xff] %v5333_v50  ;;  %v3214_v36 = vpack.c.bf16 %v5333_v50, %v5329_v37 }
 0x39f   : > { %v5335_v48 = vpop.eup %5334 }
 0x3a0   : > { %3194 = vst [vmem:[%s6969_s13 + $0xc8] sm:$0xff] %v5335_v48  ;;  %v3213_v31 = vpack.c.bf16 %v5335_v48, %v5331_v26 }
 0x3a1   : > { %v5337_v7 = vpop.eup %5336 }
 0x3a2   : > { %3199 = vst [vmem:[%s6969_s13 + $0xf0] sm:$0xff] %v5337_v7  ;;  %5077 = vmatprep.mubr.bf16.mxu0 %v3213_v31 }
 0x3a3   : > { %v5339_v11 = vpop.eup %5338  ;;  %5078 = vmatmul.mubr.bf16.gmra.mxu0 %v3214_v36 }
 0x3a4   : > { %3197 = vst [vmem:[%s6969_s13 + $0xe0] sm:$0xff] %v5339_v11 }
 0x3a5   : > { %v5341_v41 = vpop.eup %5340 }
 0x3a6   : > { %3200 = vst [vmem:[%s6969_s13 + $0xf8] sm:$0xff] %v5341_v41  ;;  %v3216_v47 = vpack.c.bf16 %v5341_v41, %v5337_v7 }
 0x3a7   : > { %v5343_v39 = vpop.eup %5342 }
 0x3a8   : > { %3198 = vst [vmem:[%s6969_s13 + $0xe8] sm:$0xff] %v5343_v39  ;;  %v3215_v42 = vpack.c.bf16 %v5343_v39, %v5339_v11 }
 0x3aa   : > { %5081 = vmatprep.mubr.bf16.mxu0 %v3215_v42 }
 0x3ab   : > { %5082 = vmatmul.mubr.bf16.gmra.mxu0 %v3216_v47 }
 0x415   : > { %v5055_v24 = vpop.f32.mrf.mxu0 }
 0x416   : > { %v7102_v38 = vadd.f32 %v5055_v24, %v7091_v29 }
 0x417   : > { %v3322_v14 = vpop.f32.mrf.mxu0 }
 0x418   : > { %v7105_v8 = vadd.f32 %v7091_v29, %v3322_v14  ;;  %v3555_v51 = vsel %vm7097_vm5, %v7102_v38, -1e+30  ;;  %v3459_v57 = vsel %vm7093_vm4, %v7102_v38, -1e+30 }
 0x419   : > { %3589 = vmax.xlane.f32.xlu1 %v3555_v51  ;;  %3493 = vmax.xlane.f32.xlu0 %v3459_v57  ;;  %v5056_v4 = vpop.f32.mrf.mxu0 }
 0x41a   : > { %v7114_v18 = vadd.f32 %v5056_v4, %v7091_v29  ;;  %v3553_v53 = vsel %vm7097_vm5, %v7105_v8, -1e+30  ;;  %v3457_v1 = vsel %vm7093_vm4, %v7105_v8, -1e+30 }
 0x41b   : > { %v3325_v60 = vpop.f32.mrf.mxu0 }
 0x41c   : > { %v7117_v30 = vadd.f32 %v7091_v29, %v3325_v60  ;;  %v3460_v55 = vsel %vm7093_vm4, %v7114_v18, -1e+30  ;;  %v3556_v35 = vsel %vm7097_vm5, %v7114_v18, -1e+30 }
 0x41d   : > { %3585 = vmax.xlane.f32.xlu1 %v3553_v53  ;;  %3489 = vmax.xlane.f32.xlu0 %v3457_v1 }
 0x41e   : > { %v3458_v61 = vsel %vm7093_vm4, %v7117_v30, -1e+30  ;;  %v3554_v40 = vsel %vm7097_vm5, %v7117_v30, -1e+30 }
 0x421   : > { %3491 = vmax.xlane.f32.xlu1 %v3458_v61  ;;  %3495 = vmax.xlane.f32.xlu0 %v3460_v55 }
 0x425   : > { %3591 = vmax.xlane.f32.xlu0 %v3556_v35 }
 0x429   : > { %3587 = vmax.xlane.f32.xlu0 %v3554_v40 }
 0x42b   : > { %v5059_v49 = vpop.f32.mrf.mxu0 }
 0x42c   : > { %v7138_v25 = vadd.f32 %v5059_v49, %v7091_v29 }
 0x42d   : > { %v3338_v20 = vpop.f32.mrf.mxu0 }
 0x42e   : > { %v3463_v32 = vsel %vm7093_vm4, %v7138_v25, -1e+30  ;;  %v7147_v56 = vadd.f32 %v7091_v29, %v3338_v20  ;;  %v3559_v45 = vsel %vm7097_vm5, %v7138_v25, -1e+30 }
 0x42f   : > { %v5060_v17 = vpop.f32.mrf.mxu0  ;;  %3501 = vmax.xlane.f32.xlu1 %v3463_v32 }
 0x430   : > { %v7144_v0 = vadd.f32 %v5060_v17, %v7091_v29  ;;  %v3461_v3 = vsel %vm7093_vm4, %v7147_v56, -1e+30  ;;  %v3557_v52 = vsel %vm7097_vm5, %v7147_v56, -1e+30 }
 0x431   : > { %v3341_v2 = vpop.f32.mrf.mxu0 }
 0x432   : > { %v3464_v58 = vsel %vm7093_vm4, %v7144_v0, -1e+30  ;;  %v7156_v13 = vadd.f32 %v7091_v29, %v3341_v2  ;;  %v3560_v21 = vsel %vm7097_vm5, %v7144_v0, -1e+30 }
 0x433   : > { %3597 = vmax.xlane.f32.xlu1 %v3559_v45  ;;  %3503 = vmax.xlane.f32.xlu0 %v3464_v58 }
 0x434   : > { %v3462_v44 = vsel %vm7093_vm4, %v7156_v13, -1e+30  ;;  %v3558_v22 = vsel %vm7097_vm5, %v7156_v13, -1e+30 }
 0x437   : > { %3497 = vmax.xlane.f32.xlu1 %v3461_v3  ;;  %3599 = vmax.xlane.f32.xlu0 %v3560_v21 }
 0x43a   : > { %v5063_v10 = vpop.f32.mrf.mxu0 }
 0x43b   : > { %v7171_v6 = vadd.f32 %v5063_v10, %v7091_v29  ;;  %3593 = vmax.xlane.f32.xlu1 %v3557_v52  ;;  %3499 = vmax.xlane.f32.xlu0 %v3462_v44 }
 0x43c   : > { %v3354_v34 = vpop.f32.mrf.mxu0 }
 0x43d   : > { %8635 = vst [vmem:[#allocation2_spill] sm:$0xff] %v7171_v6  ;;  %v3467_v28 = vsel %vm7093_vm4, %v7171_v6, -1e+30  ;;  %v7183_v46 = vadd.f32 %v7091_v29, %v3354_v34  ;;  %v3563_v23 = vsel %vm7097_vm5, %v7171_v6, -1e+30 }
 0x43e   : > { %v5064_v59 = vpop.f32.mrf.mxu0 }
 0x43f   : > { %v7180_v16 = vadd.f32 %v5064_v59, %v7091_v29  ;;  %3509 = vmax.xlane.f32.xlu1 %v3467_v28  ;;  %3595 = vmax.xlane.f32.xlu0 %v3558_v22  ;;  %8637 = vst [vmem:[#allocation4_spill] sm:$0xff] %v7183_v46  ;;  %v3465_v12 = vsel %vm7093_vm4, %v7183_v46, -1e+30  ;;  %v3561_v26 = vsel %vm7097_vm5, %v7183_v46, -1e+30 }
 0x440   : > { %v3357_v63 = vpop.f32.mrf.mxu0 }
 0x441   : > { %8636 = vst [vmem:[#allocation3_spill] sm:$0xff] %v7180_v16  ;;  %v3468_v5 = vsel %vm7093_vm4, %v7180_v16, -1e+30  ;;  %v7192_v19 = vadd.f32 %v7091_v29, %v3357_v63  ;;  %v3564_v54 = vsel %vm7097_vm5, %v7180_v16, -1e+30 }
 0x442   : > { %v5067_v27 = vpop.f32.mrf.mxu0 }
 0x443   : > { %3605 = vmax.xlane.f32.xlu1 %v3563_v23  ;;  %3511 = vmax.xlane.f32.xlu0 %v3468_v5  ;;  %8638 = vst [vmem:[#allocation5_spill] sm:$0xff] %v7192_v19  ;;  %v7201_v37 = vadd.f32 %v5067_v27, %v7091_v29  ;;  %v3466_v50 = vsel %vm7093_vm4, %v7192_v19, -1e+30  ;;  %v3562_v36 = vsel %vm7097_vm5, %v7192_v19, -1e+30 }
 0x444   : > { %v3370_v62 = vpop.f32.mrf.mxu0 }
 0x445   : > { %8639 = vst [vmem:[#allocation13_spill] sm:$0xff] %v7201_v37  ;;  %v3471_v7 = vsel %vm7093_vm4, %v7201_v37, -1e+30  ;;  %v7219_v41 = vadd.f32 %v7091_v29, %v3370_v62  ;;  %v3567_v39 = vsel %vm7097_vm5, %v7201_v37, -1e+30 }
 0x446   : > { %v5068_v48 = vpop.f32.mrf.mxu0 }
 0x447   : > { %3505 = vmax.xlane.f32.xlu1 %v3465_v12  ;;  %3607 = vmax.xlane.f32.xlu0 %v3564_v54  ;;  %v7210_v31 = vadd.f32 %v5068_v48, %v7091_v29  ;;  %8641 = vst [vmem:[#allocation7_spill] sm:$0xff] %v7219_v41  ;;  %v3469_v24 = vsel %vm7093_vm4, %v7219_v41, -1e+30  ;;  %v3565_v4 = vsel %vm7097_vm5, %v7219_v41, -1e+30 }
 0x448   : > { %v3373_v11 = vpop.f32.mrf.mxu0 }
 0x449   : > { %8640 = vst [vmem:[#allocation16_spill] sm:$0xff] %v7210_v31  ;;  %v3472_v42 = vsel %vm7093_vm4, %v7210_v31, -1e+30  ;;  %v7228_v15 = vadd.f32 %v7091_v29, %v3373_v11  ;;  %v3568_v14 = vsel %vm7097_vm5, %v7210_v31, -1e+30 }
 0x44b   : > { %3601 = vmax.xlane.f32.xlu1 %v3561_v26  ;;  %3507 = vmax.xlane.f32.xlu0 %v3466_v50  ;;  %8642 = vst [vmem:[#allocation12_spill] sm:$0xff] %v7228_v15  ;;  %v3470_v60 = vsel %vm7093_vm4, %v7228_v15, -1e+30  ;;  %v3566_v55 = vsel %vm7097_vm5, %v7228_v15, -1e+30 }
 0x44f   : > { %3517 = vmax.xlane.f32.xlu1 %v3471_v7  ;;  %3603 = vmax.xlane.f32.xlu0 %v3562_v36 }
 0x450   : > { %v5071_v47 = vpop.f32.mrf.mxu0 }
 0x451   : > { %v7237_v57 = vadd.f32 %v5071_v47, %v7091_v29 }
 0x452   : > { %v3386_v51 = vpop.f32.mrf.mxu0 }
 0x453   : > { %3613 = vmax.xlane.f32.xlu1 %v3567_v39  ;;  %3519 = vmax.xlane.f32.xlu0 %v3472_v42  ;;  %8643 = vst [vmem:[#allocation6_spill] sm:$0xff] %v7237_v57  ;;  %v3475_v61 = vsel %vm7093_vm4, %v7237_v57, -1e+30  ;;  %v7255_v40 = vadd.f32 %v7091_v29, %v3386_v51  ;;  %v3571_v49 = vsel %vm7097_vm5, %v7237_v57, -1e+30 }
 0x454   : > { %v5072_v53 = vpop.f32.mrf.mxu0 }
 0x455   : > { %v7246_v1 = vadd.f32 %v5072_v53, %v7091_v29  ;;  %8645 = vst [vmem:[#allocation9_spill] sm:$0xff] %v7255_v40  ;;  %v3473_v45 = vsel %vm7093_vm4, %v7255_v40, -1e+30  ;;  %v3569_v21 = vsel %vm7097_vm5, %v7255_v40, -1e+30 }
 0x456   : > { %v3389_v35 = vpop.f32.mrf.mxu0 }
 0x457   : > { %3513 = vmax.xlane.f32.xlu1 %v3469_v24  ;;  %3615 = vmax.xlane.f32.xlu0 %v3568_v14  ;;  %8644 = vst [vmem:[#allocation17_spill] sm:$0xff] %v7246_v1  ;;  %v3476_v20 = vsel %vm7093_vm4, %v7246_v1, -1e+30  ;;  %v7264_v17 = vadd.f32 %v7091_v29, %v3389_v35  ;;  %v3572_v58 = vsel %vm7097_vm5, %v7246_v1, -1e+30 }
 0x458   : > { %v5075_v32 = vpop.f32.mrf.mxu0 }
 0x459   : > { %8646 = vst [vmem:[#allocation8_spill] sm:$0xff] %v7264_v17  ;;  %v7273_v3 = vadd.f32 %v5075_v32, %v7091_v29  ;;  %v3474_v10 = vsel %vm7093_vm4, %v7264_v17, -1e+30  ;;  %v3570_v59 = vsel %vm7097_vm5, %v7264_v17, -1e+30 }
 0x45a   : > { %v3402_v2 = vpop.f32.mrf.mxu0 }
 0x45b   : > { %3609 = vmax.xlane.f32.xlu1 %v3565_v4  ;;  %3515 = vmax.xlane.f32.xlu0 %v3470_v60  ;;  %8647 = vst [vmem:[#allocation52_spill] sm:$0xff] %v7273_v3  ;;  %v3479_v34 = vsel %vm7093_vm4, %v7273_v3, -1e+30  ;;  %v7291_v22 = vadd.f32 %v7091_v29, %v3402_v2  ;;  %v3575_v63 = vsel %vm7097_vm5, %v7273_v3, -1e+30 }
 0x45c   : > { %v5076_v52 = vpop.f32.mrf.mxu0 }
 0x45d   : > { %v7282_v44 = vadd.f32 %v5076_v52, %v7091_v29  ;;  %8649 = vst [vmem:[#allocation46_spill] sm:$0xff] %v7291_v22  ;;  %v3477_v12 = vsel %vm7093_vm4, %v7291_v22, -1e+30  ;;  %v3573_v50 = vsel %vm7097_vm5, %v7291_v22, -1e+30 }
 0x45e   : > { %v3405_v28 = vpop.f32.mrf.mxu0 }
 0x45f   : > { %3525 = vmax.xlane.f32.xlu1 %v3475_v61  ;;  %3611 = vmax.xlane.f32.xlu0 %v3566_v55  ;;  %8648 = vst [vmem:[#allocation57_spill] sm:$0xff] %v7282_v44  ;;  %v3480_v23 = vsel %vm7093_vm4, %v7282_v44, -1e+30  ;;  %v7300_v27 = vadd.f32 %v7091_v29, %v3405_v28  ;;  %v3576_v54 = vsel %vm7097_vm5, %v7282_v44, -1e+30 }
 0x461   : > { %8650 = vst [vmem:[#allocation51_spill] sm:$0xff] %v7300_v27  ;;  %v3478_v48 = vsel %vm7093_vm4, %v7300_v27, -1e+30  ;;  %v3574_v39 = vsel %vm7097_vm5, %v7300_v27, -1e+30 }
 0x463   : > { %3621 = vmax.xlane.f32.xlu1 %v3571_v49  ;;  %3527 = vmax.xlane.f32.xlu0 %v3476_v20  ;;  %v5079_v5 = vpop.f32.mrf.mxu0 }
 0x464   : > { %v7309_v26 = vadd.f32 %v5079_v5, %v7091_v29 }
 0x465   : > { %v3418_v62 = vpop.f32.mrf.mxu0 }
 0x466   : > { %8651 = vst [vmem:[#allocation62_spill] sm:$0xff] %v7309_v26  ;;  %v3483_v11 = vsel %vm7093_vm4, %v7309_v26, -1e+30  ;;  %v7327_v47 = vadd.f32 %v7091_v29, %v3418_v62  ;;  %v3579_v24 = vsel %vm7097_vm5, %v7309_v26, -1e+30 }
 0x467   : > { %3521 = vmax.xlane.f32.xlu1 %v3473_v45  ;;  %3623 = vmax.xlane.f32.xlu0 %v3572_v58  ;;  %v5080_v7 = vpop.f32.mrf.mxu0 }
 0x468   : > { %v7318_v36 = vadd.f32 %v5080_v7, %v7091_v29  ;;  %8653 = vst [vmem:[#allocation21_spill] sm:$0xff] %v7327_v47  ;;  %v3481_v60 = vsel %vm7093_vm4, %v7327_v47, -1e+30  ;;  %v3577_v35 = vsel %vm7097_vm5, %v7327_v47, -1e+30 }
 0x469   : > { %v3421_v42 = vpop.f32.mrf.mxu0 }
 0x46a   : > { %8652 = vst [vmem:[#allocation20_spill] sm:$0xff] %v7318_v36  ;;  %v3484_v14 = vsel %vm7093_vm4, %v7318_v36, -1e+30  ;;  %v7336_v4 = vadd.f32 %v7091_v29, %v3421_v42  ;;  %v3580_v53 = vsel %vm7097_vm5, %v7318_v36, -1e+30 }
 0x46b   : > { %3617 = vmax.xlane.f32.xlu1 %v3569_v21  ;;  %3523 = vmax.xlane.f32.xlu0 %v3474_v10  ;;  %v5083_v51 = vpop.f32.mrf.mxu0 }
 0x46c   : > { %8654 = vst [vmem:[#allocation73_spill] sm:$0xff] %v7336_v4  ;;  %v7345_v55 = vadd.f32 %v5083_v51, %v7091_v29  ;;  %v3482_v49 = vsel %vm7093_vm4, %v7336_v4, -1e+30  ;;  %v3578_v58 = vsel %vm7097_vm5, %v7336_v4, -1e+30 }
 0x46d   : > { %v3434_v61 = vpop.f32.mrf.mxu0 }
 0x46e   : > { %8655 = vst [vmem:[#allocation91_spill] sm:$0xff] %v7345_v55  ;;  %v3487_v45 = vsel %vm7093_vm4, %v7345_v55, -1e+30  ;;  %v7363_v2 = vadd.f32 %v7091_v29, %v3434_v61  ;;  %v3583_v21 = vsel %vm7097_vm5, %v7345_v55, -1e+30 }
 0x46f   : > { %3533 = vmax.xlane.f32.xlu1 %v3479_v34  ;;  %3619 = vmax.xlane.f32.xlu0 %v3570_v59  ;;  %v5084_v20 = vpop.f32.mrf.mxu0 }
 0x470   : > { %v7354_v32 = vadd.f32 %v5084_v20, %v7091_v29  ;;  %v3485_v59 = vsel %vm7093_vm4, %v7363_v2, -1e+30 }
 0x471   : > { %v3437_v52 = vpop.f32.mrf.mxu0 }
 0x472   : > { %8656 = vst [vmem:[#allocation11_spill] sm:$0xff] %v7354_v32  ;;  %v3488_v10 = vsel %vm7093_vm4, %v7354_v32, -1e+30  ;;  %v7372_v34 = vadd.f32 %v7091_v29, %v3437_v52  ;;  %v3584_v28 = vsel %vm7097_vm5, %v7354_v32, -1e+30 }
 0x473   : > { %3629 = vmax.xlane.f32.xlu1 %v3575_v63  ;;  %3535 = vmax.xlane.f32.xlu0 %v3480_v23  ;;  %v3581_v63 = vsel %vm7097_vm5, %v7363_v2, -1e+30 }
 0x474   : > { %8657 = vst [vmem:[#allocation24_spill] sm:$0xff] %v7372_v34  ;;  %v3486_v23 = vsel %vm7093_vm4, %v7372_v34, -1e+30  ;;  %v3582_v29 = vsel %vm7097_vm5, %v7372_v34, -1e+30 }
 0x477   : > { %3529 = vmax.xlane.f32.xlu1 %v3477_v12  ;;  %3631 = vmax.xlane.f32.xlu0 %v3576_v54 }
 0x47b   : > { %3625 = vmax.xlane.f32.xlu1 %v3573_v50  ;;  %3531 = vmax.xlane.f32.xlu0 %v3478_v48 }
 0x47f   : > { %3541 = vmax.xlane.f32.xlu1 %v3483_v11  ;;  %3627 = vmax.xlane.f32.xlu0 %v3574_v39 }
 0x483   : > { %3637 = vmax.xlane.f32.xlu1 %v3579_v24  ;;  %3543 = vmax.xlane.f32.xlu0 %v3484_v14 }
 0x487   : > { %3537 = vmax.xlane.f32.xlu1 %v3481_v60  ;;  %3639 = vmax.xlane.f32.xlu0 %v3580_v53 }
 0x48b   : > { %3633 = vmax.xlane.f32.xlu1 %v3577_v35  ;;  %3539 = vmax.xlane.f32.xlu0 %v3482_v49 }
 0x48f   : > { %3549 = vmax.xlane.f32.xlu1 %v3487_v45  ;;  %3635 = vmax.xlane.f32.xlu0 %v3578_v58 }
 0x493   : > { %3645 = vmax.xlane.f32.xlu1 %v3583_v21  ;;  %3551 = vmax.xlane.f32.xlu0 %v3488_v10 }
 0x497   : > { %3545 = vmax.xlane.f32.xlu1 %v3485_v59  ;;  %3647 = vmax.xlane.f32.xlu0 %v3584_v28 }
 0x49b   : > { %3641 = vmax.xlane.f32.xlu1 %v3581_v63  ;;  %3547 = vmax.xlane.f32.xlu0 %v3486_v23 }
 0x49f   : > { %3643 = vmax.xlane.f32.xlu0 %v3582_v29 }
 0x4a2   : > { %v7389_v5 = vpop.xlane.xlu1 %3589  ;;  %v7391_v12 = vpop.xlane.xlu0 %3493 }
 0x4a3   : > { %v3651_v54 = vsel %vm7093_vm4, %v7391_v12, %v7389_v5 }
 0x4a4   : > { %v3684_v62 = vsub.f32 %v7102_v38, %v3651_v54 }
 0x4a6   : > { %v3718_v50 = vmul.f32 1.442695, %v3684_v62  ;;  %v7398_v48 = vpop.xlane.xlu1 %3585  ;;  %v7400_v7 = vpop.xlane.xlu0 %3489 }
 0x4a7   : > { %v3649_v11 = vsel %vm7093_vm4, %v7400_v7, %v7398_v48 }
 0x4a8   : > { %5344 = vpow2.f32 %v3718_v50  ;;  %v3682_v39 = vsub.f32 %v7105_v8, %v3649_v11 }
 0x4aa   : > { %v3714_v42 = vmul.f32 1.442695, %v3682_v39  ;;  %v7407_v24 = vpop.xlane.xlu0 %3495  ;;  %v7416_v53 = vpop.xlane.xlu1 %3491 }
 0x4ac   : > { %5346 = vpow2.f32 %v3714_v42 }
 0x4ae   : > { %v7409_v14 = vpop.xlane.xlu0 %3591 }
 0x4af   : > { %v3652_v51 = vsel %vm7093_vm4, %v7407_v24, %v7409_v14 }
 0x4b0   : > { %v3685_v60 = vsub.f32 %v7114_v18, %v3652_v51 }
 0x4b2   : > { %v3720_v61 = vmul.f32 1.442695, %v3685_v60  ;;  %v7418_v35 = vpop.xlane.xlu0 %3587 }
 0x4b3   : > { %v3650_v49 = vsel %vm7093_vm4, %v7416_v53, %v7418_v35 }
 0x4b4   : > { %5348 = vpow2.f32 %v3720_v61  ;;  %v3683_v45 = vsub.f32 %v7117_v30, %v3650_v49 }
 0x4b5   : > { %v5345_v58 = vpop.eup %5344 }
 0x4b6   : > { %v3716_v21 = vmul.f32 1.442695, %v3683_v45  ;;  %v3780_v10 = vsel %vm7428_vm6, %v5345_v58, 0.0 }
 0x4b7   : > { %3910 = vadd.xlane.f32.xlu1 %v3780_v10  ;;  %v3812_v43 = vsel %vm7093_vm4, %v3780_v10, 0.0 }
 0x4b8   : > { %v7435_v52 = vpop.xlane.xlu1 %3501  ;;  %5350 = vpow2.f32 %v3716_v21 }
 0x4b9   : > { %v5347_v59 = vpop.eup %5346 }
 0x4ba   : > { %v3778_v54 = vsel %vm7428_vm6, %v5347_v59, 0.0 }
 0x4bb   : > { %3846 = vadd.xlane.f32.xlu1 %v3812_v43  ;;  %v3810_v61 = vsel %vm7093_vm4, %v3778_v54, 0.0 }
 0x4bc   : > { %v7439_v28 = vpop.xlane.xlu1 %3597  ;;  %v7441_v63 = vpop.xlane.xlu0 %3503 }
 0x4bd   : > { %v3655_v23 = vsel %vm7093_vm4, %v7435_v52, %v7439_v28 }
 0x4be   : > { %v3688_v29 = vsub.f32 %v7138_v25, %v3655_v23 }
 0x4bf   : > { %3906 = vadd.xlane.f32.xlu1 %v3778_v54 }
 0x4c0   : > { %v3726_v62 = vmul.f32 1.442695, %v3688_v29  ;;  %v7450_v50 = vpop.xlane.xlu1 %3497  ;;  %v7452_v11 = vpop.xlane.xlu0 %3599 }
 0x4c1   : > { %v5349_v39 = vpop.eup %5348  ;;  %v3656_v42 = vsel %vm7093_vm4, %v7441_v63, %v7452_v11 }
 0x4c2   : > { %5352 = vpow2.f32 %v3726_v62  ;;  %v3689_v51 = vsub.f32 %v7144_v0, %v3656_v42  ;;  %v3781_v60 = vsel %vm7428_vm6, %v5349_v39, 0.0 }
 0x4c3   : > { %3912 = vadd.xlane.f32.xlu0 %v3781_v60  ;;  %3842 = vadd.xlane.f32.xlu1 %v3810_v61  ;;  %v3813_v43 = vsel %vm7093_vm4, %v3781_v60, 0.0 }
 0x4c4   : > { %v7463_v49 = vpop.xlane.xlu1 %3593  ;;  %v3728_v45 = vmul.f32 1.442695, %v3689_v51  ;;  %v7465_v58 = vpop.xlane.xlu0 %3499 }
 0x4c5   : > { %v3653_v21 = vsel %vm7093_vm4, %v7450_v50, %v7463_v49  ;;  %v5351_v59 = vpop.eup %5350 }
 0x4c6   : > { %v3686_v10 = vsub.f32 %v7147_v56, %v3653_v21  ;;  %5354 = vpow2.f32 %v3728_v45  ;;  %v3779_v42 = vsel %vm7428_vm6, %v5351_v59, 0.0 }
 0x4c7   : > { %3848 = vadd.xlane.f32.xlu0 %v3813_v43 }
 0x4c8   : > { %v3722_v23 = vmul.f32 1.442695, %v3686_v10  ;;  %v7474_v29 = vpop.xlane.xlu1 %3509  ;;  %v7476_v54 = vpop.xlane.xlu0 %3595  ;;  %v3811_v10 = vsel %vm7093_vm4, %v3779_v42, 0.0 }
 0x4c9   : > { %v3654_v62 = vsel %vm7093_vm4, %v7465_v58, %v7476_v54 }
 0x4ca   : > { %5356 = vpow2.f32 %v3722_v23  ;;  %v3687_v39 = vsub.f32 %v7156_v13, %v3654_v62 }
 0x4cb   : > { %3908 = vadd.xlane.f32.xlu0 %v3779_v42 }
 0x4cc   : > { %v7485_v51 = vpop.xlane.xlu1 %3605  ;;  %v3724_v60 = vmul.f32 1.442695, %v3687_v39  ;;  %v7487_v61 = vpop.xlane.xlu0 %3511 }
 0x4cd   : > { %8660 = vst [vmem:[#allocation10_spill] sm:$0xff] %v7485_v51  ;;  %8661 = vst [vmem:[#allocation14_spill] sm:$0xff] %v7487_v61  ;;  %v3659_v45 = vsel %vm7093_vm4, %v7474_v29, %v7485_v51 }
 0x4ce   : > { %v3692_v21 = vsub.f32 %v7171_v6, %v3659_v45  ;;  %5358 = vpow2.f32 %v3724_v60 }
 0x4cf   : > { %v5353_v43 = vpop.eup %5352  ;;  %3844 = vadd.xlane.f32.xlu0 %v3811_v10 }
 0x4d0   : > { %v3734_v59 = vmul.f32 1.442695, %v3692_v21  ;;  %v7496_v23 = vpop.xlane.xlu1 %3505  ;;  %v3784_v62 = vsel %vm7428_vm6, %v5353_v43, 0.0  ;;  %v7500_v39 = vpop.xlane.xlu0 %3607 }
 0x4d1   : > { %8662 = vst [vmem:[#allocation15_spill] sm:$0xff] %v7500_v39  ;;  %3918 = vadd.xlane.f32.xlu1 %v3784_v62  ;;  %v3660_v45 = vsel %vm7093_vm4, %v7487_v61, %v7500_v39  ;;  %v3816_v10 = vsel %vm7093_vm4, %v3784_v62, 0.0 }
 0x4d2   : > { %5360 = vpow2.f32 %v3734_v59  ;;  %v3693_v60 = vsub.f32 %v7180_v16, %v3660_v45 }
 0x4d3   : > { %v5355_v42 = vpop.eup %5354 }
 0x4d4   : > { %v7507_v6 = vpop.xlane.xlu1 %3601  ;;  %v3736_v21 = vmul.f32 1.442695, %v3693_v60  ;;  %v7511_v51 = vpop.xlane.xlu0 %3507  ;;  %v3785_v43 = vsel %vm7428_vm6, %v5355_v42, 0.0 }
 0x4d5   : > { %8663 = vst [vmem:[#allocation25_spill] sm:$0xff] %v7507_v6  ;;  %v3657_v39 = vsel %vm7093_vm4, %v7496_v23, %v7507_v6  ;;  %3854 = vadd.xlane.f32.xlu1 %v3816_v10  ;;  %3920 = vadd.xlane.f32.xlu0 %v3785_v43  ;;  %v3817_v42 = vsel %vm7093_vm4, %v3785_v43, 0.0 }
 0x4d6   : > { %v3690_v59 = vsub.f32 %v7183_v46, %v3657_v39  ;;  %5362 = vpow2.f32 %v3736_v21 }
 0x4d7   : > { %v5357_v45 = vpop.eup %5356 }
 0x4d8   : > { %v3730_v60 = vmul.f32 1.442695, %v3690_v59  ;;  %v7520_v16 = vpop.xlane.xlu1 %3517  ;;  %v3782_v62 = vsel %vm7428_vm6, %v5357_v45, 0.0  ;;  %v7524_v61 = vpop.xlane.xlu0 %3603 }
 0x4d9   : > { %8664 = vst [vmem:[#allocation18_spill] sm:$0xff] %v7524_v61  ;;  %3914 = vadd.xlane.f32.xlu1 %v3782_v62  ;;  %v3658_v10 = vsel %vm7093_vm4, %v7511_v51, %v7524_v61  ;;  %3856 = vadd.xlane.f32.xlu0 %v3817_v42  ;;  %v3814_v45 = vsel %vm7093_vm4, %v3782_v62, 0.0 }
 0x4da   : > { %5364 = vpow2.f32 %v3730_v60  ;;  %v3691_v39 = vsub.f32 %v7192_v19, %v3658_v10 }
 0x4db   : > { %v5359_v21 = vpop.eup %5358 }
 0x4dc   : > { %v7533_v59 = vpop.xlane.xlu1 %3613  ;;  %v3732_v46 = vmul.f32 1.442695, %v3691_v39  ;;  %v7537_v6 = vpop.xlane.xlu0 %3519  ;;  %v3783_v43 = vsel %vm7428_vm6, %v5359_v21, 0.0 }
 0x4dd   : > { %8665 = vst [vmem:[#allocation19_spill] sm:$0xff] %v7533_v59  ;;  %v3663_v42 = vsel %vm7093_vm4, %v7520_v16, %v7533_v59  ;;  %3850 = vadd.xlane.f32.xlu1 %v3814_v45  ;;  %3916 = vadd.xlane.f32.xlu0 %v3783_v43  ;;  %v3815_v21 = vsel %vm7093_vm4, %v3783_v43, 0.0 }
 0x4de   : > { %v3696_v60 = vsub.f32 %v7201_v37, %v3663_v42  ;;  %5366 = vpow2.f32 %v3732_v46 }
 0x4df   : > { %v5361_v10 = vpop.eup %5360 }
 0x4e0   : > { %v3742_v39 = vmul.f32 1.442695, %v3696_v60  ;;  %v7546_v19 = vpop.xlane.xlu1 %3513  ;;  %v3788_v62 = vsel %vm7428_vm6, %v5361_v10, 0.0  ;;  %v7550_v61 = vpop.xlane.xlu0 %3615 }
 0x4e1   : > { %8666 = vst [vmem:[#allocation22_spill] sm:$0xff] %v7550_v61  ;;  %3926 = vadd.xlane.f32.xlu1 %v3788_v62  ;;  %v3664_v45 = vsel %vm7093_vm4, %v7537_v6, %v7550_v61  ;;  %3852 = vadd.xlane.f32.xlu0 %v3815_v21  ;;  %v3820_v10 = vsel %vm7093_vm4, %v3788_v62, 0.0 }
 0x4e2   : > { %5368 = vpow2.f32 %v3742_v39  ;;  %v3697_v46 = vsub.f32 %v7210_v31, %v3664_v45 }
 0x4e3   : > { %v5363_v42 = vpop.eup %5362 }
 0x4e4   : > { %v7559_v60 = vpop.xlane.xlu1 %3609  ;;  %v3744_v37 = vmul.f32 1.442695, %v3697_v46  ;;  %v7563_v59 = vpop.xlane.xlu0 %3515  ;;  %v3789_v43 = vsel %vm7428_vm6, %v5363_v42, 0.0 }
 0x4e5   : > { %8667 = vst [vmem:[#allocation23_spill] sm:$0xff] %v7559_v60  ;;  %v3661_v21 = vsel %vm7093_vm4, %v7546_v19, %v7559_v60  ;;  %3862 = vadd.xlane.f32.xlu1 %v3820_v10  ;;  %3928 = vadd.xlane.f32.xlu0 %v3789_v43  ;;  %v3821_v42 = vsel %vm7093_vm4, %v3789_v43, 0.0 }
 0x4e6   : > { %v3694_v39 = vsub.f32 %v7219_v41, %v3661_v21  ;;  %5370 = vpow2.f32 %v3744_v37 }
 0x4e7   : > { %v5365_v45 = vpop.eup %5364 }
 0x4e8   : > { %v3738_v46 = vmul.f32 1.442695, %v3694_v39  ;;  %v7572_v31 = vpop.xlane.xlu1 %3525  ;;  %v3786_v62 = vsel %vm7428_vm6, %v5365_v45, 0.0  ;;  %v7576_v61 = vpop.xlane.xlu0 %3611 }
 0x4e9   : > { %8668 = vst [vmem:[#allocation28_spill] sm:$0xff] %v7576_v61  ;;  %3922 = vadd.xlane.f32.xlu1 %v3786_v62  ;;  %v3662_v10 = vsel %vm7093_vm4, %v7563_v59, %v7576_v61  ;;  %3864 = vadd.xlane.f32.xlu0 %v3821_v42  ;;  %v3818_v45 = vsel %vm7093_vm4, %v3786_v62, 0.0 }
 0x4ea   : > { %5372 = vpow2.f32 %v3738_v46  ;;  %v3695_v37 = vsub.f32 %v7228_v15, %v3662_v10 }
 0x4eb   : > { %v5367_v21 = vpop.eup %5366 }
 0x4ec   : > { %v7585_v39 = vpop.xlane.xlu1 %3621  ;;  %v3740_v41 = vmul.f32 1.442695, %v3695_v37  ;;  %v7589_v60 = vpop.xlane.xlu0 %3527  ;;  %v3787_v43 = vsel %vm7428_vm6, %v5367_v21, 0.0 }
 0x4ed   : > { %8669 = vst [vmem:[#allocation29_spill] sm:$0xff] %v7585_v39  ;;  %v3667_v42 = vsel %vm7093_vm4, %v7572_v31, %v7585_v39  ;;  %3858 = vadd.xlane.f32.xlu1 %v3818_v45  ;;  %3924 = vadd.xlane.f32.xlu0 %v3787_v43  ;;  %v3819_v21 = vsel %vm7093_vm4, %v3787_v43, 0.0 }
 0x4ee   : > { %v3700_v46 = vsub.f32 %v7237_v57, %v3667_v42  ;;  %5374 = vpow2.f32 %v3740_v41 }
 0x4ef   : > { %v5369_v10 = vpop.eup %5368 }
 0x4f0   : > { %v3750_v37 = vmul.f32 1.442695, %v3700_v46  ;;  %v7598_v15 = vpop.xlane.xlu1 %3521  ;;  %v3792_v62 = vsel %vm7428_vm6, %v5369_v10, 0.0  ;;  %v7602_v61 = vpop.xlane.xlu0 %3623 }
 0x4f1   : > { %8670 = vst [vmem:[#allocation32_spill] sm:$0xff] %v7602_v61  ;;  %3934 = vadd.xlane.f32.xlu1 %v3792_v62  ;;  %v3668_v45 = vsel %vm7093_vm4, %v7589_v60, %v7602_v61  ;;  %3860 = vadd.xlane.f32.xlu0 %v3819_v21  ;;  %v3824_v10 = vsel %vm7093_vm4, %v3792_v62, 0.0 }
 0x4f2   : > { %5376 = vpow2.f32 %v3750_v37  ;;  %v3701_v41 = vsub.f32 %v7246_v1, %v3668_v45 }
 0x4f3   : > { %v5371_v42 = vpop.eup %5370 }
 0x4f4   : > { %v7611_v46 = vpop.xlane.xlu1 %3617  ;;  %v3752_v57 = vmul.f32 1.442695, %v3701_v41  ;;  %v7615_v39 = vpop.xlane.xlu0 %3523  ;;  %v3793_v43 = vsel %vm7428_vm6, %v5371_v42, 0.0 }
 0x4f5   : > { %8671 = vst [vmem:[#allocation33_spill] sm:$0xff] %v7611_v46  ;;  %v3665_v21 = vsel %vm7093_vm4, %v7598_v15, %v7611_v46  ;;  %3870 = vadd.xlane.f32.xlu1 %v3824_v10  ;;  %3936 = vadd.xlane.f32.xlu0 %v3793_v43  ;;  %v3825_v42 = vsel %vm7093_vm4, %v3793_v43, 0.0 }
 0x4f6   : > { %v3698_v37 = vsub.f32 %v7255_v40, %v3665_v21  ;;  %5378 = vpow2.f32 %v3752_v57 }
 0x4f7   : > { %v5373_v45 = vpop.eup %5372 }
 0x4f8   : > { %v3746_v41 = vmul.f32 1.442695, %v3698_v37  ;;  %v7624_v1 = vpop.xlane.xlu1 %3533  ;;  %v3790_v62 = vsel %vm7428_vm6, %v5373_v45, 0.0  ;;  %v7628_v61 = vpop.xlane.xlu0 %3619 }
 0x4f9   : > { %8672 = vst [vmem:[#allocation26_spill] sm:$0xff] %v7628_v61  ;;  %3930 = vadd.xlane.f32.xlu1 %v3790_v62  ;;  %v3666_v10 = vsel %vm7093_vm4, %v7615_v39, %v7628_v61  ;;  %3872 = vadd.xlane.f32.xlu0 %v3825_v42  ;;  %v3822_v45 = vsel %vm7093_vm4, %v3790_v62, 0.0 }
 0x4fa   : > { %5380 = vpow2.f32 %v3746_v41  ;;  %v3699_v57 = vsub.f32 %v7264_v17, %v3666_v10 }
 0x4fb   : > { %v5375_v21 = vpop.eup %5374 }
 0x4fc   : > { %v7637_v37 = vpop.xlane.xlu1 %3629  ;;  %v3748_v40 = vmul.f32 1.442695, %v3699_v57  ;;  %v7641_v46 = vpop.xlane.xlu0 %3535  ;;  %v3791_v43 = vsel %vm7428_vm6, %v5375_v21, 0.0 }
 0x4fd   : > { %8673 = vst [vmem:[#allocation36_spill] sm:$0xff] %v7637_v37  ;;  %v3671_v42 = vsel %vm7093_vm4, %v7624_v1, %v7637_v37  ;;  %3866 = vadd.xlane.f32.xlu1 %v3822_v45  ;;  %3932 = vadd.xlane.f32.xlu0 %v3791_v43  ;;  %v3823_v21 = vsel %vm7093_vm4, %v3791_v43, 0.0 }
 0x4fe   : > { %v3704_v41 = vsub.f32 %v7273_v3, %v3671_v42  ;;  %5382 = vpow2.f32 %v3748_v40 }
 0x4ff   : > { %v5377_v10 = vpop.eup %5376 }
 0x500   : > { %v3758_v57 = vmul.f32 1.442695, %v3704_v41  ;;  %v7650_v17 = vpop.xlane.xlu1 %3529  ;;  %v3796_v62 = vsel %vm7428_vm6, %v5377_v10, 0.0  ;;  %v7654_v61 = vpop.xlane.xlu0 %3631 }
 0x501   : > { %8674 = vst [vmem:[#allocation27_spill] sm:$0xff] %v7654_v61  ;;  %3942 = vadd.xlane.f32.xlu1 %v3796_v62  ;;  %v3672_v45 = vsel %vm7093_vm4, %v7641_v46, %v7654_v61  ;;  %3868 = vadd.xlane.f32.xlu0 %v3823_v21  ;;  %v3828_v10 = vsel %vm7093_vm4, %v3796_v62, 0.0 }
 0x502   : > { %5384 = vpow2.f32 %v3758_v57  ;;  %v3705_v40 = vsub.f32 %v7282_v44, %v3672_v45 }
 0x503   : > { %v5379_v42 = vpop.eup %5378 }
 0x504   : > { %v7663_v41 = vpop.xlane.xlu1 %3625  ;;  %v3760_v3 = vmul.f32 1.442695, %v3705_v40  ;;  %v7667_v37 = vpop.xlane.xlu0 %3531  ;;  %v3797_v43 = vsel %vm7428_vm6, %v5379_v42, 0.0 }
 0x505   : > { %8675 = vst [vmem:[#allocation37_spill] sm:$0xff] %v7663_v41  ;;  %v3669_v21 = vsel %vm7093_vm4, %v7650_v17, %v7663_v41  ;;  %3878 = vadd.xlane.f32.xlu1 %v3828_v10  ;;  %3944 = vadd.xlane.f32.xlu0 %v3797_v43  ;;  %v3829_v42 = vsel %vm7093_vm4, %v3797_v43, 0.0 }
 0x506   : > { %v3702_v57 = vsub.f32 %v7291_v22, %v3669_v21  ;;  %5386 = vpow2.f32 %v3760_v3 }
 0x507   : > { %v5381_v45 = vpop.eup %5380 }
 0x508   : > { %v3754_v40 = vmul.f32 1.442695, %v3702_v57  ;;  %v7676_v44 = vpop.xlane.xlu1 %3541  ;;  %v3794_v62 = vsel %vm7428_vm6, %v5381_v45, 0.0  ;;  %v7680_v61 = vpop.xlane.xlu0 %3627 }
 0x509   : > { %8676 = vst [vmem:[#allocation40_spill] sm:$0xff] %v7680_v61  ;;  %3938 = vadd.xlane.f32.xlu1 %v3794_v62  ;;  %v3670_v10 = vsel %vm7093_vm4, %v7667_v37, %v7680_v61  ;;  %3880 = vadd.xlane.f32.xlu0 %v3829_v42  ;;  %v3826_v45 = vsel %vm7093_vm4, %v3794_v62, 0.0 }
 0x50a   : > { %5388 = vpow2.f32 %v3754_v40  ;;  %v3703_v3 = vsub.f32 %v7300_v27, %v3670_v10 }
 0x50b   : > { %v5383_v21 = vpop.eup %5382 }
 0x50c   : > { %v7689_v57 = vpop.xlane.xlu1 %3637  ;;  %v3756_v22 = vmul.f32 1.442695, %v3703_v3  ;;  %v7693_v41 = vpop.xlane.xlu0 %3543  ;;  %v3795_v43 = vsel %vm7428_vm6, %v5383_v21, 0.0 }
 0x50d   : > { %8677 = vst [vmem:[#allocation30_spill] sm:$0xff] %v7689_v57  ;;  %v3675_v42 = vsel %vm7093_vm4, %v7676_v44, %v7689_v57  ;;  %3874 = vadd.xlane.f32.xlu1 %v3826_v45  ;;  %3940 = vadd.xlane.f32.xlu0 %v3795_v43  ;;  %v3827_v21 = vsel %vm7093_vm4, %v3795_v43, 0.0 }
 0x50e   : > { %v3708_v40 = vsub.f32 %v7309_v26, %v3675_v42  ;;  %5390 = vpow2.f32 %v3756_v22 }
 0x50f   : > { %v5385_v10 = vpop.eup %5384 }
 0x510   : > { %v3766_v3 = vmul.f32 1.442695, %v3708_v40  ;;  %v7702_v27 = vpop.xlane.xlu1 %3537  ;;  %v3800_v62 = vsel %vm7428_vm6, %v5385_v10, 0.0  ;;  %v7706_v61 = vpop.xlane.xlu0 %3639 }
 0x511   : > { %8678 = vst [vmem:[#allocation41_spill] sm:$0xff] %v7706_v61  ;;  %3950 = vadd.xlane.f32.xlu1 %v3800_v62  ;;  %v3676_v45 = vsel %vm7093_vm4, %v7693_v41, %v7706_v61  ;;  %3876 = vadd.xlane.f32.xlu0 %v3827_v21  ;;  %v3832_v10 = vsel %vm7093_vm4, %v3800_v62, 0.0 }
 0x512   : > { %5392 = vpow2.f32 %v3766_v3  ;;  %v3709_v22 = vsub.f32 %v7318_v36, %v3676_v45 }
 0x513   : > { %v5387_v42 = vpop.eup %5386 }
 0x514   : > { %v7715_v40 = vpop.xlane.xlu1 %3633  ;;  %v3768_v26 = vmul.f32 1.442695, %v3709_v22  ;;  %v7719_v57 = vpop.xlane.xlu0 %3539  ;;  %v3801_v43 = vsel %vm7428_vm6, %v5387_v42, 0.0 }
 0x515   : > { %8679 = vst [vmem:[#allocation31_spill] sm:$0xff] %v7715_v40  ;;  %v3673_v21 = vsel %vm7093_vm4, %v7702_v27, %v7715_v40  ;;  %3886 = vadd.xlane.f32.xlu1 %v3832_v10  ;;  %3952 = vadd.xlane.f32.xlu0 %v3801_v43  ;;  %v3833_v42 = vsel %vm7093_vm4, %v3801_v43, 0.0 }
 0x516   : > { %v3706_v3 = vsub.f32 %v7327_v47, %v3673_v21  ;;  %5394 = vpow2.f32 %v3768_v26 }
 0x517   : > { %v5389_v45 = vpop.eup %5388 }
 0x518   : > { %v3762_v22 = vmul.f32 1.442695, %v3706_v3  ;;  %v7728_v36 = vpop.xlane.xlu1 %3549  ;;  %v3798_v62 = vsel %vm7428_vm6, %v5389_v45, 0.0  ;;  %v7732_v61 = vpop.xlane.xlu0 %3635 }
 0x519   : > { %8680 = vst [vmem:[#allocation34_spill] sm:$0xff] %v7728_v36  ;;  %8681 = vst [vmem:[#allocation35_spill] sm:$0xff] %v7732_v61  ;;  %3946 = vadd.xlane.f32.xlu1 %v3798_v62  ;;  %v3674_v10 = vsel %vm7093_vm4, %v7719_v57, %v7732_v61  ;;  %3888 = vadd.xlane.f32.xlu0 %v3833_v42  ;;  %v3830_v45 = vsel %vm7093_vm4, %v3798_v62, 0.0 }
 0x51a   : > { %5396 = vpow2.f32 %v3762_v22  ;;  %v3707_v26 = vsub.f32 %v7336_v4, %v3674_v10 }
 0x51b   : > { %v5391_v21 = vpop.eup %5390 }
 0x51c   : > { %v3764_v3 = vmul.f32 1.442695, %v3707_v26  ;;  %v7741_v47 = vpop.xlane.xlu1 %3645  ;;  %v7745_v40 = vpop.xlane.xlu0 %3551  ;;  %v3799_v43 = vsel %vm7428_vm6, %v5391_v21, 0.0 }
 0x51d   : > { %8682 = vst [vmem:[#allocation38_spill] sm:$0xff] %v7741_v47  ;;  %8683 = vst [vmem:[#allocation39_spill] sm:$0xff] %v7745_v40  ;;  %v3679_v42 = vsel %vm7093_vm4, %v7728_v36, %v7741_v47  ;;  %3882 = vadd.xlane.f32.xlu1 %v3830_v45  ;;  %3948 = vadd.xlane.f32.xlu0 %v3799_v43  ;;  %v3831_v21 = vsel %vm7093_vm4, %v3799_v43, 0.0 }
 0x51e   : > { %5398 = vpow2.f32 %v3764_v3  ;;  %v3712_v22 = vsub.f32 %v7345_v55, %v3679_v42 }
 0x51f   : > { %v5393_v10 = vpop.eup %5392 }
 0x520   : > { %v3774_v26 = vmul.f32 1.442695, %v3712_v22  ;;  %v7754_v4 = vpop.xlane.xlu1 %3545  ;;  %v3804_v62 = vsel %vm7428_vm6, %v5393_v10, 0.0  ;;  %v7758_v61 = vpop.xlane.xlu0 %3647 }
 0x521   : > { %8684 = vst [vmem:[#allocation48_spill] sm:$0xff] %v7758_v61  ;;  %3958 = vadd.xlane.f32.xlu1 %v3804_v62  ;;  %v3680_v3 = vsel %vm7093_vm4, %v7745_v40, %v7758_v61  ;;  %3884 = vadd.xlane.f32.xlu0 %v3831_v21  ;;  %v3836_v10 = vsel %vm7093_vm4, %v3804_v62, 0.0 }
 0x522   : > { %5400 = vpow2.f32 %v3774_v26  ;;  %v3713_v45 = vsub.f32 %v7354_v32, %v3680_v3 }
 0x523   : > { %v5395_v42 = vpop.eup %5394 }
 0x524   : > { %v3776_v22 = vmul.f32 1.442695, %v3713_v45  ;;  %v7767_v55 = vpop.xlane.xlu1 %3641  ;;  %v7771_v47 = vpop.xlane.xlu0 %3547  ;;  %v3805_v43 = vsel %vm7428_vm6, %v5395_v42, 0.0 }
 0x525   : > { %8685 = vst [vmem:[#allocation50_spill] sm:$0xff] %v7771_v47  ;;  %v3677_v21 = vsel %vm7093_vm4, %v7754_v4, %v7767_v55  ;;  %3894 = vadd.xlane.f32.xlu1 %v3836_v10  ;;  %3960 = vadd.xlane.f32.xlu0 %v3805_v43  ;;  %v3837_v42 = vsel %vm7093_vm4, %v3805_v43, 0.0 }
 0x526   : > { %5402 = vpow2.f32 %v3776_v22  ;;  %v3710_v26 = vsub.f32 %v7363_v2, %v3677_v21 }
 0x527   : > { %v5397_v3 = vpop.eup %5396 }
 0x528   : > { %v3770_v45 = vmul.f32 1.442695, %v3710_v26  ;;  %v3802_v62 = vsel %vm7428_vm6, %v5397_v3, 0.0  ;;  %v7782_v32 = vpop.xlane.xlu0 %3643 }
 0x529   : > { %8686 = vst [vmem:[#allocation60_spill] sm:$0xff] %v7782_v32  ;;  %3954 = vadd.xlane.f32.xlu1 %v3802_v62  ;;  %v3678_v10 = vsel %vm7093_vm4, %v7771_v47, %v7782_v32  ;;  %3896 = vadd.xlane.f32.xlu0 %v3837_v42  ;;  %v3834_v3 = vsel %vm7093_vm4, %v3802_v62, 0.0 }
 0x52a   : > { %5404 = vpow2.f32 %v3770_v45  ;;  %v3711_v22 = vsub.f32 %v7372_v34, %v3678_v10 }
 0x52b   : > { %v5399_v21 = vpop.eup %5398 }
 0x52c   : > { %v3772_v26 = vmul.f32 1.442695, %v3711_v22  ;;  %v3803_v61 = vsel %vm7428_vm6, %v5399_v21, 0.0 }
 0x52d   : > { %3890 = vadd.xlane.f32.xlu1 %v3834_v3  ;;  %3956 = vadd.xlane.f32.xlu0 %v3803_v61  ;;  %v3835_v45 = vsel %vm7093_vm4, %v3803_v61, 0.0 }
 0x52e   : > { %5406 = vpow2.f32 %v3772_v26 }
 0x52f   : > { %v5401_v43 = vpop.eup %5400 }
 0x530   : > { %v3808_v40 = vsel %vm7428_vm6, %v5401_v43, 0.0 }
 0x531   : > { %v3840_v42 = vsel %vm7093_vm4, %v3808_v40, 0.0  ;;  %3892 = vadd.xlane.f32.xlu0 %v3835_v45 }
 0x532   : > { %3902 = vadd.xlane.f32.xlu1 %v3840_v42 }
 0x533   : > { %v5403_v10 = vpop.eup %5402 }
 0x534   : > { %v3809_v62 = vsel %vm7428_vm6, %v5403_v10, 0.0 }
 0x535   : > { %v3841_v22 = vsel %vm7093_vm4, %v3809_v62, 0.0 }
 0x536   : > { %3904 = vadd.xlane.f32.xlu0 %v3841_v22 }
 0x537   : > { %v5405_v21 = vpop.eup %5404 }
 0x538   : > { %v3806_v26 = vsel %vm7428_vm6, %v5405_v21, 0.0 }
 0x539   : > { %3962 = vadd.xlane.f32.xlu1 %v3806_v26  ;;  %v3838_v61 = vsel %vm7093_vm4, %v3806_v26, 0.0 }
 0x53b   : > { %v5407_v3 = vpop.eup %5406 }
 0x53c   : > { %v3807_v43 = vsel %vm7428_vm6, %v5407_v3, 0.0 }
 0x53d   : > { %3898 = vadd.xlane.f32.xlu1 %v3838_v61  ;;  %3964 = vadd.xlane.f32.xlu0 %v3807_v43  ;;  %v3839_v45 = vsel %vm7093_vm4, %v3807_v43, 0.0 }
 0x540   : > { %v3911_v42 = vpop.xlane.xlu1 %3910 }
 0x541   : > { %3966 = vadd.xlane.f32.xlu1 %v3808_v40  ;;  %3900 = vadd.xlane.f32.xlu0 %v3839_v45 }
 0x544   : > { %v3847_v10 = vpop.xlane.xlu1 %3846 }
 0x545   : > { %3968 = vadd.xlane.f32.xlu0 %v3809_v62  ;;  %v3972_v22 = vsub.f32 %v3911_v42, %v3847_v10  ;;  %5408 = vlog2.f32 %v3847_v10 }
 0x547   : > { %5410 = vlog2.f32 %v3972_v22 }
 0x548   : > { %v3907_v21 = vpop.xlane.xlu1 %3906 }
 0x54c   : > { %v3913_v34 = vpop.xlane.xlu0 %3912  ;;  %v3843_v32 = vpop.xlane.xlu1 %3842 }
 0x54d   : > { %v3970_v26 = vsub.f32 %v3907_v21, %v3843_v32  ;;  %5412 = vlog2.f32 %v3843_v32 }
 0x54f   : > { %5414 = vlog2.f32 %v3970_v26 }
 0x550   : > { %v3849_v3 = vpop.xlane.xlu0 %3848 }
 0x551   : > { %v3973_v61 = vsub.f32 %v3913_v34, %v3849_v3  ;;  %5416 = vlog2.f32 %v3849_v3 }
 0x552   : > { %v5409_v47 = vpop.eup %5408 }
 0x553   : > { %v4007_v43 = vmul.f32 0.6931472, %v5409_v47  ;;  %5418 = vlog2.f32 %v3973_v61 }
 0x554   : > { %v5411_v40 = vpop.eup %5410  ;;  %v3909_v45 = vpop.xlane.xlu0 %3908 }
 0x555   : > { %v4103_v36 = vmul.f32 0.6931472, %v5411_v40  ;;  %v4068_v62 = vadd.f32 %v4007_v43, %v7391_v12 }
 0x557   : > { %v4164_v42 = vadd.f32 %v4103_v36, %v7389_v5  ;;  %v4261_v36 = vsel %vm4258_vm7, %v7102_v38, 0.0 }
 0x558   : > { %v3845_v10 = vpop.xlane.xlu0 %3844 }
 0x559   : > { %v4196_v32 = vsel %vm7093_vm4, %v4068_v62, %v4164_v42  ;;  %v3971_v22 = vsub.f32 %v3909_v45, %v3845_v10  ;;  %5420 = vlog2.f32 %v3845_v10 }
 0x55a   : > { %v5413_v34 = vpop.eup %5412  ;;  %v4228_v47 = vsub.f32 %v7102_v38, %v4196_v32  ;;  %v3919_v12 = vpop.xlane.xlu1 %3918 }
 0x55b   : > { %v4003_v5 = vmul.f32 0.6931472, %v5413_v34  ;;  %5422 = vlog2.f32 %v3971_v22  ;;  %v4259_v34 = vsel %vm4258_vm7, %v7105_v8, 0.0 }
 0x55c   : > { %v5415_v21 = vpop.eup %5414  ;;  %v4293_v26 = vsel %vm7428_vm6, %v4228_v47, %v4261_v36 }
 0x55d   : > { %4325 = vst [vmem:[%s7822_s19 + $0x10] sm:$0xff] %v4293_v26  ;;  %v4099_v3 = vmul.f32 0.6931472, %v5415_v21  ;;  %v4066_v43 = vadd.f32 %v4003_v5, %v7400_v7 }
 0x55e   : > { %v5417_v61 = vpop.eup %5416  ;;  %v3855_v40 = vpop.xlane.xlu1 %3854 }
 0x55f   : > { %v3921_v45 = vpop.xlane.xlu0 %3920  ;;  %v4162_v62 = vadd.f32 %v4099_v3, %v7398_v48  ;;  %v4009_v42 = vmul.f32 0.6931472, %v5417_v61  ;;  %v3976_v10 = vsub.f32 %v3919_v12, %v3855_v40  ;;  %5424 = vlog2.f32 %v3855_v40 }
 0x560   : > { %v5419_v38 = vpop.eup %5418 }
 0x561   : > { %v4194_v32 = vsel %vm7093_vm4, %v4066_v43, %v4162_v62  ;;  %v4105_v22 = vmul.f32 0.6931472, %v5419_v38  ;;  %5426 = vlog2.f32 %v3976_v10  ;;  %v4069_v48 = vadd.f32 %v4009_v42, %v7407_v24 }
 0x562   : > { %v4226_v7 = vsub.f32 %v7105_v8, %v4194_v32  ;;  %v3915_v47 = vpop.xlane.xlu1 %3914  ;;  %v4262_v24 = vsel %vm4258_vm7, %v7114_v18, 0.0 }
 0x563   : > { %v3857_v36 = vpop.xlane.xlu0 %3856  ;;  %v4165_v5 = vadd.f32 %v4105_v22, %v7409_v14 }
 0x564   : > { %v3977_v12 = vsub.f32 %v3921_v45, %v3857_v36  ;;  %5428 = vlog2.f32 %v3857_v36  ;;  %v4291_v21 = vsel %vm7428_vm6, %v4226_v7, %v4259_v34 }
 0x565   : > { %4323 = vst [vmem:[%s7822_s19] sm:$0xff] %v4291_v21  ;;  %v4197_v26 = vsel %vm7093_vm4, %v4069_v48, %v4165_v5 }
 0x566   : > { %5430 = vlog2.f32 %v3977_v12  ;;  %v5421_v3 = vpop.eup %5420  ;;  %v4229_v8 = vsub.f32 %v7114_v18, %v4197_v26  ;;  %v3851_v61 = vpop.xlane.xlu1 %3850 }
 0x567   : > { %v3917_v43 = vpop.xlane.xlu0 %3916  ;;  %v4005_v14 = vmul.f32 0.6931472, %v5421_v3  ;;  %v3974_v40 = vsub.f32 %v3915_v47, %v3851_v61  ;;  %5432 = vlog2.f32 %v3851_v61 }
 0x568   : > { %v5423_v45 = vpop.eup %5422  ;;  %v4294_v62 = vsel %vm7428_vm6, %v4229_v8, %v4262_v24 }
 0x569   : > { %4326 = vst [vmem:[%s7822_s19 + $0x18] sm:$0xff] %v4294_v62  ;;  %v4101_v42 = vmul.f32 0.6931472, %v5423_v45  ;;  %5434 = vlog2.f32 %v3974_v40  ;;  %v4067_v32 = vadd.f32 %v4005_v14, %v7416_v53  ;;  %v4260_v53 = vsel %vm4258_vm7, %v7117_v30, 0.0 }
 0x56a   : > { %v3927_v10 = vpop.xlane.xlu1 %3926 }
 0x56b   : > { %v3853_v38 = vpop.xlane.xlu0 %3852  ;;  %v4163_v22 = vadd.f32 %v4101_v42, %v7418_v35 }
 0x56c   : > { %v3975_v34 = vsub.f32 %v3917_v43, %v3853_v38  ;;  %5436 = vlog2.f32 %v3853_v38  ;;  %v5425_v7 = vpop.eup %5424 }
 0x56d   : > { %v4015_v18 = vmul.f32 0.6931472, %v5425_v7  ;;  %v4195_v47 = vsel %vm7093_vm4, %v4067_v32, %v4163_v22 }
 0x56e   : > { %5438 = vlog2.f32 %v3975_v34  ;;  %v5427_v36 = vpop.eup %5426  ;;  %v4227_v48 = vsub.f32 %v7117_v30, %v4195_v47  ;;  %v3863_v5 = vpop.xlane.xlu1 %3862 }
 0x56f   : > { %v3929_v12 = vpop.xlane.xlu0 %3928  ;;  %v4111_v21 = vmul.f32 0.6931472, %v5427_v36  ;;  %v3980_v35 = vsub.f32 %v3927_v10, %v3863_v5  ;;  %5440 = vlog2.f32 %v3863_v5  ;;  %v4072_v8 = vadd.f32 %v4015_v18, %v7435_v52 }
 0x570   : > { %v4292_v3 = vsel %vm7428_vm6, %v4227_v48, %v4260_v53  ;;  %v4265_v10 = vsel %vm4258_vm7, %v7138_v25, 0.0 }
 0x571   : > { %v5429_v26 = vpop.eup %5428  ;;  %v4168_v61 = vadd.f32 %v4111_v21, %v7439_v28  ;;  %4324 = vst [vmem:[%s7822_s19 + $0x8] sm:$0xff] %v4292_v3  ;;  %5442 = vlog2.f32 %v3980_v35 }
 0x572   : > { %v4017_v43 = vmul.f32 0.6931472, %v5429_v26  ;;  %v3923_v14 = vpop.xlane.xlu1 %3922 }
 0x573   : > { %v5431_v24 = vpop.eup %5430  ;;  %v3865_v40 = vpop.xlane.xlu0 %3864  ;;  %v4200_v30 = vsel %vm7093_vm4, %v4072_v8, %v4168_v61 }
 0x574   : > { %v4113_v45 = vmul.f32 0.6931472, %v5431_v24  ;;  %v3981_v62 = vsub.f32 %v3929_v12, %v3865_v40  ;;  %v5433_v42 = vpop.eup %5432  ;;  %v4232_v52 = vsub.f32 %v7138_v25, %v4200_v30  ;;  %5444 = vlog2.f32 %v3865_v40 }
 0x575   : > { %v4011_v28 = vmul.f32 0.6931472, %v5433_v42  ;;  %v4073_v38 = vadd.f32 %v4017_v43, %v7441_v63  ;;  %v4266_v63 = vsel %vm4258_vm7, %v7144_v0, 0.0 }
 0x576   : > { %v4169_v32 = vadd.f32 %v4113_v45, %v7452_v11  ;;  %5446 = vlog2.f32 %v3981_v62  ;;  %v5435_v22 = vpop.eup %5434  ;;  %v4297_v34 = vsel %vm7428_vm6, %v4232_v52, %v4265_v10  ;;  %v3859_v7 = vpop.xlane.xlu1 %3858 }
 0x577   : > { %v3925_v18 = vpop.xlane.xlu0 %3924  ;;  %4329 = vst [vmem:[%s7822_s19 + $0x30] sm:$0xff] %v4297_v34  ;;  %v4107_v47 = vmul.f32 0.6931472, %v5435_v22  ;;  %v3978_v25 = vsub.f32 %v3923_v14, %v3859_v7  ;;  %5448 = vlog2.f32 %v3859_v7  ;;  %v4070_v5 = vadd.f32 %v4011_v28, %v7450_v50 }
 0x578   : > { %v4201_v36 = vsel %vm7093_vm4, %v4073_v38, %v4169_v32  ;;  %v4263_v50 = vsel %vm4258_vm7, %v7147_v56, 0.0  ;;  %v8687_v32 = vld [vmem:[#allocation10_spill] sm:$0xff] }
 0x579   : > { %v5437_v48 = vpop.eup %5436  ;;  %v4233_v11 = vsub.f32 %v7144_v0, %v4201_v36  ;;  %v4166_v12 = vadd.f32 %v4107_v47, %v7463_v49  ;;  %5450 = vlog2.f32 %v3978_v25 }
 0x57a   : > { %v4013_v53 = vmul.f32 0.6931472, %v5437_v48  ;;  %v3935_v26 = vpop.xlane.xlu1 %3934 }
 0x57b   : > { %v5439_v21 = vpop.eup %5438  ;;  %v4298_v35 = vsel %vm7428_vm6, %v4233_v11, %v4266_v63  ;;  %v3861_v3 = vpop.xlane.xlu0 %3860  ;;  %v4198_v8 = vsel %vm7093_vm4, %v4070_v5, %v4166_v12  ;;  %v8689_v12 = vld [vmem:[#allocation14_spill] sm:$0xff] }
 0x57c   : > { %4330 = vst [vmem:[%s7822_s19 + $0x38] sm:$0xff] %v4298_v35  ;;  %v4109_v61 = vmul.f32 0.6931472, %v5439_v21  ;;  %v3979_v0 = vsub.f32 %v3925_v18, %v3861_v3  ;;  %v5441_v43 = vpop.eup %5440  ;;  %v4230_v49 = vsub.f32 %v7147_v56, %v4198_v8  ;;  %5452 = vlog2.f32 %v3861_v3  ;;  %v8690_v21 = vld [vmem:[#allocation15_spill] sm:$0xff] }
 0x57d   : > { %v4023_v24 = vmul.f32 0.6931472, %v5441_v43  ;;  %v4071_v14 = vadd.f32 %v4013_v53, %v7465_v58 }
 0x57e   : > { %v4167_v40 = vadd.f32 %v4109_v61, %v7476_v54  ;;  %5454 = vlog2.f32 %v3979_v0  ;;  %v5443_v30 = vpop.eup %5442  ;;  %v4295_v45 = vsel %vm7428_vm6, %v4230_v49, %v4263_v50  ;;  %v3871_v62 = vpop.xlane.xlu1 %3870  ;;  %v4264_v54 = vsel %vm4258_vm7, %v7156_v13, 0.0 }
 0x57f   : > { %v3937_v42 = vpop.xlane.xlu0 %3936  ;;  %4327 = vst [vmem:[%s7822_s19 + $0x20] sm:$0xff] %v4295_v45  ;;  %v4119_v10 = vmul.f32 0.6931472, %v5443_v30  ;;  %v3984_v56 = vsub.f32 %v3935_v26, %v3871_v62  ;;  %5456 = vlog2.f32 %v3871_v62  ;;  %v4076_v38 = vadd.f32 %v4023_v24, %v7474_v29  ;;  %v8691_v24 = vld [vmem:[#allocation3_spill] sm:$0xff]  ;;  %v8692_v62 = vld [vmem:[#allocation25_spill] sm:$0xff] }
 0x580   : > { %v4199_v52 = vsel %vm7093_vm4, %v4071_v14, %v4167_v40  ;;  %v4270_v30 = vsel %vm4258_vm7, %v8691_v24, 0.0 }
 0x581   : > { %v4231_v28 = vsub.f32 %v7156_v13, %v4199_v52  ;;  %v5445_v58 = vpop.eup %5444  ;;  %v4172_v22 = vadd.f32 %v4119_v10, %v8687_v32  ;;  %5458 = vlog2.f32 %v3984_v56  ;;  %v8688_v13 = vld [vmem:[#allocation2_spill] sm:$0xff] }
 0x582   : > { %v4025_v18 = vmul.f32 0.6931472, %v5445_v58  ;;  %v3931_v47 = vpop.xlane.xlu1 %3930  ;;  %v4269_v5 = vsel %vm4258_vm7, %v8688_v13, 0.0 }
 0x583   : > { %v5447_v34 = vpop.eup %5446  ;;  %v4296_v7 = vsel %vm7428_vm6, %v4231_v28, %v4264_v54  ;;  %v3873_v36 = vpop.xlane.xlu0 %3872  ;;  %v4204_v25 = vsel %vm7093_vm4, %v4076_v38, %v4172_v22  ;;  %v8693_v22 = vld [vmem:[#allocation4_spill] sm:$0xff] }
 0x584   : > { %4328 = vst [vmem:[%s7822_s19 + $0x28] sm:$0xff] %v4296_v7  ;;  %v4121_v48 = vmul.f32 0.6931472, %v5447_v34  ;;  %v3985_v63 = vsub.f32 %v3937_v42, %v3873_v36  ;;  %5460 = vlog2.f32 %v3873_v36  ;;  %v4236_v29 = vsub.f32 %v8688_v13, %v4204_v25  ;;  %v5449_v11 = vpop.eup %5448 }
 0x585   : > { %v4077_v53 = vadd.f32 %v4025_v18, %v8689_v12  ;;  %v4019_v8 = vmul.f32 0.6931472, %v5449_v11  ;;  %v4267_v7 = vsel %vm4258_vm7, %v8693_v22, 0.0 }
 0x586   : > { %v4173_v35 = vadd.f32 %v4121_v48, %v8690_v21  ;;  %5462 = vlog2.f32 %v3985_v63  ;;  %v5451_v26 = vpop.eup %5450  ;;  %v4301_v3 = vsel %vm7428_vm6, %v4236_v29, %v4269_v5  ;;  %v3867_v61 = vpop.xlane.xlu1 %3866 }
 0x587   : > { %v3933_v0 = vpop.xlane.xlu0 %3932  ;;  %4333 = vst [vmem:[%s7822_s19 + $0x50] sm:$0xff] %v4301_v3  ;;  %v4115_v43 = vmul.f32 0.6931472, %v5451_v26  ;;  %v3982_v49 = vsub.f32 %v3931_v47, %v3867_v61  ;;  %5464 = vlog2.f32 %v3867_v61  ;;  %v4074_v45 = vadd.f32 %v4019_v8, %v7496_v23  ;;  %v8694_v47 = vld [vmem:[#allocation18_spill] sm:$0xff]  ;;  %v8696_v3 = vld [vmem:[#allocation19_spill] sm:$0xff] }
 0x588   : > { %v4205_v50 = vsel %vm7093_vm4, %v4077_v53, %v4173_v35 }
 0x589   : > { %v4237_v14 = vsub.f32 %v8691_v24, %v4205_v50  ;;  %v5453_v40 = vpop.eup %5452  ;;  %v4170_v42 = vadd.f32 %v4115_v43, %v8692_v62  ;;  %5466 = vlog2.f32 %v3982_v49 }
 0x58a   : > { %v4021_v56 = vmul.f32 0.6931472, %v5453_v40  ;;  %v3943_v28 = vpop.xlane.xlu1 %3942 }
 0x58b   : > { %v5455_v10 = vpop.eup %5454  ;;  %v4302_v52 = vsel %vm7428_vm6, %v4237_v14, %v4270_v30  ;;  %v3869_v58 = vpop.xlane.xlu0 %3868  ;;  %v4202_v54 = vsel %vm7093_vm4, %v4074_v45, %v4170_v42  ;;  %v8697_v45 = vld [vmem:[#allocation13_spill] sm:$0xff] }
 0x58c   : > { %4334 = vst [vmem:[%s7822_s19 + $0x58] sm:$0xff] %v4302_v52  ;;  %v4117_v38 = vmul.f32 0.6931472, %v5455_v10  ;;  %v3983_v32 = vsub.f32 %v3933_v0, %v3869_v58  ;;  %5468 = vlog2.f32 %v3869_v58  ;;  %v4234_v23 = vsub.f32 %v8693_v22, %v4202_v54  ;;  %v5457_v34 = vpop.eup %5456  ;;  %v8698_v52 = vld [vmem:[#allocation22_spill] sm:$0xff] }
 0x58d   : > { %v4075_v18 = vadd.f32 %v4021_v56, %v7511_v51  ;;  %v4031_v63 = vmul.f32 0.6931472, %v5457_v34  ;;  %v8695_v51 = vld [vmem:[#allocation5_spill] sm:$0xff] }
 0x58e   : > { %v4171_v36 = vadd.f32 %v4117_v38, %v8694_v47  ;;  %5470 = vlog2.f32 %v3983_v32  ;;  %v5459_v25 = vpop.eup %5458  ;;  %v4299_v48 = vsel %vm7428_vm6, %v4234_v23, %v4267_v7  ;;  %v3879_v13 = vpop.xlane.xlu1 %3878  ;;  %v4268_v21 = vsel %vm4258_vm7, %v8695_v51, 0.0  ;;  %v8699_v7 = vld [vmem:[#allocation16_spill] sm:$0xff] }
 0x58f   : > { %v3945_v29 = vpop.xlane.xlu0 %3944  ;;  %4331 = vst [vmem:[%s7822_s19 + $0x40] sm:$0xff] %v4299_v48  ;;  %v4127_v11 = vmul.f32 0.6931472, %v5459_v25  ;;  %v3988_v12 = vsub.f32 %v3943_v28, %v3879_v13  ;;  %5472 = vlog2.f32 %v3879_v13  ;;  %v4080_v26 = vadd.f32 %v4031_v63, %v7520_v16 }
 0x590   : > { %v4203_v5 = vsel %vm7093_vm4, %v4075_v18, %v4171_v36  ;;  %v4273_v16 = vsel %vm4258_vm7, %v8697_v45, 0.0  ;;  %v8700_v36 = vld [vmem:[#allocation23_spill] sm:$0xff] }
 0x591   : > { %v5461_v53 = vpop.eup %5460  ;;  %v4235_v35 = vsub.f32 %v8695_v51, %v4203_v5  ;;  %v4176_v8 = vadd.f32 %v4127_v11, %v8696_v3  ;;  %5474 = vlog2.f32 %v3988_v12 }
 0x592   : > { %v4033_v61 = vmul.f32 0.6931472, %v5461_v53  ;;  %v3939_v50 = vpop.xlane.xlu1 %3938 }
 0x593   : > { %v5463_v0 = vpop.eup %5462  ;;  %v4300_v43 = vsel %vm7428_vm6, %v4235_v35, %v4268_v21  ;;  %v3881_v49 = vpop.xlane.xlu0 %3880  ;;  %v4208_v24 = vsel %vm7093_vm4, %v4080_v26, %v4176_v8  ;;  %v8701_v21 = vld [vmem:[#allocation7_spill] sm:$0xff]  ;;  %v8702_v8 = vld [vmem:[#allocation28_spill] sm:$0xff] }
 0x594   : > { %4332 = vst [vmem:[%s7822_s19 + $0x48] sm:$0xff] %v4300_v43  ;;  %v4129_v14 = vmul.f32 0.6931472, %v5463_v0  ;;  %v3989_v40 = vsub.f32 %v3945_v29, %v3881_v49  ;;  %v5465_v30 = vpop.eup %5464  ;;  %v4240_v62 = vsub.f32 %v8697_v45, %v4208_v24  ;;  %5476 = vlog2.f32 %v3881_v49 }
 0x595   : > { %v4027_v42 = vmul.f32 0.6931472, %v5465_v30  ;;  %v4081_v10 = vadd.f32 %v4033_v61, %v7537_v6  ;;  %v4274_v6 = vsel %vm4258_vm7, %v8699_v7, 0.0  ;;  %v8703_v30 = vld [vmem:[#allocation12_spill] sm:$0xff] }
 0x596   : > { %v4177_v56 = vadd.f32 %v4129_v14, %v8698_v52  ;;  %5478 = vlog2.f32 %v3989_v40  ;;  %v5467_v28 = vpop.eup %5466  ;;  %v4305_v58 = vsel %vm7428_vm6, %v4240_v62, %v4273_v16  ;;  %v3875_v54 = vpop.xlane.xlu1 %3874  ;;  %v4272_v16 = vsel %vm4258_vm7, %v8703_v30, 0.0 }
 0x597   : > { %v3941_v38 = vpop.xlane.xlu0 %3940  ;;  %4337 = vst [vmem:[%s7822_s19 + $0x70] sm:$0xff] %v4305_v58  ;;  %v4123_v32 = vmul.f32 0.6931472, %v5467_v28  ;;  %v3986_v23 = vsub.f32 %v3939_v50, %v3875_v54  ;;  %5480 = vlog2.f32 %v3875_v54  ;;  %v4078_v47 = vadd.f32 %v4027_v42, %v7546_v19  ;;  %v8704_v42 = vld [vmem:[#allocation29_spill] sm:$0xff] }
 0x598   : > { %v4209_v22 = vsel %vm7093_vm4, %v4081_v10, %v4177_v56  ;;  %v4271_v19 = vsel %vm4258_vm7, %v8701_v21, 0.0 }
 0x599   : > { %v5469_v34 = vpop.eup %5468  ;;  %v4241_v18 = vsub.f32 %v8699_v7, %v4209_v22  ;;  %v4174_v25 = vadd.f32 %v4123_v32, %v8700_v36  ;;  %5482 = vlog2.f32 %v3986_v23  ;;  %v8705_v23 = vld [vmem:[#allocation6_spill] sm:$0xff] }
 0x59a   : > { %v4029_v48 = vmul.f32 0.6931472, %v5469_v34  ;;  %v3951_v29 = vpop.xlane.xlu1 %3950  ;;  %v4277_v7 = vsel %vm4258_vm7, %v8705_v23, 0.0 }
 0x59b   : > { %v5471_v63 = vpop.eup %5470  ;;  %v4306_v13 = vsel %vm7428_vm6, %v4241_v18, %v4274_v6  ;;  %v3877_v11 = vpop.xlane.xlu0 %3876  ;;  %v4206_v5 = vsel %vm7093_vm4, %v4078_v47, %v4174_v25  ;;  %v8706_v18 = vld [vmem:[#allocation32_spill] sm:$0xff] }
 0x59c   : > { %4338 = vst [vmem:[%s7822_s19 + $0x78] sm:$0xff] %v4306_v13  ;;  %v4125_v12 = vmul.f32 0.6931472, %v5471_v63  ;;  %v3987_v53 = vsub.f32 %v3941_v38, %v3877_v11  ;;  %v5473_v51 = vpop.eup %5472  ;;  %v4238_v35 = vsub.f32 %v8701_v21, %v4206_v5  ;;  %5484 = vlog2.f32 %v3877_v11 }
 0x59d   : > { %v4039_v26 = vmul.f32 0.6931472, %v5473_v51  ;;  %v4079_v3 = vadd.f32 %v4029_v48, %v7563_v59 }
 0x59e   : > { %v4175_v61 = vadd.f32 %v4125_v12, %v8702_v8  ;;  %5486 = vlog2.f32 %v3987_v53  ;;  %v5475_v0 = vpop.eup %5474  ;;  %v4303_v43 = vsel %vm7428_vm6, %v4238_v35, %v4271_v19  ;;  %v3887_v50 = vpop.xlane.xlu1 %3886  ;;  %v8707_v12 = vld [vmem:[#allocation17_spill] sm:$0xff] }
 0x59f   : > { %v3953_v49 = vpop.xlane.xlu0 %3952  ;;  %4335 = vst [vmem:[%s7822_s19 + $0x60] sm:$0xff] %v4303_v43  ;;  %v4135_v24 = vmul.f32 0.6931472, %v5475_v0  ;;  %v3992_v40 = vsub.f32 %v3951_v29, %v3887_v50  ;;  %5488 = vlog2.f32 %v3887_v50  ;;  %v4084_v62 = vadd.f32 %v4039_v26, %v7572_v31  ;;  %v8708_v19 = vld [vmem:[#allocation33_spill] sm:$0xff] }
 0x5a0   : > { %v4207_v14 = vsel %vm7093_vm4, %v4079_v3, %v4175_v61  ;;  %v4278_v51 = vsel %vm4258_vm7, %v8707_v12, 0.0 }
 0x5a1   : > { %v4239_v45 = vsub.f32 %v8703_v30, %v4207_v14  ;;  %v5477_v59 = vpop.eup %5476  ;;  %v4180_v10 = vadd.f32 %v4135_v24, %v8704_v42  ;;  %5490 = vlog2.f32 %v3992_v40  ;;  %v8709_v24 = vld [vmem:[#allocation9_spill] sm:$0xff] }
 0x5a2   : > { %v4041_v28 = vmul.f32 0.6931472, %v5477_v59  ;;  %v3947_v58 = vpop.xlane.xlu1 %3946  ;;  %v4275_v40 = vsel %vm4258_vm7, %v8709_v24, 0.0 }
 0x5a3   : > { %v5479_v52 = vpop.eup %5478  ;;  %v4304_v56 = vsel %vm7428_vm6, %v4239_v45, %v4272_v16  ;;  %v3889_v54 = vpop.xlane.xlu0 %3888  ;;  %v4212_v38 = vsel %vm7093_vm4, %v4084_v62, %v4180_v10  ;;  %v8710_v45 = vld [vmem:[#allocation26_spill] sm:$0xff] }
 0x5a4   : > { %4336 = vst [vmem:[%s7822_s19 + $0x68] sm:$0xff] %v4304_v56  ;;  %v4137_v32 = vmul.f32 0.6931472, %v5479_v52  ;;  %v3993_v22 = vsub.f32 %v3953_v49, %v3889_v54  ;;  %5492 = vlog2.f32 %v3889_v54  ;;  %v4244_v31 = vsub.f32 %v8705_v23, %v4212_v38  ;;  %v5481_v34 = vpop.eup %5480  ;;  %v8712_v23 = vld [vmem:[#allocation36_spill] sm:$0xff] }
 0x5a5   : > { %v4085_v6 = vadd.f32 %v4041_v28, %v7589_v60  ;;  %v4035_v48 = vmul.f32 0.6931472, %v5481_v34 }
 0x5a6   : > { %v4181_v47 = vadd.f32 %v4137_v32, %v8706_v18  ;;  %5494 = vlog2.f32 %v3993_v22  ;;  %v5483_v36 = vpop.eup %5482  ;;  %v4309_v25 = vsel %vm7428_vm6, %v4244_v31, %v4277_v7  ;;  %v3883_v63 = vpop.xlane.xlu1 %3882 }
 0x5a7   : > { %v3949_v13 = vpop.xlane.xlu0 %3948  ;;  %4341 = vst [vmem:[%s7822_s19 + $0x90] sm:$0xff] %v4309_v25  ;;  %v4131_v29 = vmul.f32 0.6931472, %v5483_v36  ;;  %v3990_v5 = vsub.f32 %v3947_v58, %v3883_v63  ;;  %5496 = vlog2.f32 %v3883_v63  ;;  %v4082_v21 = vadd.f32 %v4035_v48, %v7598_v15 }
 0x5a8   : > { %v4213_v11 = vsel %vm7093_vm4, %v4085_v6, %v4181_v47 }
 0x5a9   : > { %v4245_v60 = vsub.f32 %v8707_v12, %v4213_v11  ;;  %v5485_v53 = vpop.eup %5484  ;;  %v4178_v35 = vadd.f32 %v4131_v29, %v8708_v19  ;;  %5498 = vlog2.f32 %v3990_v5  ;;  %v8714_v12 = vld [vmem:[#allocation27_spill] sm:$0xff] }
 0x5aa   : > { %v4037_v8 = vmul.f32 0.6931472, %v5485_v53  ;;  %v3959_v61 = vpop.xlane.xlu1 %3958 }
 0x5ab   : > { %v5487_v26 = vpop.eup %5486  ;;  %v4310_v3 = vsel %vm7428_vm6, %v4245_v60, %v4278_v51  ;;  %v3885_v0 = vpop.xlane.xlu0 %3884  ;;  %v4210_v43 = vsel %vm7093_vm4, %v4082_v21, %v4178_v35 }
 0x5ac   : > { %4342 = vst [vmem:[%s7822_s19 + $0x98] sm:$0xff] %v4310_v3  ;;  %v4133_v50 = vmul.f32 0.6931472, %v5487_v26  ;;  %v3991_v49 = vsub.f32 %v3949_v13, %v3885_v0  ;;  %5500 = vlog2.f32 %v3885_v0  ;;  %v4242_v15 = vsub.f32 %v8709_v24, %v4210_v43  ;;  %v5489_v14 = vpop.eup %5488  ;;  %v8713_v13 = vld [vmem:[#allocation52_spill] sm:$0xff] }
 0x5ad   : > { %v4083_v30 = vadd.f32 %v4037_v8, %v7615_v39  ;;  %v4047_v42 = vmul.f32 0.6931472, %v5489_v14  ;;  %v8711_v39 = vld [vmem:[#allocation8_spill] sm:$0xff] }
 0x5ae   : > { %v4179_v59 = vadd.f32 %v4133_v50, %v8710_v45  ;;  %5502 = vlog2.f32 %v3991_v49  ;;  %v5491_v16 = vpop.eup %5490  ;;  %v4307_v62 = vsel %vm7428_vm6, %v4242_v15, %v4275_v40  ;;  %v3895_v10 = vpop.xlane.xlu1 %3894  ;;  %v4276_v38 = vsel %vm4258_vm7, %v8711_v39, 0.0  ;;  %v8716_v50 = vld [vmem:[#allocation37_spill] sm:$0xff] }
 0x5af   : > { %v3961_v52 = vpop.xlane.xlu0 %3960  ;;  %4339 = vst [vmem:[%s7822_s19 + $0x80] sm:$0xff] %v4307_v62  ;;  %v4143_v56 = vmul.f32 0.6931472, %v5491_v16  ;;  %v3996_v58 = vsub.f32 %v3959_v61, %v3895_v10  ;;  %5504 = vlog2.f32 %v3895_v10  ;;  %v4088_v22 = vadd.f32 %v4047_v42, %v7624_v1  ;;  %v8715_v61 = vld [vmem:[#allocation57_spill] sm:$0xff]  ;;  %v8717_v62 = vld [vmem:[#allocation46_spill] sm:$0xff] }
 0x5b0   : > { %v4211_v28 = vsel %vm7093_vm4, %v4083_v30, %v4179_v59  ;;  %v4281_v1 = vsel %vm4258_vm7, %v8713_v13, 0.0 }
 0x5b1   : > { %v5493_v54 = vpop.eup %5492  ;;  %v4243_v32 = vsub.f32 %v8711_v39, %v4211_v28  ;;  %v4184_v31 = vadd.f32 %v4143_v56, %v8712_v23  ;;  %5506 = vlog2.f32 %v3996_v58  ;;  %v8718_v56 = vld [vmem:[#allocation40_spill] sm:$0xff] }
 0x5b2   : > { %v4049_v34 = vmul.f32 0.6931472, %v5493_v54  ;;  %v3955_v18 = vpop.xlane.xlu1 %3954 }
 0x5b3   : > { %v5495_v7 = vpop.eup %5494  ;;  %v4308_v6 = vsel %vm7428_vm6, %v4243_v32, %v4276_v38  ;;  %v3897_v47 = vpop.xlane.xlu0 %3896  ;;  %v4216_v36 = vsel %vm7093_vm4, %v4088_v22, %v4184_v31  ;;  %v8719_v22 = vld [vmem:[#allocation51_spill] sm:$0xff] }
 0x5b4   : > { %4340 = vst [vmem:[%s7822_s19 + $0x88] sm:$0xff] %v4308_v6  ;;  %v4145_v25 = vmul.f32 0.6931472, %v5495_v7  ;;  %v3997_v48 = vsub.f32 %v3961_v52, %v3897_v47  ;;  %v5497_v63 = vpop.eup %5496  ;;  %v4248_v29 = vsub.f32 %v8713_v13, %v4216_v36  ;;  %5508 = vlog2.f32 %v3897_v47  ;;  %v8720_v6 = vld [vmem:[#allocation30_spill] sm:$0xff] }
 0x5b5   : > { %v4043_v11 = vmul.f32 0.6931472, %v5497_v63  ;;  %v4089_v5 = vadd.f32 %v4049_v34, %v7641_v46  ;;  %v4282_v46 = vsel %vm4258_vm7, %v8715_v61, 0.0 }
 0x5b6   : > { %v4185_v60 = vadd.f32 %v4145_v25, %v8714_v12  ;;  %5510 = vlog2.f32 %v3997_v48  ;;  %v5499_v53 = vpop.eup %5498  ;;  %v4313_v51 = vsel %vm7428_vm6, %v4248_v29, %v4281_v1  ;;  %v3891_v21 = vpop.xlane.xlu1 %3890  ;;  %v8721_v1 = vld [vmem:[#allocation62_spill] sm:$0xff]  ;;  %v8722_v12 = vld [vmem:[#allocation41_spill] sm:$0xff] }
 0x5b7   : > { %v3957_v19 = vpop.xlane.xlu0 %3956  ;;  %4345 = vst [vmem:[%s7822_s19 + $0xb0] sm:$0xff] %v4313_v51  ;;  %v4139_v35 = vmul.f32 0.6931472, %v5499_v53  ;;  %v3994_v3 = vsub.f32 %v3955_v18, %v3891_v21  ;;  %5512 = vlog2.f32 %v3891_v21  ;;  %v4086_v43 = vadd.f32 %v4043_v11, %v7650_v17 }
 0x5b8   : > { %v4217_v26 = vsel %vm7093_vm4, %v4089_v5, %v4185_v60  ;;  %v4279_v17 = vsel %vm4258_vm7, %v8717_v62, 0.0 }
 0x5b9   : > { %v5501_v8 = vpop.eup %5500  ;;  %v4249_v0 = vsub.f32 %v8715_v61, %v4217_v26  ;;  %v4182_v49 = vadd.f32 %v4139_v35, %v8716_v50  ;;  %5514 = vlog2.f32 %v3994_v3  ;;  %v8723_v61 = vld [vmem:[#allocation20_spill] sm:$0xff] }
 0x5ba   : > { %v4045_v24 = vmul.f32 0.6931472, %v5501_v8 }
 0x5bb   : > { %v5503_v15 = vpop.eup %5502  ;;  %v4314_v14 = vsel %vm7428_vm6, %v4249_v0, %v4282_v46  ;;  %v3893_v40 = vpop.xlane.xlu0 %3892  ;;  %v4214_v30 = vsel %vm7093_vm4, %v4086_v43, %v4182_v49  ;;  %v8724_v43 = vld [vmem:[#allocation31_spill] sm:$0xff] }
 0x5bc   : > { %4346 = vst [vmem:[%s7822_s19 + $0xb8] sm:$0xff] %v4314_v14  ;;  %v4141_v45 = vmul.f32 0.6931472, %v5503_v15  ;;  %v3995_v59 = vsub.f32 %v3957_v19, %v3893_v40  ;;  %v5505_v16 = vpop.eup %5504  ;;  %v4246_v42 = vsub.f32 %v8717_v62, %v4214_v30  ;;  %v4087_v52 = vadd.f32 %v4045_v24, %v7667_v37  ;;  %v3903_v39 = vpop.xlane.xlu1 %3902 }
 0x5bd   : > { %v4055_v10 = vmul.f32 0.6931472, %v5505_v16  ;;  %5516 = vlog2.f32 %v3893_v40  ;;  %v4280_v37 = vsel %vm4258_vm7, %v8719_v22, 0.0 }
 0x5be   : > { %v4183_v28 = vadd.f32 %v4141_v45, %v8718_v56  ;;  %v5507_v58 = vpop.eup %5506  ;;  %v4311_v54 = vsel %vm7428_vm6, %v4246_v42, %v4279_v17  ;;  %5518 = vlog2.f32 %v3995_v59  ;;  %v8726_v56 = vld [vmem:[#allocation35_spill] sm:$0xff] }
 0x5bf   : > { %4343 = vst [vmem:[%s7822_s19 + $0xa0] sm:$0xff] %v4311_v54  ;;  %v4151_v38 = vmul.f32 0.6931472, %v5507_v58  ;;  %v3905_v31 = vpop.xlane.xlu0 %3904  ;;  %v4092_v7 = vadd.f32 %v4055_v10, %v7676_v44  ;;  %v4285_v44 = vsel %vm4258_vm7, %v8721_v1, 0.0 }
 0x5c0   : > { %v4215_v32 = vsel %vm7093_vm4, %v4087_v52, %v4183_v28 }
 0x5c1   : > { %v4247_v23 = vsub.f32 %v8719_v22, %v4215_v32  ;;  %v5509_v34 = vpop.eup %5508  ;;  %v4188_v18 = vadd.f32 %v4151_v38, %v8720_v6  ;;  %v8727_v38 = vld [vmem:[#allocation73_spill] sm:$0xff] }
 0x5c2   : > { %v4057_v25 = vmul.f32 0.6931472, %v5509_v34  ;;  %v3963_v48 = vpop.xlane.xlu1 %3962  ;;  %v4284_v22 = vsel %vm4258_vm7, %v8727_v38, 0.0 }
 0x5c3   : > { %v5511_v47 = vpop.eup %5510  ;;  %v4312_v36 = vsel %vm7428_vm6, %v4247_v23, %v4280_v37  ;;  %v4220_v63 = vsel %vm7093_vm4, %v4092_v7, %v4188_v18 }
 0x5c4   : > { %4344 = vst [vmem:[%s7822_s19 + $0xa8] sm:$0xff] %v4312_v36  ;;  %v4153_v13 = vmul.f32 0.6931472, %v5511_v47  ;;  %v4252_v29 = vsub.f32 %v8721_v1, %v4220_v63  ;;  %v5513_v11 = vpop.eup %5512  ;;  %v4093_v5 = vadd.f32 %v4057_v25, %v7693_v41  ;;  %v4286_v41 = vsel %vm4258_vm7, %v8723_v61, 0.0 }
 0x5c5   : > { %v4051_v21 = vmul.f32 0.6931472, %v5513_v11 }
 0x5c6   : > { %v4189_v60 = vadd.f32 %v4153_v13, %v8722_v12  ;;  %v5515_v53 = vpop.eup %5514  ;;  %v4317_v51 = vsel %vm7428_vm6, %v4252_v29, %v4285_v44  ;;  %v3899_v19 = vpop.xlane.xlu1 %3898  ;;  %v8728_v12 = vld [vmem:[#allocation34_spill] sm:$0xff] }
 0x5c7   : > { %v3965_v35 = vpop.xlane.xlu0 %3964  ;;  %4349 = vst [vmem:[%s7822_s19 + $0xd0] sm:$0xff] %v4317_v51  ;;  %v4147_v26 = vmul.f32 0.6931472, %v5515_v53  ;;  %v3998_v8 = vsub.f32 %v3963_v48, %v3899_v19  ;;  %5520 = vlog2.f32 %v3899_v19  ;;  %v4090_v0 = vadd.f32 %v4051_v21, %v7702_v27  ;;  %v8725_v27 = vld [vmem:[#allocation21_spill] sm:$0xff]  ;;  %v8729_v53 = vld [vmem:[#allocation38_spill] sm:$0xff] }
 0x5c8   : > { %v4221_v3 = vsel %vm7093_vm4, %v4093_v5, %v4189_v60  ;;  %5522 = vlog2.f32 %v3903_v39  ;;  %v4283_v42 = vsel %vm4258_vm7, %v8725_v27, 0.0  ;;  %v4287_v5 = vsel %vm4258_vm7, %v7363_v2, 0.0  ;;  %v8730_v19 = vld [vmem:[#allocation50_spill] sm:$0xff] }
 0x5c9   : > { %v4253_v46 = vsub.f32 %v8723_v61, %v4221_v3  ;;  %v4186_v50 = vadd.f32 %v4147_v26, %v8724_v43  ;;  %5524 = vlog2.f32 %v3998_v8  ;;  %v8731_v26 = vld [vmem:[#allocation60_spill] sm:$0xff]  ;;  %v8732_v61 = vld [vmem:[#allocation91_spill] sm:$0xff] }
 0x5ca   : > { %v5517_v49 = vpop.eup %5516  ;;  %5526 = vlog2.f32 %v3905_v31  ;;  %v3967_v15 = vpop.xlane.xlu1 %3966  ;;  %v8733_v43 = vld [vmem:[#allocation39_spill] sm:$0xff] }
 0x5cb   : > { %v4318_v24 = vsel %vm7428_vm6, %v4253_v46, %v4286_v41  ;;  %v3901_v14 = vpop.xlane.xlu0 %3900  ;;  %v5519_v40 = vpop.eup %5518  ;;  %v4218_v30 = vsel %vm7093_vm4, %v4090_v0, %v4186_v50  ;;  %v4053_v45 = vmul.f32 0.6931472, %v5517_v49  ;;  %v4000_v59 = vsub.f32 %v3967_v15, %v3903_v39  ;;  %v8734_v49 = vld [vmem:[#allocation24_spill] sm:$0xff] }
 0x5cc   : > { %4350 = vst [vmem:[%s7822_s19 + $0xd8] sm:$0xff] %v4318_v24  ;;  %v3999_v16 = vsub.f32 %v3965_v35, %v3901_v14  ;;  %v4250_v62 = vsub.f32 %v8725_v27, %v4218_v30  ;;  %v4149_v17 = vmul.f32 0.6931472, %v5519_v40  ;;  %5528 = vlog2.f32 %v3901_v14  ;;  %v8735_v15 = vld [vmem:[#allocation48_spill] sm:$0xff] }
 0x5cd   : > { %5530 = vlog2.f32 %v4000_v59  ;;  %v4091_v52 = vadd.f32 %v4053_v45, %v7719_v57  ;;  %v4289_v0 = vsel %vm4258_vm7, %v8732_v61, 0.0  ;;  %v4288_v40 = vsel %vm4258_vm7, %v8734_v49, 0.0 }
 0x5ce   : > { %v4315_v10 = vsel %vm7428_vm6, %v4250_v62, %v4283_v42  ;;  %v4187_v28 = vadd.f32 %v4149_v17, %v8726_v56  ;;  %5532 = vlog2.f32 %v3999_v16  ;;  %v8736_v16 = vld [vmem:[#allocation11_spill] sm:$0xff] }
 0x5cf   : > { %v3969_v58 = vpop.xlane.xlu0 %3968  ;;  %4347 = vst [vmem:[%s7822_s19 + $0xc0] sm:$0xff] %v4315_v10  ;;  %v4290_v62 = vsel %vm4258_vm7, %v8736_v16, 0.0 }
 0x5d0   : > { %v4001_v54 = vsub.f32 %v3969_v58, %v3905_v31  ;;  %v4219_v39 = vsel %vm7093_vm4, %v4091_v52, %v4187_v28 }
 0x5d1   : > { %v4251_v32 = vsub.f32 %v8727_v38, %v4219_v39 }
 0x5d2   : > { %5534 = vlog2.f32 %v4001_v54 }
 0x5d3   : > { %v4316_v23 = vsel %vm7428_vm6, %v4251_v32, %v4284_v22 }
 0x5d4   : > { %v5521_v57 = vpop.eup %5520  ;;  %4348 = vst [vmem:[%s7822_s19 + $0xc8] sm:$0xff] %v4316_v23 }
 0x5d5   : > { %v5523_v34 = vpop.eup %5522  ;;  %v4059_v37 = vmul.f32 0.6931472, %v5521_v57 }
 0x5d6   : > { %v5525_v7 = vpop.eup %5524  ;;  %v4063_v47 = vmul.f32 0.6931472, %v5523_v34 }
 0x5d7   : > { %v5527_v6 = vpop.eup %5526  ;;  %v4155_v31 = vmul.f32 0.6931472, %v5525_v7  ;;  %v4094_v36 = vadd.f32 %v4059_v37, %v7754_v4 }
 0x5d8   : > { %v4096_v60 = vadd.f32 %v4063_v47, %v8728_v12  ;;  %v4065_v4 = vmul.f32 0.6931472, %v5527_v6 }
 0x5d9   : > { %v5529_v18 = vpop.eup %5528  ;;  %v4190_v25 = vadd.f32 %v4155_v31, %v7767_v55 }
 0x5da   : > { %v5531_v48 = vpop.eup %5530  ;;  %v4061_v63 = vmul.f32 0.6931472, %v5529_v18  ;;  %v4097_v50 = vadd.f32 %v4065_v4, %v8733_v43 }
 0x5db   : > { %v5533_v13 = vpop.eup %5532  ;;  %v4222_v1 = vsel %vm7093_vm4, %v4094_v36, %v4190_v25  ;;  %v4159_v29 = vmul.f32 0.6931472, %v5531_v48 }
 0x5dc   : > { %v4254_v11 = vsub.f32 %v7363_v2, %v4222_v1  ;;  %v4157_v44 = vmul.f32 0.6931472, %v5533_v13  ;;  %v4095_v35 = vadd.f32 %v4061_v63, %v8730_v19 }
 0x5dd   : > { %v4192_v55 = vadd.f32 %v4159_v29, %v8729_v53 }
 0x5de   : > { %v4319_v21 = vsel %vm7428_vm6, %v4254_v11, %v4287_v5  ;;  %v4191_v3 = vadd.f32 %v4157_v44, %v8731_v26 }
 0x5df   : > { %v5535_v51 = vpop.eup %5534  ;;  %4351 = vst [vmem:[%s7822_s19 + $0xe0] sm:$0xff] %v4319_v21  ;;  %v4224_v8 = vsel %vm7093_vm4, %v4096_v60, %v4192_v55 }
 0x5e0   : > { %v4161_v2 = vmul.f32 0.6931472, %v5535_v51  ;;  %v4256_v46 = vsub.f32 %v8732_v61, %v4224_v8  ;;  %v4223_v41 = vsel %vm7093_vm4, %v4095_v35, %v4191_v3 }
 0x5e1   : > { %v4255_v24 = vsub.f32 %v8734_v49, %v4223_v41 }
 0x5e2   : > { %v4193_v14 = vadd.f32 %v4161_v2, %v8735_v15  ;;  %v4321_v30 = vsel %vm7428_vm6, %v4256_v46, %v4289_v0 }
 0x5e3   : > { %4353 = vst [vmem:[%s7822_s19 + $0xf0] sm:$0xff] %v4321_v30  ;;  %v4320_v45 = vsel %vm7428_vm6, %v4255_v24, %v4288_v40 }
 0x5e4   : > { %v4225_v59 = vsel %vm7093_vm4, %v4097_v50, %v4193_v14  ;;  %4352 = vst [vmem:[%s7822_s19 + $0xe8] sm:$0xff] %v4320_v45 }
 0x5e5   : > { %v4257_v27 = vsub.f32 %v8736_v16, %v4225_v59 }
 0x5e7   : > { %v4322_v17 = vsel %vm7428_vm6, %v4257_v27, %v4290_v62 }
 0x5e8   : > { %4354 = vst [vmem:[%s7822_s19 + $0xf8] sm:$0xff] %v4322_v17 }
 0x5e9 PF: > { %s22_s17 = sadd.s32 1, %s5542_s17  }
 0x5ea   : > { %p19_p4 = scmp.ge.s32.totalorder %s22_s17, 4  }
 0x5ec   :  { %21 = sbr.rel (!%p19_p4) target bundleno = 1 (0x1), region = 111 }

</bundles_post_ra>
